<compile_context>
chip_gen: v5e
topology: v5e:2x2
jax: 0.10.0
libtpu: 0.0.40
codegen_flags: <defaults>
</compile_context>

<pallas_src>
import jax
import jax.numpy as jnp
import numpy as np
from jax import lax
from jax.experimental import pallas as pl
from jax.experimental.pallas import tpu as pltpu


def _round_up(x, m):
    return ((x + m - 1) // m) * m


def _vmem_limit(nbytes):
    # Generous headroom, but stay well under v7x's 64 MiB physical VMEM.
    return int(min(max(4 * nbytes, 16 * 1024 * 1024), 48 * 1024 * 1024))


# ----------------------------------------------------------------------------
# Kernel 1: time-blocked LSTM recurrence with hoisted input projection
# ----------------------------------------------------------------------------
def _lstm_block_kernel(x_ref,       # (TT, BT, Ep)   bf16 inputs for this block
                       wih_ref,     # (Ep, 4Hp)      bf16 (gate-padded)
                       whh_ref,     # (Hp, 4Hp)      bf16 (gate-padded)
                       b_ref,       # (1, 4Hp)       f32  (b_ih + b_hh, padded)
                       h_out_ref,   # (TT, BT, Hp)   bf16 hidden states out
                       g_sc,        # (TT, BT, 4Hp)  f32 scratch: x@W_ih + b
                       h_sc,        # (BT, Hp)       f32 scratch (hidden carry)
                       c_sc):       # (BT, Hp)       f32 scratch (cell carry)
    tb = pl.program_id(1)

    @pl.when(tb == 0)
    def _():
        h_sc[...] = jnp.zeros_like(h_sc)
        c_sc[...] = jnp.zeros_like(c_sc)

    TT, BT, Ep = x_ref.shape
    Hp = whh_ref.shape[0]

    w_hh = whh_ref[...]                                      # (Hp, 4Hp) bf16

    # Hoisted input projection: ONE MXU-friendly GEMM for the whole block,
    # bias folded in, latency hidden off the serial h-dependency path.
    x_all = x_ref[...].reshape(TT * BT, Ep)                  # bf16
    xw = (jnp.dot(x_all, wih_ref[...], preferred_element_type=jnp.float32)
          + b_ref[...])                                      # (TT*BT, 4Hp) f32
    g_sc[...] = xw.reshape(TT, BT, 4 * Hp)

    def step(t, carry):
        h_prev, c_prev = carry                               # f32 (BT, Hp)
        gates = g_sc[t] + jnp.dot(h_prev.astype(jnp.bfloat16), w_hh,
                                  preferred_element_type=jnp.float32)
        # Hp is a multiple of 128 -> each gate slice is lane-aligned (free).
        i_g = jax.nn.sigmoid(gates[:, 0 * Hp:1 * Hp])
        f_g = jax.nn.sigmoid(gates[:, 1 * Hp:2 * Hp])
        g_g = jnp.tanh(gates[:, 2 * Hp:3 * Hp])
        o_g = jax.nn.sigmoid(gates[:, 3 * Hp:4 * Hp])
        c_new = f_g * c_prev + i_g * g_g
        h_new = o_g * jnp.tanh(c_new)
        h_out_ref[t] = h_new.astype(h_out_ref.dtype)
        return h_new, c_new

    h_fin, c_fin = lax.fori_loop(0, TT, step, (h_sc[...], c_sc[...]),
                                 unroll=True)
    h_sc[...] = h_fin
    c_sc[...] = c_fin


# ----------------------------------------------------------------------------
# Kernel 2: hoisted output projection (one tiled GEMM over all timesteps)
# ----------------------------------------------------------------------------
def _fc_kernel(h_ref, w_ref, b_ref, o_ref):
    o_ref[...] = (jnp.dot(h_ref[...], w_ref[...],
                          preferred_element_type=jnp.float32)
                  + b_ref[...]).astype(o_ref.dtype)


# ----------------------------------------------------------------------------
# One-time parameter preparation (padding / bf16 casting outside the hot path)
# ----------------------------------------------------------------------------
def prepare_params(params):
    emb = params["embedding"]          # (V, E)
    w_ih_t = params["w_ih_t"]          # (E, 4H)
    w_hh_t = params["w_hh_t"]          # (H, 4H)
    b_gates = params["b_gates"]        # (1, 4H)
    w_fc_t = params["w_fc_t"]          # (H, V)
    b_fc = params["b_fc"]              # (1, V)

    V, E = emb.shape
    H = w_hh_t.shape[0]
    Ep = _round_up(E, 128)
    Hp = _round_up(H, 128)
    Vp = _round_up(V, 128)

    def pad_gates(w, rows_to):
        r = w.shape[0]
        w4 = w.reshape(r, 4, H)
        w4 = jnp.pad(w4, ((0, rows_to - r), (0, 0), (0, Hp - H)))
        return w4.reshape(rows_to, 4 * Hp)

    return {
        "embedding_bf": jnp.pad(emb, ((0, 0), (0, Ep - E))).astype(jnp.bfloat16),
        "w_ih_bf": pad_gates(w_ih_t, Ep).astype(jnp.bfloat16),
        "w_hh_bf": pad_gates(w_hh_t, Hp).astype(jnp.bfloat16),
        "b_gates_p": pad_gates(b_gates, 1).astype(jnp.float32),
        "w_fc_bf": jnp.pad(w_fc_t, ((0, Hp - H), (0, Vp - V))).astype(jnp.bfloat16),
        "b_fc_p": jnp.pad(b_fc, ((0, 0), (0, Vp - V))).astype(jnp.float32),
    }


# ----------------------------------------------------------------------------
# Wrapper: mirrors DecoderRNN.forward(features, captions)
# ----------------------------------------------------------------------------
def decoder_rnn_forward(features, captions, prep, *, time_block=32,
                        batch_tile=128):
    """features: (B, E) f32, captions: (B, L) int32 -> logits (B, L, V) f32."""
    emb = prep["embedding_bf"]         # (V, Ep) bf16
    w_ih = prep["w_ih_bf"]             # (Ep, 4Hp)
    w_hh = prep["w_hh_bf"]             # (Hp, 4Hp)
    b_g = prep["b_gates_p"]            # (1, 4Hp)
    w_fc = prep["w_fc_bf"]             # (Hp, Vp)
    b_fc = prep["b_fc_p"]              # (1, Vp)

    B, E = features.shape
    V, Ep = emb.shape
    Hp = w_hh.shape[0]
    Vp = w_fc.shape[1]
    T = captions.shape[1]              # 1 feature token + (L-1) word tokens

    # Build the sequence time-major directly from the (pre-padded bf16)
    # embedding gather; only the tiny int index array is transposed.
    tok_tm = captions[:, :-1].T                               # (T-1, B)
    embeds_tm = jnp.take(emb, tok_tm, axis=0)                 # (T-1, B, Ep)
    feat_p = jnp.pad(features, ((0, 0), (0, Ep - E))).astype(jnp.bfloat16)
    seq_tm = jnp.concatenate([feat_p[None], embeds_tm], axis=0)   # (T, B, Ep)

    # Pad batch (>=16: full bf16 sublane pack, tiled for megacore) and time.
    TT = min(time_block, T)
    Tp = _round_up(T, TT)
    BT = min(batch_tile, _round_up(B, 16))
    Bp = _round_up(_round_up(B, 16), BT)
    seq_bf = jnp.pad(seq_tm, ((0, Tp - T), (0, Bp - B), (0, 0)))

    # ---------------- kernel 1: LSTM recurrence -----------------------------
    lstm_vmem = (2 * TT * BT * Ep * 2 + 2 * TT * BT * Hp * 2   # x / h_out x2
                 + Ep * 4 * Hp * 2 + Hp * 4 * Hp * 2 + 4 * Hp * 4  # weights
                 + TT * BT * 4 * Hp * 4 + 2 * BT * Hp * 4)     # scratch
    hs_tm = pl.pallas_call(
        _lstm_block_kernel,
        out_shape=jax.ShapeDtypeStruct((Tp, Bp, Hp), jnp.bfloat16),
        grid_spec=pltpu.PrefetchScalarGridSpec(
            num_scalar_prefetch=0,
            grid=(Bp // BT, Tp // TT),         # (batch-parallel, time-serial)
            in_specs=[
                pl.BlockSpec((TT, BT, Ep), lambda bi, tb: (tb, bi, 0)),
                # Grid-invariant weights: single-buffer (never re-fetched).
                pl.BlockSpec((Ep, 4 * Hp), lambda bi, tb: (0, 0),
                             pipeline_mode=pl.Buffered(1)),
                pl.BlockSpec((Hp, 4 * Hp), lambda bi, tb: (0, 0),
                             pipeline_mode=pl.Buffered(1)),
                pl.BlockSpec((1, 4 * Hp), lambda bi, tb: (0, 0),
                             pipeline_mode=pl.Buffered(1)),
            ],
            out_specs=pl.BlockSpec((TT, BT, Hp), lambda bi, tb: (tb, bi, 0)),
            scratch_shapes=[
                pltpu.VMEM((TT, BT, 4 * Hp), jnp.float32),  # x@W_ih + b
                pltpu.VMEM((BT, Hp), jnp.float32),          # h carry
                pltpu.VMEM((BT, Hp), jnp.float32),          # c carry
            ]),
        compiler_params=pltpu.CompilerParams(
            dimension_semantics=("parallel", "arbitrary"),
            vmem_limit_bytes=_vmem_limit(lstm_vmem)),
    )(seq_bf, w_ih, w_hh, b_g)

    # ---------------- kernel 2: fc projection as one big GEMM ---------------
    M = Tp * Bp
    hs_flat = hs_tm.reshape(M, Hp)                 # contiguous reshape (free)
    tm = min(512, M)                               # M is a multiple of 16
    Mp = _round_up(M, tm)
    tn = 512 if Vp % 512 == 0 else (256 if Vp % 256 == 0 else 128)
    hs_flat = jnp.pad(hs_flat, ((0, Mp - M), (0, 0)))

    fc_vmem = (2 * tm * Hp * 2 + 2 * Hp * tn * 2 + 2 * tn * 4
               + 2 * tm * tn * 4)
    logits_flat = pl.pallas_call(
        _fc_kernel,
        out_shape=jax.ShapeDtypeStruct((Mp, Vp), jnp.float32),
        grid_spec=pltpu.PrefetchScalarGridSpec(
            num_scalar_prefetch=0,
            # Weight-stationary order: W_fc tile resident across the M loop.
            grid=(Vp // tn, Mp // tm),
            in_specs=[
                pl.BlockSpec((tm, Hp), lambda j, i: (i, 0)),
                pl.BlockSpec((Hp, tn), lambda j, i: (0, j)),
                pl.BlockSpec((1, tn), lambda j, i: (0, j)),
            ],
            out_specs=pl.BlockSpec((tm, tn), lambda j, i: (i, j)),
        ),
        compiler_params=pltpu.CompilerParams(
            dimension_semantics=("parallel", "parallel"),
            vmem_limit_bytes=_vmem_limit(fc_vmem)),
    )(hs_flat, w_fc, b_fc)

    # Strip padding; return batch-first (B, T, V) to match nn.Module semantics.
    logits = logits_flat[:M, :].reshape(Tp, Bp, Vp)[:T, :B, :V]
    return jnp.transpose(logits, (1, 0, 2))


# ----------------------------------------------------------------------------
# Pure-JAX reference (lax.scan LSTM) mirroring the kernel's bf16 MXU operands.
# ----------------------------------------------------------------------------
def decoder_rnn_reference(features, captions, params):
    emb = params["embedding"].astype(jnp.bfloat16)
    w_ih = params["w_ih_t"].astype(jnp.bfloat16)
    w_hh = params["w_hh_t"].astype(jnp.bfloat16)
    b = params["b_gates"][0]
    w_fc = params["w_fc_t"].astype(jnp.bfloat16)
    b_fc = params["b_fc"][0]
    H = params["w_hh_t"].shape[0]

    embeds = jnp.take(emb, captions[:, :-1], axis=0)
    seq = jnp.concatenate(
        [features[:, None, :].astype(jnp.bfloat16), embeds], 1)
    B = seq.shape[0]

    def step(carry, x_t):
        h, c = carry
        xw = jnp.dot(x_t, w_ih, preferred_element_type=jnp.float32) + b
        gates = xw + jnp.dot(h.astype(jnp.bfloat16), w_hh,
                             preferred_element_type=jnp.float32)
        i = jax.nn.sigmoid(gates[:, 0 * H:1 * H])
        f = jax.nn.sigmoid(gates[:, 1 * H:2 * H])
        g = jnp.tanh(gates[:, 2 * H:3 * H])
        o = jax.nn.sigmoid(gates[:, 3 * H:4 * H])
        c = f * c + i * g
        h = o * jnp.tanh(c)
        return (h, c), h

    h0 = jnp.zeros((B, H), jnp.float32)
    c0 = jnp.zeros((B, H), jnp.float32)
    _, hs = lax.scan(step, (h0, c0), jnp.transpose(seq, (1, 0, 2)))
    hs = jnp.transpose(hs, (1, 0, 2))                          # (B, T, H)
    return jnp.dot(hs.astype(jnp.bfloat16), w_fc,
                   preferred_element_type=jnp.float32) + b_fc


# ----------------------------------------------------------------------------
# Deterministic parameter init (synthetic; shapes follow the nn.Module)
# ----------------------------------------------------------------------------
def init_params(key, embed_size, hidden_size, vocab_size):
    ks = jax.random.split(key, 7)
    s = 1.0 / np.sqrt(hidden_size)
    return {
        "embedding": jax.random.normal(ks[0], (vocab_size, embed_size), jnp.float32),
        "w_ih_t": jax.random.uniform(ks[1], (embed_size, 4 * hidden_size), jnp.float32, -s, s),
        "w_hh_t": jax.random.uniform(ks[2], (hidden_size, 4 * hidden_size), jnp.float32, -s, s),
        "b_gates": (jax.random.uniform(ks[3], (1, 4 * hidden_size), jnp.float32, -s, s)
                    + jax.random.uniform(ks[4], (1, 4 * hidden_size), jnp.float32, -s, s)),
        "w_fc_t": jax.random.uniform(ks[5], (hidden_size, vocab_size), jnp.float32, -s, s),
        "b_fc": jax.random.uniform(ks[6], (1, vocab_size), jnp.float32, -s, s),
    }


# TODO(synk): the autoregressive `sample()` loop (data-dependent termination)
# is not implemented; only forward() is translated.

if __name__ == "__main__":
    # Small shapes: batch=2, embed=32, hidden=32, vocab=128, caption length=8.
    B, E, H, V, L = 2, 32, 32, 128, 8

    key = jax.random.PRNGKey(0)
    k_feat, k_cap, k_par = jax.random.split(key, 3)

    features = jax.random.normal(k_feat, (B, E), jnp.float32)
    captions = jax.random.randint(k_cap, (B, L), 0, V, jnp.int32)
    params = init_params(k_par, E, H, V)

    # One-time weight padding / casting (outside the jitted per-call path).
    prep = prepare_params(params)

    out = jax.jit(decoder_rnn_forward)(features, captions, prep)
    out = jax.block_until_ready(out)

    ref = jax.block_until_ready(
        jax.jit(decoder_rnn_reference)(features, captions, params))
    assert out.shape == (B, L, V), out.shape
    np.testing.assert_allclose(np.asarray(out), np.asarray(ref),
                               rtol=1e-3, atol=1e-3)

    print("KERNEL_OK")
</pallas_src>

<mosaic_0001>
module attributes {stable_mosaic.version = 11 : i64} {
  func.func @_fc_kernel(%arg0: i32, %arg1: i32, %arg2: memref<128x128xbf16, #tpu.memory_space<vmem>>, %arg3: memref<128x128xbf16, #tpu.memory_space<vmem>>, %arg4: memref<1x128xf32, #tpu.memory_space<vmem>>, %arg5: memref<128x128xf32, #tpu.memory_space<vmem>>) attributes {dimension_semantics = [#tpu.dimension_semantics<parallel>, #tpu.dimension_semantics<parallel>], iteration_bounds = array<i64: 1, 1>, scalar_prefetch = 0 : i64, scratch_operands = 0 : i64, tpu.core_type = #tpu.core_type<tc>, window_params = [{transform_indices = @transform_0, window_bounds = array<i64: 128, 128>}, {transform_indices = @transform_1, window_bounds = array<i64: 128, 128>}, {transform_indices = @transform_2, window_bounds = array<i64: 1, 128>}, {transform_indices = @transform_3, window_bounds = array<i64: 128, 128>}]} {
    %c0 = arith.constant 0 : index
    %c0_0 = arith.constant 0 : index
    %0 = vector.load %arg2[%c0, %c0_0] : memref<128x128xbf16, #tpu.memory_space<vmem>>, vector<128x128xbf16>
    %c0_1 = arith.constant 0 : index
    %c0_2 = arith.constant 0 : index
    %1 = vector.load %arg3[%c0_1, %c0_2] : memref<128x128xbf16, #tpu.memory_space<vmem>>, vector<128x128xbf16>
    %cst = arith.constant dense<0.000000e+00> : vector<128x128xf32>
    %2 = tpu.matmul %0, %1, %cst {dimension_numbers = #tpu.dot_dimension_numbers<[1], [0], [0], [1], [0, 0, 1, 1], [], []>} : vector<128x128xbf16>, vector<128x128xbf16>, vector<128x128xf32> -> vector<128x128xf32>
    %c0_3 = arith.constant 0 : index
    %c0_4 = arith.constant 0 : index
    %3 = vector.load %arg4[%c0_3, %c0_4] : memref<1x128xf32, #tpu.memory_space<vmem>>, vector<1x128xf32>
    %4 = vector.broadcast %3 : vector<1x128xf32> to vector<128x128xf32>
    %5 = arith.addf %2, %4 : vector<128x128xf32>
    %c0_5 = arith.constant 0 : index
    %c0_6 = arith.constant 0 : index
    %6 = vector.load %arg5[%c0_5, %c0_6] : memref<128x128xf32, #tpu.memory_space<vmem>>, vector<128x128xf32>
    tpu.vector_store %arg5[%c0_5, %c0_6], %5 {strides = array<i32>} : memref<128x128xf32, #tpu.memory_space<vmem>>, vector<128x128xf32>,
    return
  }
  func.func @transform_0(%arg0: i32, %arg1: i32) -> (i32, i32) {
    %c0_i32 = arith.constant 0 : i32
    %c0_i32_0 = arith.constant 0 : i32
    return %arg1, %c0_i32 : i32, i32
  }
  func.func @transform_1(%arg0: i32, %arg1: i32) -> (i32, i32) {
    %c0_i32 = arith.constant 0 : i32
    %c0_i32_0 = arith.constant 0 : i32
    return %c0_i32, %arg0 : i32, i32
  }
  func.func @transform_2(%arg0: i32, %arg1: i32) -> (i32, i32) {
    %c0_i32 = arith.constant 0 : i32
    %c0_i32_0 = arith.constant 0 : i32
    return %c0_i32, %arg0 : i32, i32
  }
  func.func @transform_3(%arg0: i32, %arg1: i32) -> (i32, i32) {
    %c0_i32 = arith.constant 0 : i32
    return %arg1, %arg0 : i32, i32
  }
}

module attributes {stable_mosaic.version = 11 : i64} {
  func.func @_lstm_block_kernel(%arg0: i32, %arg1: i32, %arg2: memref<8x16x128xbf16, #tpu.memory_space<vmem>>, %arg3: memref<128x512xbf16, #tpu.memory_space<vmem>>, %arg4: memref<128x512xbf16, #tpu.memory_space<vmem>>, %arg5: memref<1x512xf32, #tpu.memory_space<vmem>>, %arg6: memref<8x16x128xbf16, #tpu.memory_space<vmem>>, %arg7: memref<8x16x512xf32, #tpu.memory_space<vmem>>, %arg8: memref<16x128xf32, #tpu.memory_space<vmem>>, %arg9: memref<16x128xf32, #tpu.memory_space<vmem>>) attributes {dimension_semantics = [#tpu.dimension_semantics<parallel>, #tpu.dimension_semantics<arbitrary>], iteration_bounds = array<i64: 1, 1>, scalar_prefetch = 0 : i64, scratch_operands = 3 : i64, tpu.core_type = #tpu.core_type<tc>, window_params = [{transform_indices = @transform_0, window_bounds = array<i64: 8, 16, 128>}, {pipeline_mode = #tpu.pipeline_mode<synchronous>, transform_indices = @transform_1, window_bounds = array<i64: 128, 512>}, {pipeline_mode = #tpu.pipeline_mode<synchronous>, transform_indices = @transform_2, window_bounds = array<i64: 128, 512>}, {pipeline_mode = #tpu.pipeline_mode<synchronous>, transform_indices = @transform_3, window_bounds = array<i64: 1, 512>}, {transform_indices = @transform_4, window_bounds = array<i64: 8, 16, 128>}]} {
    %c0_i32 = arith.constant 0 : i32
    %0 = arith.cmpi eq, %arg1, %c0_i32 : i32
    %1 = arith.extui %0 : i1 to i32
    %c0_i32_0 = arith.constant 0 : i32
    %2 = arith.cmpi ne, %1, %c0_i32_0 : i32
    scf.if %2 {
      %cst_85 = arith.constant 0.000000e+00 : f32
      %305 = vector.broadcast %cst_85 : f32 to vector<16x128xf32>
      %c0_86 = arith.constant 0 : index
      %c0_87 = arith.constant 0 : index
      %306 = vector.load %arg8[%c0_86, %c0_87] : memref<16x128xf32, #tpu.memory_space<vmem>>, vector<16x128xf32>
      tpu.vector_store %arg8[%c0_86, %c0_87], %305 {strides = array<i32>} : memref<16x128xf32, #tpu.memory_space<vmem>>, vector<16x128xf32>,
      %cst_88 = arith.constant 0.000000e+00 : f32
      %307 = vector.broadcast %cst_88 : f32 to vector<16x128xf32>
      %c0_89 = arith.constant 0 : index
      %c0_90 = arith.constant 0 : index
      %308 = vector.load %arg9[%c0_89, %c0_90] : memref<16x128xf32, #tpu.memory_space<vmem>>, vector<16x128xf32>
      tpu.vector_store %arg9[%c0_89, %c0_90], %307 {strides = array<i32>} : memref<16x128xf32, #tpu.memory_space<vmem>>, vector<16x128xf32>,
    } else {
    }
    %c0 = arith.constant 0 : index
    %c0_1 = arith.constant 0 : index
    %3 = vector.load %arg4[%c0, %c0_1] : memref<128x512xbf16, #tpu.memory_space<vmem>>, vector<128x512xbf16>
    %c0_2 = arith.constant 0 : index
    %c0_3 = arith.constant 0 : index
    %c0_4 = arith.constant 0 : index
    %4 = vector.load %arg2[%c0_2, %c0_3, %c0_4] : memref<8x16x128xbf16, #tpu.memory_space<vmem>>, vector<8x16x128xbf16>
    %5 = vector.shape_cast %4 : vector<8x16x128xbf16> to vector<128x128xbf16>
    %c0_5 = arith.constant 0 : index
    %c0_6 = arith.constant 0 : index
    %6 = vector.load %arg3[%c0_5, %c0_6] : memref<128x512xbf16, #tpu.memory_space<vmem>>, vector<128x512xbf16>
    %cst = arith.constant dense<0.000000e+00> : vector<128x512xf32>
    %7 = tpu.matmul %5, %6, %cst {dimension_numbers = #tpu.dot_dimension_numbers<[1], [0], [0], [1], [0, 0, 1, 1], [], []>} : vector<128x128xbf16>, vector<128x512xbf16>, vector<128x512xf32> -> vector<128x512xf32>
    %c0_7 = arith.constant 0 : index
    %c0_8 = arith.constant 0 : index
    %8 = vector.load %arg5[%c0_7, %c0_8] : memref<1x512xf32, #tpu.memory_space<vmem>>, vector<1x512xf32>
    %9 = vector.broadcast %8 : vector<1x512xf32> to vector<128x512xf32>
    %10 = arith.addf %7, %9 : vector<128x512xf32>
    %11 = vector.shape_cast %10 : vector<128x512xf32> to vector<8x16x512xf32>
    %c0_9 = arith.constant 0 : index
    %c0_10 = arith.constant 0 : index
    %c0_11 = arith.constant 0 : index
    %12 = vector.load %arg7[%c0_9, %c0_10, %c0_11] : memref<8x16x512xf32, #tpu.memory_space<vmem>>, vector<8x16x512xf32>
    tpu.vector_store %arg7[%c0_9, %c0_10, %c0_11], %11 {strides = array<i32>} : memref<8x16x512xf32, #tpu.memory_space<vmem>>, vector<8x16x512xf32>,
    %c0_12 = arith.constant 0 : index
    %c0_13 = arith.constant 0 : index
    %13 = vector.load %arg8[%c0_12, %c0_13] : memref<16x128xf32, #tpu.memory_space<vmem>>, vector<16x128xf32>
    %c0_14 = arith.constant 0 : index
    %c0_15 = arith.constant 0 : index
    %14 = vector.load %arg9[%c0_14, %c0_15] : memref<16x128xf32, #tpu.memory_space<vmem>>, vector<16x128xf32>
    %c0_i32_16 = arith.constant 0 : i32
    %15 = arith.index_cast %c0_i32_16 : i32 to index
    %c0_17 = arith.constant 0 : index
    %c0_18 = arith.constant 0 : index
    %16 = vector.load %arg7[%15, %c0_17, %c0_18] : memref<8x16x512xf32, #tpu.memory_space<vmem>>, vector<1x16x512xf32>
    %17 = vector.shape_cast %16 : vector<1x16x512xf32> to vector<16x512xf32>
    %18 = arith.truncf %13 : vector<16x128xf32> to vector<16x128xbf16>
    %cst_19 = arith.constant dense<0.000000e+00> : vector<16x512xf32>
    %19 = tpu.matmul %18, %3, %cst_19 {dimension_numbers = #tpu.dot_dimension_numbers<[1], [0], [0], [1], [0, 0, 1, 1], [], []>} : vector<16x128xbf16>, vector<128x512xbf16>, vector<16x512xf32> -> vector<16x512xf32>
    %20 = arith.addf %17, %19 : vector<16x512xf32>
    %21 = vector.extract_strided_slice %20 {offsets = [0, 0], sizes = [16, 128], strides = [1, 1]} : vector<16x512xf32> to vector<16x128xf32>
    %22 = arith.negf %21 : vector<16x128xf32>
    %23 = math.exp %22 : vector<16x128xf32>
    %cst_20 = arith.constant 1.000000e+00 : f32
    %24 = vector.broadcast %cst_20 : f32 to vector<16x128xf32>
    %25 = arith.addf %24, %23 : vector<16x128xf32>
    %26 = arith.divf %24, %25 : vector<16x128xf32>
    %27 = vector.extract_strided_slice %20 {offsets = [0, 128], sizes = [16, 128], strides = [1, 1]} : vector<16x512xf32> to vector<16x128xf32>
    %28 = arith.negf %27 : vector<16x128xf32>
    %29 = math.exp %28 : vector<16x128xf32>
    %cst_21 = arith.constant 1.000000e+00 : f32
    %30 = vector.broadcast %cst_21 : f32 to vector<16x128xf32>
    %31 = arith.addf %30, %29 : vector<16x128xf32>
    %32 = arith.divf %30, %31 : vector<16x128xf32>
    %33 = vector.extract_strided_slice %20 {offsets = [0, 256], sizes = [16, 128], strides = [1, 1]} : vector<16x512xf32> to vector<16x128xf32>
    %34 = math.tanh %33 : vector<16x128xf32>
    %35 = vector.extract_strided_slice %20 {offsets = [0, 384], sizes = [16, 128], strides = [1, 1]} : vector<16x512xf32> to vector<16x128xf32>
    %36 = arith.negf %35 : vector<16x128xf32>
    %37 = math.exp %36 : vector<16x128xf32>
    %cst_22 = arith.constant 1.000000e+00 : f32
    %38 = vector.broadcast %cst_22 : f32 to vector<16x128xf32>
    %39 = arith.addf %38, %37 : vector<16x128xf32>
    %40 = arith.divf %38, %39 : vector<16x128xf32>
    %41 = arith.mulf %32, %14 : vector<16x128xf32>
    %42 = arith.mulf %26, %34 : vector<16x128xf32>
    %43 = arith.addf %41, %42 : vector<16x128xf32>
    %44 = math.tanh %43 : vector<16x128xf32>
    %45 = arith.mulf %40, %44 : vector<16x128xf32>
    %46 = arith.truncf %45 : vector<16x128xf32> to vector<16x128xbf16>
    %47 = arith.index_cast %c0_i32_16 : i32 to index
    %c0_23 = arith.constant 0 : index
    %c0_24 = arith.constant 0 : index
    %48 = vector.load %arg6[%47, %c0_23, %c0_24] : memref<8x16x128xbf16, #tpu.memory_space<vmem>>, vector<1x16x128xbf16>
    %49 = vector.shape_cast %48 : vector<1x16x128xbf16> to vector<16x128xbf16>
    %50 = vector.shape_cast %46 : vector<16x128xbf16> to vector<1x16x128xbf16>
    tpu.vector_store %arg6[%47, %c0_23, %c0_24], %50 {strides = array<i32>} : memref<8x16x128xbf16, #tpu.memory_space<vmem>>, vector<1x16x128xbf16>,
    %c1_i32 = arith.constant 1 : i32
    %51 = arith.index_cast %c1_i32 : i32 to index
    %c0_25 = arith.constant 0 : index
    %c0_26 = arith.constant 0 : index
    %52 = vector.load %arg7[%51, %c0_25, %c0_26] : memref<8x16x512xf32, #tpu.memory_space<vmem>>, vector<1x16x512xf32>
    %53 = vector.shape_cast %52 : vector<1x16x512xf32> to vector<16x512xf32>
    %54 = arith.truncf %45 : vector<16x128xf32> to vector<16x128xbf16>
    %cst_27 = arith.constant dense<0.000000e+00> : vector<16x512xf32>
    %55 = tpu.matmul %54, %3, %cst_27 {dimension_numbers = #tpu.dot_dimension_numbers<[1], [0], [0], [1], [0, 0, 1, 1], [], []>} : vector<16x128xbf16>, vector<128x512xbf16>, vector<16x512xf32> -> vector<16x512xf32>
    %56 = arith.addf %53, %55 : vector<16x512xf32>
    %57 = vector.extract_strided_slice %56 {offsets = [0, 0], sizes = [16, 128], strides = [1, 1]} : vector<16x512xf32> to vector<16x128xf32>
    %58 = arith.negf %57 : vector<16x128xf32>
    %59 = math.exp %58 : vector<16x128xf32>
    %cst_28 = arith.constant 1.000000e+00 : f32
    %60 = vector.broadcast %cst_28 : f32 to vector<16x128xf32>
    %61 = arith.addf %60, %59 : vector<16x128xf32>
    %62 = arith.divf %60, %61 : vector<16x128xf32>
    %63 = vector.extract_strided_slice %56 {offsets = [0, 128], sizes = [16, 128], strides = [1, 1]} : vector<16x512xf32> to vector<16x128xf32>
    %64 = arith.negf %63 : vector<16x128xf32>
    %65 = math.exp %64 : vector<16x128xf32>
    %cst_29 = arith.constant 1.000000e+00 : f32
    %66 = vector.broadcast %cst_29 : f32 to vector<16x128xf32>
    %67 = arith.addf %66, %65 : vector<16x128xf32>
    %68 = arith.divf %66, %67 : vector<16x128xf32>
    %69 = vector.extract_strided_slice %56 {offsets = [0, 256], sizes = [16, 128], strides = [1, 1]} : vector<16x512xf32> to vector<16x128xf32>
    %70 = math.tanh %69 : vector<16x128xf32>
    %71 = vector.extract_strided_slice %56 {offsets = [0, 384], sizes = [16, 128], strides = [1, 1]} : vector<16x512xf32> to vector<16x128xf32>
    %72 = arith.negf %71 : vector<16x128xf32>
    %73 = math.exp %72 : vector<16x128xf32>
    %cst_30 = arith.constant 1.000000e+00 : f32
    %74 = vector.broadcast %cst_30 : f32 to vector<16x128xf32>
    %75 = arith.addf %74, %73 : vector<16x128xf32>
    %76 = arith.divf %74, %75 : vector<16x128xf32>
    %77 = arith.mulf %68, %43 : vector<16x128xf32>
    %78 = arith.mulf %62, %70 : vector<16x128xf32>
    %79 = arith.addf %77, %78 : vector<16x128xf32>
    %80 = math.tanh %79 : vector<16x128xf32>
    %81 = arith.mulf %76, %80 : vector<16x128xf32>
    %82 = arith.truncf %81 : vector<16x128xf32> to vector<16x128xbf16>
    %83 = arith.index_cast %c1_i32 : i32 to index
    %c0_31 = arith.constant 0 : index
    %c0_32 = arith.constant 0 : index
    %84 = vector.load %arg6[%83, %c0_31, %c0_32] : memref<8x16x128xbf16, #tpu.memory_space<vmem>>, vector<1x16x128xbf16>
    %85 = vector.shape_cast %84 : vector<1x16x128xbf16> to vector<16x128xbf16>
    %86 = vector.shape_cast %82 : vector<16x128xbf16> to vector<1x16x128xbf16>
    tpu.vector_store %arg6[%83, %c0_31, %c0_32], %86 {strides = array<i32>} : memref<8x16x128xbf16, #tpu.memory_space<vmem>>, vector<1x16x128xbf16>,
    %c2_i32 = arith.constant 2 : i32
    %87 = arith.index_cast %c2_i32 : i32 to index
    %c0_33 = arith.constant 0 : index
    %c0_34 = arith.constant 0 : index
    %88 = vector.load %arg7[%87, %c0_33, %c0_34] : memref<8x16x512xf32, #tpu.memory_space<vmem>>, vector<1x16x512xf32>
    %89 = vector.shape_cast %88 : vector<1x16x512xf32> to vector<16x512xf32>
    %90 = arith.truncf %81 : vector<16x128xf32> to vector<16x128xbf16>
    %cst_35 = arith.constant dense<0.000000e+00> : vector<16x512xf32>
    %91 = tpu.matmul %90, %3, %cst_35 {dimension_numbers = #tpu.dot_dimension_numbers<[1], [0], [0], [1], [0, 0, 1, 1], [], []>} : vector<16x128xbf16>, vector<128x512xbf16>, vector<16x512xf32> -> vector<16x512xf32>
    %92 = arith.addf %89, %91 : vector<16x512xf32>
    %93 = vector.extract_strided_slice %92 {offsets = [0, 0], sizes = [16, 128], strides = [1, 1]} : vector<16x512xf32> to vector<16x128xf32>
    %94 = arith.negf %93 : vector<16x128xf32>
    %95 = math.exp %94 : vector<16x128xf32>
    %cst_36 = arith.constant 1.000000e+00 : f32
    %96 = vector.broadcast %cst_36 : f32 to vector<16x128xf32>
    %97 = arith.addf %96, %95 : vector<16x128xf32>
    %98 = arith.divf %96, %97 : vector<16x128xf32>
    %99 = vector.extract_strided_slice %92 {offsets = [0, 128], sizes = [16, 128], strides = [1, 1]} : vector<16x512xf32> to vector<16x128xf32>
    %100 = arith.negf %99 : vector<16x128xf32>
    %101 = math.exp %100 : vector<16x128xf32>
    %cst_37 = arith.constant 1.000000e+00 : f32
    %102 = vector.broadcast %cst_37 : f32 to vector<16x128xf32>
    %103 = arith.addf %102, %101 : vector<16x128xf32>
    %104 = arith.divf %102, %103 : vector<16x128xf32>
    %105 = vector.extract_strided_slice %92 {offsets = [0, 256], sizes = [16, 128], strides = [1, 1]} : vector<16x512xf32> to vector<16x128xf32>
    %106 = math.tanh %105 : vector<16x128xf32>
    %107 = vector.extract_strided_slice %92 {offsets = [0, 384], sizes = [16, 128], strides = [1, 1]} : vector<16x512xf32> to vector<16x128xf32>
    %108 = arith.negf %107 : vector<16x128xf32>
    %109 = math.exp %108 : vector<16x128xf32>
    %cst_38 = arith.constant 1.000000e+00 : f32
    %110 = vector.broadcast %cst_38 : f32 to vector<16x128xf32>
    %111 = arith.addf %110, %109 : vector<16x128xf32>
    %112 = arith.divf %110, %111 : vector<16x128xf32>
    %113 = arith.mulf %104, %79 : vector<16x128xf32>
    %114 = arith.mulf %98, %106 : vector<16x128xf32>
    %115 = arith.addf %113, %114 : vector<16x128xf32>
    %116 = math.tanh %115 : vector<16x128xf32>
    %117 = arith.mulf %112, %116 : vector<16x128xf32>
    %118 = arith.truncf %117 : vector<16x128xf32> to vector<16x128xbf16>
    %119 = arith.index_cast %c2_i32 : i32 to index
    %c0_39 = arith.constant 0 : index
    %c0_40 = arith.constant 0 : index
    %120 = vector.load %arg6[%119, %c0_39, %c0_40] : memref<8x16x128xbf16, #tpu.memory_space<vmem>>, vector<1x16x128xbf16>
    %121 = vector.shape_cast %120 : vector<1x16x128xbf16> to vector<16x128xbf16>
    %122 = vector.shape_cast %118 : vector<16x128xbf16> to vector<1x16x128xbf16>
    tpu.vector_store %arg6[%119, %c0_39, %c0_40], %122 {strides = array<i32>} : memref<8x16x128xbf16, #tpu.memory_space<vmem>>, vector<1x16x128xbf16>,
    %c3_i32 = arith.constant 3 : i32
    %123 = arith.index_cast %c3_i32 : i32 to index
    %c0_41 = arith.constant 0 : index
    %c0_42 = arith.constant 0 : index
    %124 = vector.load %arg7[%123, %c0_41, %c0_42] : memref<8x16x512xf32, #tpu.memory_space<vmem>>, vector<1x16x512xf32>
    %125 = vector.shape_cast %124 : vector<1x16x512xf32> to vector<16x512xf32>
    %126 = arith.truncf %117 : vector<16x128xf32> to vector<16x128xbf16>
    %cst_43 = arith.constant dense<0.000000e+00> : vector<16x512xf32>
    %127 = tpu.matmul %126, %3, %cst_43 {dimension_numbers = #tpu.dot_dimension_numbers<[1], [0], [0], [1], [0, 0, 1, 1], [], []>} : vector<16x128xbf16>, vector<128x512xbf16>, vector<16x512xf32> -> vector<16x512xf32>
    %128 = arith.addf %125, %127 : vector<16x512xf32>
    %129 = vector.extract_strided_slice %128 {offsets = [0, 0], sizes = [16, 128], strides = [1, 1]} : vector<16x512xf32> to vector<16x128xf32>
    %130 = arith.negf %129 : vector<16x128xf32>
    %131 = math.exp %130 : vector<16x128xf32>
    %cst_44 = arith.constant 1.000000e+00 : f32
    %132 = vector.broadcast %cst_44 : f32 to vector<16x128xf32>
    %133 = arith.addf %132, %131 : vector<16x128xf32>
    %134 = arith.divf %132, %133 : vector<16x128xf32>
    %135 = vector.extract_strided_slice %128 {offsets = [0, 128], sizes = [16, 128], strides = [1, 1]} : vector<16x512xf32> to vector<16x128xf32>
    %136 = arith.negf %135 : vector<16x128xf32>
    %137 = math.exp %136 : vector<16x128xf32>
    %cst_45 = arith.constant 1.000000e+00 : f32
    %138 = vector.broadcast %cst_45 : f32 to vector<16x128xf32>
    %139 = arith.addf %138, %137 : vector<16x128xf32>
    %140 = arith.divf %138, %139 : vector<16x128xf32>
    %141 = vector.extract_strided_slice %128 {offsets = [0, 256], sizes = [16, 128], strides = [1, 1]} : vector<16x512xf32> to vector<16x128xf32>
    %142 = math.tanh %141 : vector<16x128xf32>
    %143 = vector.extract_strided_slice %128 {offsets = [0, 384], sizes = [16, 128], strides = [1, 1]} : vector<16x512xf32> to vector<16x128xf32>
    %144 = arith.negf %143 : vector<16x128xf32>
    %145 = math.exp %144 : vector<16x128xf32>
    %cst_46 = arith.constant 1.000000e+00 : f32
    %146 = vector.broadcast %cst_46 : f32 to vector<16x128xf32>
    %147 = arith.addf %146, %145 : vector<16x128xf32>
    %148 = arith.divf %146, %147 : vector<16x128xf32>
    %149 = arith.mulf %140, %115 : vector<16x128xf32>
    %150 = arith.mulf %134, %142 : vector<16x128xf32>
    %151 = arith.addf %149, %150 : vector<16x128xf32>
    %152 = math.tanh %151 : vector<16x128xf32>
    %153 = arith.mulf %148, %152 : vector<16x128xf32>
    %154 = arith.truncf %153 : vector<16x128xf32> to vector<16x128xbf16>
    %155 = arith.index_cast %c3_i32 : i32 to index
    %c0_47 = arith.constant 0 : index
    %c0_48 = arith.constant 0 : index
    %156 = vector.load %arg6[%155, %c0_47, %c0_48] : memref<8x16x128xbf16, #tpu.memory_space<vmem>>, vector<1x16x128xbf16>
    %157 = vector.shape_cast %156 : vector<1x16x128xbf16> to vector<16x128xbf16>
    %158 = vector.shape_cast %154 : vector<16x128xbf16> to vector<1x16x128xbf16>
    tpu.vector_store %arg6[%155, %c0_47, %c0_48], %158 {strides = array<i32>} : memref<8x16x128xbf16, #tpu.memory_space<vmem>>, vector<1x16x128xbf16>,
    %c4_i32 = arith.constant 4 : i32
    %159 = arith.index_cast %c4_i32 : i32 to index
    %c0_49 = arith.constant 0 : index
    %c0_50 = arith.constant 0 : index
    %160 = vector.load %arg7[%159, %c0_49, %c0_50] : memref<8x16x512xf32, #tpu.memory_space<vmem>>, vector<1x16x512xf32>
    %161 = vector.shape_cast %160 : vector<1x16x512xf32> to vector<16x512xf32>
    %162 = arith.truncf %153 : vector<16x128xf32> to vector<16x128xbf16>
    %cst_51 = arith.constant dense<0.000000e+00> : vector<16x512xf32>
    %163 = tpu.matmul %162, %3, %cst_51 {dimension_numbers = #tpu.dot_dimension_numbers<[1], [0], [0], [1], [0, 0, 1, 1], [], []>} : vector<16x128xbf16>, vector<128x512xbf16>, vector<16x512xf32> -> vector<16x512xf32>
    %164 = arith.addf %161, %163 : vector<16x512xf32>
    %165 = vector.extract_strided_slice %164 {offsets = [0, 0], sizes = [16, 128], strides = [1, 1]} : vector<16x512xf32> to vector<16x128xf32>
    %166 = arith.negf %165 : vector<16x128xf32>
    %167 = math.exp %166 : vector<16x128xf32>
    %cst_52 = arith.constant 1.000000e+00 : f32
    %168 = vector.broadcast %cst_52 : f32 to vector<16x128xf32>
    %169 = arith.addf %168, %167 : vector<16x128xf32>
    %170 = arith.divf %168, %169 : vector<16x128xf32>
    %171 = vector.extract_strided_slice %164 {offsets = [0, 128], sizes = [16, 128], strides = [1, 1]} : vector<16x512xf32> to vector<16x128xf32>
    %172 = arith.negf %171 : vector<16x128xf32>
    %173 = math.exp %172 : vector<16x128xf32>
    %cst_53 = arith.constant 1.000000e+00 : f32
    %174 = vector.broadcast %cst_53 : f32 to vector<16x128xf32>
    %175 = arith.addf %174, %173 : vector<16x128xf32>
    %176 = arith.divf %174, %175 : vector<16x128xf32>
    %177 = vector.extract_strided_slice %164 {offsets = [0, 256], sizes = [16, 128], strides = [1, 1]} : vector<16x512xf32> to vector<16x128xf32>
    %178 = math.tanh %177 : vector<16x128xf32>
    %179 = vector.extract_strided_slice %164 {offsets = [0, 384], sizes = [16, 128], strides = [1, 1]} : vector<16x512xf32> to vector<16x128xf32>
    %180 = arith.negf %179 : vector<16x128xf32>
    %181 = math.exp %180 : vector<16x128xf32>
    %cst_54 = arith.constant 1.000000e+00 : f32
    %182 = vector.broadcast %cst_54 : f32 to vector<16x128xf32>
    %183 = arith.addf %182, %181 : vector<16x128xf32>
    %184 = arith.divf %182, %183 : vector<16x128xf32>
    %185 = arith.mulf %176, %151 : vector<16x128xf32>
    %186 = arith.mulf %170, %178 : vector<16x128xf32>
    %187 = arith.addf %185, %186 : vector<16x128xf32>
    %188 = math.tanh %187 : vector<16x128xf32>
    %189 = arith.mulf %184, %188 : vector<16x128xf32>
    %190 = arith.truncf %189 : vector<16x128xf32> to vector<16x128xbf16>
    %191 = arith.index_cast %c4_i32 : i32 to index
    %c0_55 = arith.constant 0 : index
    %c0_56 = arith.constant 0 : index
    %192 = vector.load %arg6[%191, %c0_55, %c0_56] : memref<8x16x128xbf16, #tpu.memory_space<vmem>>, vector<1x16x128xbf16>
    %193 = vector.shape_cast %192 : vector<1x16x128xbf16> to vector<16x128xbf16>
    %194 = vector.shape_cast %190 : vector<16x128xbf16> to vector<1x16x128xbf16>
    tpu.vector_store %arg6[%191, %c0_55, %c0_56], %194 {strides = array<i32>} : memref<8x16x128xbf16, #tpu.memory_space<vmem>>, vector<1x16x128xbf16>,
    %c5_i32 = arith.constant 5 : i32
    %195 = arith.index_cast %c5_i32 : i32 to index
    %c0_57 = arith.constant 0 : index
    %c0_58 = arith.constant 0 : index
    %196 = vector.load %arg7[%195, %c0_57, %c0_58] : memref<8x16x512xf32, #tpu.memory_space<vmem>>, vector<1x16x512xf32>
    %197 = vector.shape_cast %196 : vector<1x16x512xf32> to vector<16x512xf32>
    %198 = arith.truncf %189 : vector<16x128xf32> to vector<16x128xbf16>
    %cst_59 = arith.constant dense<0.000000e+00> : vector<16x512xf32>
    %199 = tpu.matmul %198, %3, %cst_59 {dimension_numbers = #tpu.dot_dimension_numbers<[1], [0], [0], [1], [0, 0, 1, 1], [], []>} : vector<16x128xbf16>, vector<128x512xbf16>, vector<16x512xf32> -> vector<16x512xf32>
    %200 = arith.addf %197, %199 : vector<16x512xf32>
    %201 = vector.extract_strided_slice %200 {offsets = [0, 0], sizes = [16, 128], strides = [1, 1]} : vector<16x512xf32> to vector<16x128xf32>
    %202 = arith.negf %201 : vector<16x128xf32>
    %203 = math.exp %202 : vector<16x128xf32>
    %cst_60 = arith.constant 1.000000e+00 : f32
    %204 = vector.broadcast %cst_60 : f32 to vector<16x128xf32>
    %205 = arith.addf %204, %203 : vector<16x128xf32>
    %206 = arith.divf %204, %205 : vector<16x128xf32>
    %207 = vector.extract_strided_slice %200 {offsets = [0, 128], sizes = [16, 128], strides = [1, 1]} : vector<16x512xf32> to vector<16x128xf32>
    %208 = arith.negf %207 : vector<16x128xf32>
    %209 = math.exp %208 : vector<16x128xf32>
    %cst_61 = arith.constant 1.000000e+00 : f32
    %210 = vector.broadcast %cst_61 : f32 to vector<16x128xf32>
    %211 = arith.addf %210, %209 : vector<16x128xf32>
    %212 = arith.divf %210, %211 : vector<16x128xf32>
    %213 = vector.extract_strided_slice %200 {offsets = [0, 256], sizes = [16, 128], strides = [1, 1]} : vector<16x512xf32> to vector<16x128xf32>
    %214 = math.tanh %213 : vector<16x128xf32>
    %215 = vector.extract_strided_slice %200 {offsets = [0, 384], sizes = [16, 128], strides = [1, 1]} : vector<16x512xf32> to vector<16x128xf32>
    %216 = arith.negf %215 : vector<16x128xf32>
    %217 = math.exp %216 : vector<16x128xf32>
    %cst_62 = arith.constant 1.000000e+00 : f32
    %218 = vector.broadcast %cst_62 : f32 to vector<16x128xf32>
    %219 = arith.addf %218, %217 : vector<16x128xf32>
    %220 = arith.divf %218, %219 : vector<16x128xf32>
    %221 = arith.mulf %212, %187 : vector<16x128xf32>
    %222 = arith.mulf %206, %214 : vector<16x128xf32>
    %223 = arith.addf %221, %222 : vector<16x128xf32>
    %224 = math.tanh %223 : vector<16x128xf32>
    %225 = arith.mulf %220, %224 : vector<16x128xf32>
    %226 = arith.truncf %225 : vector<16x128xf32> to vector<16x128xbf16>
    %227 = arith.index_cast %c5_i32 : i32 to index
    %c0_63 = arith.constant 0 : index
    %c0_64 = arith.constant 0 : index
    %228 = vector.load %arg6[%227, %c0_63, %c0_64] : memref<8x16x128xbf16, #tpu.memory_space<vmem>>, vector<1x16x128xbf16>
    %229 = vector.shape_cast %228 : vector<1x16x128xbf16> to vector<16x128xbf16>
    %230 = vector.shape_cast %226 : vector<16x128xbf16> to vector<1x16x128xbf16>
    tpu.vector_store %arg6[%227, %c0_63, %c0_64], %230 {strides = array<i32>} : memref<8x16x128xbf16, #tpu.memory_space<vmem>>, vector<1x16x128xbf16>,
    %c6_i32 = arith.constant 6 : i32
    %231 = arith.index_cast %c6_i32 : i32 to index
    %c0_65 = arith.constant 0 : index
    %c0_66 = arith.constant 0 : index
    %232 = vector.load %arg7[%231, %c0_65, %c0_66] : memref<8x16x512xf32, #tpu.memory_space<vmem>>, vector<1x16x512xf32>
    %233 = vector.shape_cast %232 : vector<1x16x512xf32> to vector<16x512xf32>
    %234 = arith.truncf %225 : vector<16x128xf32> to vector<16x128xbf16>
    %cst_67 = arith.constant dense<0.000000e+00> : vector<16x512xf32>
    %235 = tpu.matmul %234, %3, %cst_67 {dimension_numbers = #tpu.dot_dimension_numbers<[1], [0], [0], [1], [0, 0, 1, 1], [], []>} : vector<16x128xbf16>, vector<128x512xbf16>, vector<16x512xf32> -> vector<16x512xf32>
    %236 = arith.addf %233, %235 : vector<16x512xf32>
    %237 = vector.extract_strided_slice %236 {offsets = [0, 0], sizes = [16, 128], strides = [1, 1]} : vector<16x512xf32> to vector<16x128xf32>
    %238 = arith.negf %237 : vector<16x128xf32>
    %239 = math.exp %238 : vector<16x128xf32>
    %cst_68 = arith.constant 1.000000e+00 : f32
    %240 = vector.broadcast %cst_68 : f32 to vector<16x128xf32>
    %241 = arith.addf %240, %239 : vector<16x128xf32>
    %242 = arith.divf %240, %241 : vector<16x128xf32>
    %243 = vector.extract_strided_slice %236 {offsets = [0, 128], sizes = [16, 128], strides = [1, 1]} : vector<16x512xf32> to vector<16x128xf32>
    %244 = arith.negf %243 : vector<16x128xf32>
    %245 = math.exp %244 : vector<16x128xf32>
    %cst_69 = arith.constant 1.000000e+00 : f32
    %246 = vector.broadcast %cst_69 : f32 to vector<16x128xf32>
    %247 = arith.addf %246, %245 : vector<16x128xf32>
    %248 = arith.divf %246, %247 : vector<16x128xf32>
    %249 = vector.extract_strided_slice %236 {offsets = [0, 256], sizes = [16, 128], strides = [1, 1]} : vector<16x512xf32> to vector<16x128xf32>
    %250 = math.tanh %249 : vector<16x128xf32>
    %251 = vector.extract_strided_slice %236 {offsets = [0, 384], sizes = [16, 128], strides = [1, 1]} : vector<16x512xf32> to vector<16x128xf32>
    %252 = arith.negf %251 : vector<16x128xf32>
    %253 = math.exp %252 : vector<16x128xf32>
    %cst_70 = arith.constant 1.000000e+00 : f32
    %254 = vector.broadcast %cst_70 : f32 to vector<16x128xf32>
    %255 = arith.addf %254, %253 : vector<16x128xf32>
    %256 = arith.divf %254, %255 : vector<16x128xf32>
    %257 = arith.mulf %248, %223 : vector<16x128xf32>
    %258 = arith.mulf %242, %250 : vector<16x128xf32>
    %259 = arith.addf %257, %258 : vector<16x128xf32>
    %260 = math.tanh %259 : vector<16x128xf32>
    %261 = arith.mulf %256, %260 : vector<16x128xf32>
    %262 = arith.truncf %261 : vector<16x128xf32> to vector<16x128xbf16>
    %263 = arith.index_cast %c6_i32 : i32 to index
    %c0_71 = arith.constant 0 : index
    %c0_72 = arith.constant 0 : index
    %264 = vector.load %arg6[%263, %c0_71, %c0_72] : memref<8x16x128xbf16, #tpu.memory_space<vmem>>, vector<1x16x128xbf16>
    %265 = vector.shape_cast %264 : vector<1x16x128xbf16> to vector<16x128xbf16>
    %266 = vector.shape_cast %262 : vector<16x128xbf16> to vector<1x16x128xbf16>
    tpu.vector_store %arg6[%263, %c0_71, %c0_72], %266 {strides = array<i32>} : memref<8x16x128xbf16, #tpu.memory_space<vmem>>, vector<1x16x128xbf16>,
    %c7_i32 = arith.constant 7 : i32
    %267 = arith.index_cast %c7_i32 : i32 to index
    %c0_73 = arith.constant 0 : index
    %c0_74 = arith.constant 0 : index
    %268 = vector.load %arg7[%267, %c0_73, %c0_74] : memref<8x16x512xf32, #tpu.memory_space<vmem>>, vector<1x16x512xf32>
    %269 = vector.shape_cast %268 : vector<1x16x512xf32> to vector<16x512xf32>
    %270 = arith.truncf %261 : vector<16x128xf32> to vector<16x128xbf16>
    %cst_75 = arith.constant dense<0.000000e+00> : vector<16x512xf32>
    %271 = tpu.matmul %270, %3, %cst_75 {dimension_numbers = #tpu.dot_dimension_numbers<[1], [0], [0], [1], [0, 0, 1, 1], [], []>} : vector<16x128xbf16>, vector<128x512xbf16>, vector<16x512xf32> -> vector<16x512xf32>
    %272 = arith.addf %269, %271 : vector<16x512xf32>
    %273 = vector.extract_strided_slice %272 {offsets = [0, 0], sizes = [16, 128], strides = [1, 1]} : vector<16x512xf32> to vector<16x128xf32>
    %274 = arith.negf %273 : vector<16x128xf32>
    %275 = math.exp %274 : vector<16x128xf32>
    %cst_76 = arith.constant 1.000000e+00 : f32
    %276 = vector.broadcast %cst_76 : f32 to vector<16x128xf32>
    %277 = arith.addf %276, %275 : vector<16x128xf32>
    %278 = arith.divf %276, %277 : vector<16x128xf32>
    %279 = vector.extract_strided_slice %272 {offsets = [0, 128], sizes = [16, 128], strides = [1, 1]} : vector<16x512xf32> to vector<16x128xf32>
    %280 = arith.negf %279 : vector<16x128xf32>
    %281 = math.exp %280 : vector<16x128xf32>
    %cst_77 = arith.constant 1.000000e+00 : f32
    %282 = vector.broadcast %cst_77 : f32 to vector<16x128xf32>
    %283 = arith.addf %282, %281 : vector<16x128xf32>
    %284 = arith.divf %282, %283 : vector<16x128xf32>
    %285 = vector.extract_strided_slice %272 {offsets = [0, 256], sizes = [16, 128], strides = [1, 1]} : vector<16x512xf32> to vector<16x128xf32>
    %286 = math.tanh %285 : vector<16x128xf32>
    %287 = vector.extract_strided_slice %272 {offsets = [0, 384], sizes = [16, 128], strides = [1, 1]} : vector<16x512xf32> to vector<16x128xf32>
    %288 = arith.negf %287 : vector<16x128xf32>
    %289 = math.exp %288 : vector<16x128xf32>
    %cst_78 = arith.constant 1.000000e+00 : f32
    %290 = vector.broadcast %cst_78 : f32 to vector<16x128xf32>
    %291 = arith.addf %290, %289 : vector<16x128xf32>
    %292 = arith.divf %290, %291 : vector<16x128xf32>
    %293 = arith.mulf %284, %259 : vector<16x128xf32>
    %294 = arith.mulf %278, %286 : vector<16x128xf32>
    %295 = arith.addf %293, %294 : vector<16x128xf32>
    %296 = math.tanh %295 : vector<16x128xf32>
    %297 = arith.mulf %292, %296 : vector<16x128xf32>
    %298 = arith.truncf %297 : vector<16x128xf32> to vector<16x128xbf16>
    %299 = arith.index_cast %c7_i32 : i32 to index
    %c0_79 = arith.constant 0 : index
    %c0_80 = arith.constant 0 : index
    %300 = vector.load %arg6[%299, %c0_79, %c0_80] : memref<8x16x128xbf16, #tpu.memory_space<vmem>>, vector<1x16x128xbf16>
    %301 = vector.shape_cast %300 : vector<1x16x128xbf16> to vector<16x128xbf16>
    %302 = vector.shape_cast %298 : vector<16x128xbf16> to vector<1x16x128xbf16>
    tpu.vector_store %arg6[%299, %c0_79, %c0_80], %302 {strides = array<i32>} : memref<8x16x128xbf16, #tpu.memory_space<vmem>>, vector<1x16x128xbf16>,
    %c8_i32 = arith.constant 8 : i32
    %c0_81 = arith.constant 0 : index
    %c0_82 = arith.constant 0 : index
    %303 = vector.load %arg8[%c0_81, %c0_82] : memref<16x128xf32, #tpu.memory_space<vmem>>, vector<16x128xf32>
    tpu.vector_store %arg8[%c0_81, %c0_82], %297 {strides = array<i32>} : memref<16x128xf32, #tpu.memory_space<vmem>>, vector<16x128xf32>,
    %c0_83 = arith.constant 0 : index
    %c0_84 = arith.constant 0 : index
    %304 = vector.load %arg9[%c0_83, %c0_84] : memref<16x128xf32, #tpu.memory_space<vmem>>, vector<16x128xf32>
    tpu.vector_store %arg9[%c0_83, %c0_84], %295 {strides = array<i32>} : memref<16x128xf32, #tpu.memory_space<vmem>>, vector<16x128xf32>,
    return
  }
  func.func @transform_0(%arg0: i32, %arg1: i32) -> (i32, i32, i32) {
    %c0_i32 = arith.constant 0 : i32
    %c0_i32_0 = arith.constant 0 : i32
    return %arg1, %arg0, %c0_i32 : i32, i32, i32
  }
  func.func @transform_1(%arg0: i32, %arg1: i32) -> (i32, i32) {
    %c0_i32 = arith.constant 0 : i32
    %c0_i32_0 = arith.constant 0 : i32
    %c0_i32_1 = arith.constant 0 : i32
    return %c0_i32, %c0_i32_0 : i32, i32
  }
  func.func @transform_2(%arg0: i32, %arg1: i32) -> (i32, i32) {
    %c0_i32 = arith.constant 0 : i32
    %c0_i32_0 = arith.constant 0 : i32
    %c0_i32_1 = arith.constant 0 : i32
    return %c0_i32, %c0_i32_0 : i32, i32
  }
  func.func @transform_3(%arg0: i32, %arg1: i32) -> (i32, i32) {
    %c0_i32 = arith.constant 0 : i32
    %c0_i32_0 = arith.constant 0 : i32
    %c0_i32_1 = arith.constant 0 : i32
    return %c0_i32, %c0_i32_0 : i32, i32
  }
  func.func @transform_4(%arg0: i32, %arg1: i32) -> (i32, i32, i32) {
    %c0_i32 = arith.constant 0 : i32
    %c0_i32_0 = arith.constant 0 : i32
    return %arg1, %arg0, %c0_i32 : i32, i32, i32
  }
}

</mosaic_0001>

<bundles_post_ra>
// kernel: decoder_rnn_forward.3
= control target key start
LH: loop header
LB: loop body
LE: loop exit
PB: predicated region body
PF: predicated region fallthrough
CT: control target
= control target key end

     0   :  { %s439_s1 = inlined_call_operand.vmem [shape: bf16[128,128], index: 1, kind: input, shape index: {}]   ;;  %s440_s2 = inlined_call_operand.vmem [shape: f32[1,128], index: 2, kind: input, shape index: {}]   ;;  %s441_s0 = inlined_call_operand.vmem [shape: bf16[128,128], index: 0, kind: input, shape index: {}]   ;;  %s442_s3 = inlined_call_operand.vmem [shape: f32[128,128], index: 3, kind: output, shape index: {}]  }
   0x1   :  { %v294_v0 = vld [vmem:[%s439_s1 + $0x38] sm:$0xff]  ;;  %v293_v1 = vld [vmem:[%s439_s1 + $0x30] sm:$0xff]  ;;  %v292_v2 = vld [vmem:[%s439_s1 + $0x28] sm:$0xff] }
   0x2   :  { %146 = vmatpush.bf16.msra.mxu0 %v294_v0  ;;  %295 = vmatpush.bf16.msra.mxu1 %v294_v0  ;;  %v291_v3 = vld [vmem:[%s439_s1 + $0x20] sm:$0xff]  ;;  %v290_v4 = vld [vmem:[%s439_s1 + $0x18] sm:$0xff]  ;;  %v289_v5 = vld [vmem:[%s439_s1 + $0x10] sm:$0xff] }
   0x3   :  { %296 = vmatpush.bf16.msra.mxu2 %v294_v0  ;;  %297 = vmatpush.bf16.msra.mxu3 %v294_v0  ;;  %v288_v6 = vld [vmem:[%s439_s1 + $0x8] sm:$0xff]  ;;  %v287_v7 = vld [vmem:[%s439_s1] sm:$0xff]  ;;  %v281_v9 = vld [vmem:[%s441_s0 + $0x10] sm:$0xff] }
   0x4   :  { %v279_v8 = vld [vmem:[%s441_s0] sm:$0xff]  ;;  %v285_v11 = vld [vmem:[%s441_s0 + $0x30] sm:$0xff]  ;;  %v280_v12 = vld [vmem:[%s441_s0 + $0x8] sm:$0xff] }
   0x5   :  { %v283_v10 = vld [vmem:[%s441_s0 + $0x20] sm:$0xff]  ;;  %v282_v13 = vld [vmem:[%s441_s0 + $0x18] sm:$0xff]  ;;  %v284_v14 = vld [vmem:[%s441_s0 + $0x28] sm:$0xff] }
   0x6   :  { %147 = vmatpush.bf16.msra.mxu0 %v293_v1  ;;  %298 = vmatpush.bf16.msra.mxu1 %v293_v1  ;;  %v286_v15 = vld [vmem:[%s441_s0 + $0x38] sm:$0xff]  ;;  %v319_v16 = vld [vmem:[%s440_s2] ss:$0 sm:$0xff] }
   0x7   :  { %299 = vmatpush.bf16.msra.mxu2 %v293_v1  ;;  %300 = vmatpush.bf16.msra.mxu3 %v293_v1 }
   0xa   :  { %148 = vmatpush.bf16.msra.mxu0 %v292_v2  ;;  %301 = vmatpush.bf16.msra.mxu1 %v292_v2 }
   0xb   :  { %302 = vmatpush.bf16.msra.mxu2 %v292_v2  ;;  %303 = vmatpush.bf16.msra.mxu3 %v292_v2 }
   0xe   :  { %149 = vmatpush.bf16.msra.mxu0 %v291_v3  ;;  %304 = vmatpush.bf16.msra.mxu1 %v291_v3 }
   0xf   :  { %305 = vmatpush.bf16.msra.mxu2 %v291_v3  ;;  %306 = vmatpush.bf16.msra.mxu3 %v291_v3 }
  0x12   :  { %150 = vmatpush.bf16.msra.mxu0 %v290_v4  ;;  %307 = vmatpush.bf16.msra.mxu1 %v290_v4 }
  0x13   :  { %308 = vmatpush.bf16.msra.mxu2 %v290_v4  ;;  %309 = vmatpush.bf16.msra.mxu3 %v290_v4 }
  0x16   :  { %151 = vmatpush.bf16.msra.mxu0 %v289_v5  ;;  %310 = vmatpush.bf16.msra.mxu1 %v289_v5 }
  0x17   :  { %311 = vmatpush.bf16.msra.mxu2 %v289_v5  ;;  %312 = vmatpush.bf16.msra.mxu3 %v289_v5 }
  0x1a   :  { %152 = vmatpush.bf16.msra.mxu0 %v288_v6  ;;  %313 = vmatpush.bf16.msra.mxu1 %v288_v6 }
  0x1b   :  { %314 = vmatpush.bf16.msra.mxu2 %v288_v6  ;;  %315 = vmatpush.bf16.msra.mxu3 %v288_v6 }
  0x1e   :  { %153 = vmatpush.bf16.msra.mxu0 %v287_v7  ;;  %316 = vmatpush.bf16.msra.mxu1 %v287_v7 }
  0x1f   :  { %317 = vmatpush.bf16.msra.mxu2 %v287_v7  ;;  %318 = vmatpush.bf16.msra.mxu3 %v287_v7 }
  0x21   :  { %154 = vmatmul.bf16.vlgmr.msra.gmra.mxu0 %v279_v8  ;;  %164 = vmatmul.bf16.vlgmr.msra.gmra.mxu1 %v281_v9 }
  0x22   :  { %174 = vmatmul.bf16.vlgmr.msra.gmra.mxu2 %v283_v10  ;;  %184 = vmatmul.bf16.vlgmr.msra.gmra.mxu3 %v285_v11 }
  0x31   :  { %159 = vmatmul.bf16.gmra.mxu0 %v280_v12  ;;  %169 = vmatmul.bf16.gmra.mxu1 %v282_v13 }
  0x32   :  { %179 = vmatmul.bf16.gmra.mxu2 %v284_v14  ;;  %189 = vmatmul.bf16.gmra.mxu3 %v286_v15 }
  0x9e   :  { %v155_v17 = vpop.f32.mrf.mxu0  ;;  %v165_v18 = vpop.f32.mrf.mxu1 }
  0x9f   :  { %v156_v19 = vadd.f32 %v319_v16, %v155_v17  ;;  %v166_v20 = vadd.f32 %v319_v16, %v165_v18 }
  0xa1   :  { %195 = vst [vmem:[%s442_s3] sm:$0xff] %v156_v19 }
  0xa2   :  { %199 = vst [vmem:[%s442_s3 + $0x20] sm:$0xff] %v166_v20 }
  0xa5   :  { %v175_v21 = vpop.f32.mrf.mxu2  ;;  %v185_v22 = vpop.f32.mrf.mxu3 }
  0xa6   :  { %v176_v23 = vadd.f32 %v319_v16, %v175_v21  ;;  %v186_v24 = vadd.f32 %v319_v16, %v185_v22  ;;  %v157_v25 = vpop.f32.mrf.mxu0  ;;  %v167_v26 = vpop.f32.mrf.mxu1 }
  0xa7   :  { %v158_v27 = vadd.f32 %v319_v16, %v157_v25  ;;  %v168_v28 = vadd.f32 %v319_v16, %v167_v26 }
  0xa8   :  { %203 = vst [vmem:[%s442_s3 + $0x40] sm:$0xff] %v176_v23 }
  0xa9   :  { %207 = vst [vmem:[%s442_s3 + $0x60] sm:$0xff] %v186_v24 }
  0xaa   :  { %196 = vst [vmem:[%s442_s3 + $0x8] sm:$0xff] %v158_v27 }
  0xab   :  { %200 = vst [vmem:[%s442_s3 + $0x28] sm:$0xff] %v168_v28 }
  0xad   :  { %v177_v29 = vpop.f32.mrf.mxu2  ;;  %v187_v30 = vpop.f32.mrf.mxu3 }
  0xae   :  { %v178_v31 = vadd.f32 %v319_v16, %v177_v29  ;;  %v188_v32 = vadd.f32 %v319_v16, %v187_v30  ;;  %v160_v33 = vpop.f32.mrf.mxu0  ;;  %v170_v34 = vpop.f32.mrf.mxu1 }
  0xaf   :  { %v161_v35 = vadd.f32 %v319_v16, %v160_v33  ;;  %v171_v36 = vadd.f32 %v319_v16, %v170_v34 }
  0xb0   :  { %204 = vst [vmem:[%s442_s3 + $0x48] sm:$0xff] %v178_v31 }
  0xb1   :  { %208 = vst [vmem:[%s442_s3 + $0x68] sm:$0xff] %v188_v32 }
  0xb2   :  { %197 = vst [vmem:[%s442_s3 + $0x10] sm:$0xff] %v161_v35 }
  0xb3   :  { %201 = vst [vmem:[%s442_s3 + $0x30] sm:$0xff] %v171_v36 }
  0xb5   :  { %v180_v37 = vpop.f32.mrf.mxu2  ;;  %v190_v38 = vpop.f32.mrf.mxu3 }
  0xb6   :  { %v181_v39 = vadd.f32 %v319_v16, %v180_v37  ;;  %v191_v40 = vadd.f32 %v319_v16, %v190_v38  ;;  %v162_v41 = vpop.f32.mrf.mxu0  ;;  %v172_v42 = vpop.f32.mrf.mxu1 }
  0xb7   :  { %v163_v43 = vadd.f32 %v319_v16, %v162_v41  ;;  %v173_v44 = vadd.f32 %v319_v16, %v172_v42 }
  0xb8   :  { %205 = vst [vmem:[%s442_s3 + $0x50] sm:$0xff] %v181_v39 }
  0xb9   :  { %209 = vst [vmem:[%s442_s3 + $0x70] sm:$0xff] %v191_v40 }
  0xba   :  { %198 = vst [vmem:[%s442_s3 + $0x18] sm:$0xff] %v163_v43 }
  0xbb   :  { %202 = vst [vmem:[%s442_s3 + $0x38] sm:$0xff] %v173_v44 }
  0xbd   :  { %v182_v45 = vpop.f32.mrf.mxu2  ;;  %v192_v46 = vpop.f32.mrf.mxu3 }
  0xbe   :  { %v183_v47 = vadd.f32 %v319_v16, %v182_v45  ;;  %v193_v48 = vadd.f32 %v319_v16, %v192_v46 }
  0xc0   :  { %206 = vst [vmem:[%s442_s3 + $0x58] sm:$0xff] %v183_v47 }
  0xc1   :  { %210 = vst [vmem:[%s442_s3 + $0x78] sm:$0xff] %v193_v48 }

// kernel: decoder_rnn_forward.2
= control target key start
LH: loop header
LB: loop body
LE: loop exit
PB: predicated region body
PF: predicated region fallthrough
CT: control target
= control target key end

     0   :  { %9 = vsyncpa [#allocation6], 0  ;;  %s4213_s0 = inlined_call_operand.vmem [shape: bf16[8,16,128], index: 0, kind: input, shape index: {}]   ;;  %s4214_s1 = inlined_call_operand.hbm [shape: bf16[128,512], index: 1, kind: input, shape index: {}]   ;;  %s4215_s2 = inlined_call_operand.hbm [shape: bf16[128,512], index: 2, kind: input, shape index: {}]   ;;  %s4216_s3 = inlined_call_operand.vmem [shape: f32[1,512], index: 3, kind: input, shape index: {}]   ;;  %s4217_s4 = inlined_call_operand.vmem [shape: bf16[8,16,128], index: 4, kind: output, shape index: {}]  }
   0x1   :  { %s17_s17 = sshll.u32 %s4214_s1, 4  ;;  %s18_s17 = int_to_ptr.hbm [resolvable:$true] %s17_s17 }
   0x2   :  { %10 = vsyncpa [#allocation8], 0  ;;  %s3244_s18 = smov [#allocation5]   ;;  %s30_s22 = sshll.u32 %s4215_s2, 4  ;;  %s31_s22 = int_to_ptr.hbm [resolvable:$true] %s30_s22 }
   0x3   :  { %s19_s19 = sshll.u32 %s3244_s18, 4  ;;  %s3245_s23 = smov 256   ;;  %s20_s19 = int_to_ptr.vmem [resolvable:$true] %s19_s19 }
   0x4   :  { %s3246_s24 = smov 16   ;;  %s3247_s25 = smov [#allocation7]  }
   0x5   :  { %25 = dma.hbm_to_vmem [thread:$0]  %s18_s17, 4096, %s20_s19, [#allocation6], %s3245_s23, %s3245_s23, %s3246_s24  }
   0x6   :  { %s32_s26 = sshll.u32 %s3247_s25, 4  ;;  %s33_s26 = int_to_ptr.vmem [resolvable:$true] %s32_s26 }
   0x7   :  { %38 = dma.hbm_to_vmem [thread:$0]  %s31_s22, 4096, %s33_s26, [#allocation8], %s3245_s23, %s3245_s23, %s3246_s24  }
   0x8   :  { %3240 = dma.done.wait [#allocation6], 4096  }
   0x9   :  { %3241 = vsyncadd [#allocation6], 4294963200 }
   0xa   :  { %3242 = dma.done.wait [#allocation8], 4096  }
   0xb   :  { %3243 = vsyncadd [#allocation8], 4294963200  ;;  %v2608_v0 = vld [vmem:[#allocation5 + $0xe0] sm:$0xf]  ;;  %v2882_v1 = vld [vmem:[#allocation5 + $0xec] sm:$0xf0] }
   0xc   :  { %v2880_v2 = vld [vmem:[#allocation5 + $0xe4] sm:$0xf]  ;;  %v2609_v3 = vor.u32 %v2882_v1, %v2608_v0  ;;  %v2610_v4 = vld [vmem:[#allocation5 + $0xf0] sm:$0xf0]  ;;  %v2616_v5 = vld [vmem:[#allocation5 + $0xe8] sm:$0xf] }
   0xd   :  { %v2883_v6 = vld [vmem:[#allocation5 + $0xf4] sm:$0xf0]  ;;  %v2613_v7 = vor.u32 %v2880_v2, %v2610_v4  ;;  %v2881_v9 = vld [vmem:[#allocation5 + $0xec] sm:$0xf]  ;;  %v2618_v10 = vld [vmem:[#allocation5 + $0xf8] sm:$0xf0] }
   0xe   :  { %v2617_v8 = vor.u32 %v2883_v6, %v2616_v5  ;;  %v2592_v11 = vld [vmem:[#allocation5 + $0xc0] sm:$0xf]  ;;  %355 = vmatpush.bf16.msra.mxu0 %v2609_v3  ;;  %v2621_v12 = vor.u32 %v2881_v9, %v2618_v10  ;;  %v2878_v13 = vld [vmem:[#allocation5 + $0xcc] sm:$0xf0]  ;;  %v2876_v14 = vld [vmem:[#allocation5 + $0xc4] sm:$0xf] }
   0xf   :  { %v2594_v15 = vld [vmem:[#allocation5 + $0xd0] sm:$0xf0]  ;;  %404 = vmatpush.bf16.msra.mxu1 %v2613_v7  ;;  %v2593_v16 = vor.u32 %v2878_v13, %v2592_v11  ;;  %v2600_v18 = vld [vmem:[#allocation5 + $0xc8] sm:$0xf]  ;;  %v2879_v19 = vld [vmem:[#allocation5 + $0xd4] sm:$0xf0] }
  0x10   :  { %453 = vmatpush.bf16.msra.mxu2 %v2617_v8  ;;  %v2597_v17 = vor.u32 %v2876_v14, %v2594_v15  ;;  %v2877_v20 = vld [vmem:[#allocation5 + $0xcc] sm:$0xf]  ;;  %502 = vmatpush.bf16.msra.mxu3 %v2621_v12  ;;  %v2601_v21 = vor.u32 %v2879_v19, %v2600_v18  ;;  %v2602_v22 = vld [vmem:[#allocation5 + $0xd8] sm:$0xf0]  ;;  %v2576_v23 = vld [vmem:[#allocation5 + $0xa0] sm:$0xf] }
  0x11   :  { %v2874_v24 = vld [vmem:[#allocation5 + $0xac] sm:$0xf0]  ;;  %v2605_v25 = vor.u32 %v2877_v20, %v2602_v22  ;;  %v2872_v26 = vld [vmem:[#allocation5 + $0xa4] sm:$0xf]  ;;  %v2578_v27 = vld [vmem:[#allocation5 + $0xb0] sm:$0xf0] }
  0x12   :  { %v2584_v28 = vld [vmem:[#allocation5 + $0xa8] sm:$0xf]  ;;  %356 = vmatpush.bf16.msra.mxu0 %v2593_v16  ;;  %v2577_v29 = vor.u32 %v2874_v24, %v2576_v23  ;;  %v2875_v30 = vld [vmem:[#allocation5 + $0xb4] sm:$0xf0]  ;;  %v2873_v31 = vld [vmem:[#allocation5 + $0xac] sm:$0xf]  ;;  %v2581_v33 = vor.u32 %v2872_v26, %v2578_v27 }
  0x13   :  { %v2586_v32 = vld [vmem:[#allocation5 + $0xb8] sm:$0xf0]  ;;  %405 = vmatpush.bf16.msra.mxu1 %v2597_v17  ;;  %v2585_v34 = vor.u32 %v2875_v30, %v2584_v28  ;;  %v2560_v35 = vld [vmem:[#allocation5 + $0x80] sm:$0xf]  ;;  %v2870_v36 = vld [vmem:[#allocation5 + $0x8c] sm:$0xf0] }
  0x14   :  { %454 = vmatpush.bf16.msra.mxu2 %v2601_v21  ;;  %v2868_v37 = vld [vmem:[#allocation5 + $0x84] sm:$0xf]  ;;  %503 = vmatpush.bf16.msra.mxu3 %v2605_v25  ;;  %v2589_v38 = vor.u32 %v2873_v31, %v2586_v32  ;;  %v2562_v39 = vld [vmem:[#allocation5 + $0x90] sm:$0xf0]  ;;  %v2568_v40 = vld [vmem:[#allocation5 + $0x88] sm:$0xf]  ;;  %v2561_v44 = vor.u32 %v2870_v36, %v2560_v35 }
  0x15   :  { %v2871_v41 = vld [vmem:[#allocation5 + $0x94] sm:$0xf0]  ;;  %v2869_v42 = vld [vmem:[#allocation5 + $0x8c] sm:$0xf]  ;;  %v2570_v43 = vld [vmem:[#allocation5 + $0x98] sm:$0xf0]  ;;  %v2565_v45 = vor.u32 %v2868_v37, %v2562_v39 }
  0x16   :  { %357 = vmatpush.bf16.msra.mxu0 %v2577_v29  ;;  %v2569_v46 = vor.u32 %v2871_v41, %v2568_v40  ;;  %v2544_v47 = vld [vmem:[#allocation5 + $0x60] sm:$0xf]  ;;  %v2866_v48 = vld [vmem:[#allocation5 + $0x6c] sm:$0xf0]  ;;  %v2864_v49 = vld [vmem:[#allocation5 + $0x64] sm:$0xf]  ;;  %v2573_v50 = vor.u32 %v2869_v42, %v2570_v43 }
  0x17   :  { %406 = vmatpush.bf16.msra.mxu1 %v2581_v33  ;;  %v2546_v51 = vld [vmem:[#allocation5 + $0x70] sm:$0xf0]  ;;  %v2552_v52 = vld [vmem:[#allocation5 + $0x68] sm:$0xf]  ;;  %v2867_v53 = vld [vmem:[#allocation5 + $0x74] sm:$0xf0]  ;;  %v2545_v56 = vor.u32 %v2866_v48, %v2544_v47 }
  0x18   :  { %455 = vmatpush.bf16.msra.mxu2 %v2585_v34  ;;  %504 = vmatpush.bf16.msra.mxu3 %v2589_v38  ;;  %v2865_v54 = vld [vmem:[#allocation5 + $0x6c] sm:$0xf]  ;;  %v2554_v55 = vld [vmem:[#allocation5 + $0x78] sm:$0xf0]  ;;  %v2549_v57 = vor.u32 %v2864_v49, %v2546_v51  ;;  %v2553_v58 = vor.u32 %v2867_v53, %v2552_v52  ;;  %v2528_v59 = vld [vmem:[#allocation5 + $0x40] sm:$0xf] }
  0x19   :  { %v2862_v60 = vld [vmem:[#allocation5 + $0x4c] sm:$0xf0]  ;;  %v2860_v61 = vld [vmem:[#allocation5 + $0x44] sm:$0xf]  ;;  %v2557_v62 = vor.u32 %v2865_v54, %v2554_v55  ;;  %v2530_v63 = vld [vmem:[#allocation5 + $0x50] sm:$0xf0] }
  0x1a   :  { %358 = vmatpush.bf16.msra.mxu0 %v2561_v44  ;;  %v2536_v0 = vld [vmem:[#allocation5 + $0x48] sm:$0xf]  ;;  %v2863_v1 = vld [vmem:[#allocation5 + $0x54] sm:$0xf0]  ;;  %v2861_v2 = vld [vmem:[#allocation5 + $0x4c] sm:$0xf]  ;;  %v2529_v4 = vor.u32 %v2862_v60, %v2528_v59  ;;  %v2533_v5 = vor.u32 %v2860_v61, %v2530_v63 }
  0x1b   :  { %407 = vmatpush.bf16.msra.mxu1 %v2565_v45  ;;  %v2538_v3 = vld [vmem:[#allocation5 + $0x58] sm:$0xf0]  ;;  %v2537_v6 = vor.u32 %v2863_v1, %v2536_v0  ;;  %v2512_v7 = vld [vmem:[#allocation5 + $0x20] sm:$0xf]  ;;  %v2858_v8 = vld [vmem:[#allocation5 + $0x2c] sm:$0xf0] }
  0x1c   :  { %456 = vmatpush.bf16.msra.mxu2 %v2569_v46  ;;  %505 = vmatpush.bf16.msra.mxu3 %v2573_v50  ;;  %v2856_v9 = vld [vmem:[#allocation5 + $0x24] sm:$0xf]  ;;  %v2541_v10 = vor.u32 %v2861_v2, %v2538_v3  ;;  %v2514_v11 = vld [vmem:[#allocation5 + $0x30] sm:$0xf0]  ;;  %v2520_v12 = vld [vmem:[#allocation5 + $0x28] sm:$0xf]  ;;  %v2513_v16 = vor.u32 %v2858_v8, %v2512_v7 }
  0x1d   :  { %v2859_v13 = vld [vmem:[#allocation5 + $0x34] sm:$0xf0]  ;;  %v2857_v14 = vld [vmem:[#allocation5 + $0x2c] sm:$0xf]  ;;  %v2522_v15 = vld [vmem:[#allocation5 + $0x38] sm:$0xf0]  ;;  %v2517_v18 = vor.u32 %v2856_v9, %v2514_v11 }
  0x1e   :  { %359 = vmatpush.bf16.msra.mxu0 %v2545_v56  ;;  %v2496_v17 = vld [vmem:[#allocation5] sm:$0xf]  ;;  %v2521_v19 = vor.u32 %v2859_v13, %v2520_v12  ;;  %v2854_v20 = vld [vmem:[#allocation5 + $0xc] sm:$0xf0]  ;;  %v2852_v21 = vld [vmem:[#allocation5 + $0x4] sm:$0xf]  ;;  %v2525_v23 = vor.u32 %v2857_v14, %v2522_v15 }
  0x1f   :  { %408 = vmatpush.bf16.msra.mxu1 %v2549_v57  ;;  %v2498_v22 = vld [vmem:[#allocation5 + $0x10] sm:$0xf0]  ;;  %v2504_v24 = vld [vmem:[#allocation5 + $0x8] sm:$0xf]  ;;  %v2855_v25 = vld [vmem:[#allocation5 + $0x14] sm:$0xf0]  ;;  %v2497_v30 = vor.u32 %v2854_v20, %v2496_v17 }
  0x20   :  { %457 = vmatpush.bf16.msra.mxu2 %v2553_v58  ;;  %506 = vmatpush.bf16.msra.mxu3 %v2557_v62  ;;  %v2853_v26 = vld [vmem:[#allocation5 + $0xc] sm:$0xf]  ;;  %v2506_v27 = vld [vmem:[#allocation5 + $0x18] sm:$0xf0]  ;;  %v2736_v28 = vld [vmem:[#allocation7 + $0xe0] sm:$0xf]  ;;  %v2501_v33 = vor.u32 %v2852_v21, %v2498_v22  ;;  %v2505_v34 = vor.u32 %v2855_v25, %v2504_v24 }
  0x21   :  { %v2842_v29 = vld [vmem:[#allocation7 + $0xec] sm:$0xf0]  ;;  %v2840_v31 = vld [vmem:[#allocation7 + $0xe4] sm:$0xf]  ;;  %v2738_v32 = vld [vmem:[#allocation7 + $0xf0] sm:$0xf0]  ;;  %v2509_v36 = vor.u32 %v2853_v26, %v2506_v27 }
  0x22   :  { %360 = vmatpush.bf16.msra.mxu0 %v2529_v4  ;;  %v2844_v35 = vld [vmem:[%s4213_s0] sm:$0xff]  ;;  %v3283_v37 = vor.u32 %v2842_v29, %v2736_v28  ;;  %v2841_v38 = vld [vmem:[#allocation7 + $0xec] sm:$0xf]  ;;  %v2744_v39 = vld [vmem:[#allocation7 + $0xe8] sm:$0xf]  ;;  %v3285_v41 = vor.u32 %v2840_v31, %v2738_v32 }
  0x23   :  { %409 = vmatpush.bf16.msra.mxu1 %v2533_v5  ;;  %v2843_v40 = vld [vmem:[#allocation7 + $0xf4] sm:$0xf0]  ;;  %v2746_v42 = vld [vmem:[#allocation7 + $0xf8] sm:$0xf0]  ;;  %v2720_v43 = vld [vmem:[#allocation7 + $0xc0] sm:$0xf] }
  0x24   :  { %458 = vmatpush.bf16.msra.mxu2 %v2537_v6  ;;  %507 = vmatpush.bf16.msra.mxu3 %v2541_v10  ;;  %v2838_v44 = vld [vmem:[#allocation7 + $0xcc] sm:$0xf0]  ;;  %v2836_v45 = vld [vmem:[#allocation7 + $0xc4] sm:$0xf]  ;;  %v2722_v46 = vld [vmem:[#allocation7 + $0xd0] sm:$0xf0]  ;;  %v3287_v47 = vor.u32 %v2843_v40, %v2744_v39  ;;  %v3290_v48 = vor.u32 %v2841_v38, %v2746_v42 }
  0x25   :  { %v3292_v49 = vor.u32 %v2838_v44, %v2720_v43  ;;  %v2728_v50 = vld [vmem:[#allocation7 + $0xc8] sm:$0xf]  ;;  %v2839_v51 = vld [vmem:[#allocation7 + $0xd4] sm:$0xf0]  ;;  %v3295_v52 = vor.u32 %v2836_v45, %v2722_v46  ;;  %v2837_v53 = vld [vmem:[#allocation7 + $0xcc] sm:$0xf] }
  0x26   :  { %361 = vmatpush.bf16.msra.mxu0 %v2513_v16  ;;  %v2730_v54 = vld [vmem:[#allocation7 + $0xd8] sm:$0xf0]  ;;  %v3298_v55 = vor.u32 %v2839_v51, %v2728_v50  ;;  %v2704_v56 = vld [vmem:[#allocation7 + $0xa0] sm:$0xf]  ;;  %v2834_v57 = vld [vmem:[#allocation7 + $0xac] sm:$0xf0] }
  0x27   :  { %410 = vmatpush.bf16.msra.mxu1 %v2517_v18  ;;  %v2832_v58 = vld [vmem:[#allocation7 + $0xa4] sm:$0xf]  ;;  %v3302_v59 = vor.u32 %v2837_v53, %v2730_v54  ;;  %v3304_v60 = vor.u32 %v2834_v57, %v2704_v56  ;;  %v2706_v61 = vld [vmem:[#allocation7 + $0xb0] sm:$0xf0]  ;;  %v2833_v62 = vld [vmem:[#allocation7 + $0xac] sm:$0xf] }
  0x28   :  { %459 = vmatpush.bf16.msra.mxu2 %v2521_v19  ;;  %508 = vmatpush.bf16.msra.mxu3 %v2525_v23  ;;  %v3307_v63 = vor.u32 %v2832_v58, %v2706_v61  ;;  %v2714_v0 = vld [vmem:[#allocation7 + $0xb8] sm:$0xf0]  ;;  %v2712_v1 = vld [vmem:[#allocation7 + $0xa8] sm:$0xf]  ;;  %v2835_v2 = vld [vmem:[#allocation7 + $0xb4] sm:$0xf0] }
  0x29   :  { %v3310_v3 = vor.u32 %v2835_v2, %v2712_v1  ;;  %v3314_v4 = vor.u32 %v2833_v62, %v2714_v0  ;;  %v2845_v5 = vld [vmem:[%s4213_s0 + $0x8] sm:$0xff]  ;;  %v2688_v6 = vld [vmem:[#allocation7 + $0x80] sm:$0xf]  ;;  %v2830_v7 = vld [vmem:[#allocation7 + $0x8c] sm:$0xf0] }
  0x2a   :  { %362 = vmatpush.bf16.msra.mxu0 %v2497_v30  ;;  %v2828_v8 = vld [vmem:[#allocation7 + $0x84] sm:$0xf]  ;;  %v3322_v9 = vor.u32 %v2830_v7, %v2688_v6  ;;  %v2690_v10 = vld [vmem:[#allocation7 + $0x90] sm:$0xf0]  ;;  %v2829_v11 = vld [vmem:[#allocation7 + $0x8c] sm:$0xf] }
  0x2b   :  { %411 = vmatpush.bf16.msra.mxu1 %v2501_v33  ;;  %v2698_v12 = vld [vmem:[#allocation7 + $0x98] sm:$0xf0]  ;;  %v3324_v13 = vor.u32 %v2828_v8, %v2690_v10  ;;  %v2696_v15 = vld [vmem:[#allocation7 + $0x88] sm:$0xf]  ;;  %v2831_v16 = vld [vmem:[#allocation7 + $0x94] sm:$0xf0] }
  0x2c   :  { %460 = vmatpush.bf16.msra.mxu2 %v2505_v34  ;;  %509 = vmatpush.bf16.msra.mxu3 %v2509_v36  ;;  %v3326_v14 = vor.u32 %v2829_v11, %v2698_v12  ;;  %v3329_v17 = vor.u32 %v2831_v16, %v2696_v15  ;;  %v2846_v18 = vld [vmem:[%s4213_s0 + $0x10] sm:$0xff]  ;;  %v2672_v19 = vld [vmem:[#allocation7 + $0x60] sm:$0xf]  ;;  %v2824_v21 = vld [vmem:[#allocation7 + $0x64] sm:$0xf] }
  0x2d   :  { %363 = vmatmul.bf16.vlgmr.msra.gmra.mxu0 %v2844_v35  ;;  %v2826_v20 = vld [vmem:[#allocation7 + $0x6c] sm:$0xf0]  ;;  %v2674_v23 = vld [vmem:[#allocation7 + $0x70] sm:$0xf0]  ;;  %v2825_v24 = vld [vmem:[#allocation7 + $0x6c] sm:$0xf] }
  0x2e   :  { %788 = vmatpush.bf16.msrb.mxu0 %v3283_v37  ;;  %412 = vmatmul.bf16.vlgmr.msra.gmra.mxu1 %v2844_v35  ;;  %v3337_v22 = vor.u32 %v2826_v20, %v2672_v19  ;;  %v2682_v25 = vld [vmem:[#allocation7 + $0x78] sm:$0xf0]  ;;  %v3339_v26 = vor.u32 %v2824_v21, %v2674_v23  ;;  %v2680_v28 = vld [vmem:[#allocation7 + $0x68] sm:$0xf]  ;;  %v2827_v29 = vld [vmem:[#allocation7 + $0x74] sm:$0xf0] }
  0x2f   :  { %802 = vmatpush.bf16.msrb.mxu1 %v3285_v41  ;;  %461 = vmatmul.bf16.vlgmr.msra.gmra.mxu2 %v2844_v35  ;;  %v3341_v27 = vor.u32 %v2825_v24, %v2682_v25  ;;  %v3344_v30 = vor.u32 %v2827_v29, %v2680_v28  ;;  %v2847_v31 = vld [vmem:[%s4213_s0 + $0x18] sm:$0xff]  ;;  %v2656_v32 = vld [vmem:[#allocation7 + $0x40] sm:$0xf]  ;;  %v2822_v33 = vld [vmem:[#allocation7 + $0x4c] sm:$0xf0]  ;;  %v3248_v29 = vmov 0.0|0.0  }
  0x30   :  { %510 = vmatmul.bf16.vlgmr.msra.gmra.mxu3 %v2844_v35  ;;  %816 = vmatpush.bf16.msrb.mxu2 %v3287_v47  ;;  %v2820_v34 = vld [vmem:[#allocation7 + $0x44] sm:$0xf]  ;;  %v3352_v35 = vor.u32 %v2822_v33, %v2656_v32  ;;  %v2658_v36 = vld [vmem:[#allocation7 + $0x50] sm:$0xf0]  ;;  %v2821_v38 = vld [vmem:[#allocation7 + $0x4c] sm:$0xf] }
  0x31   :  { %830 = vmatpush.bf16.msrb.mxu3 %v3290_v48  ;;  %v2666_v39 = vld [vmem:[#allocation7 + $0x58] sm:$0xf0]  ;;  %v3354_v40 = vor.u32 %v2820_v34, %v2658_v36  ;;  %v2664_v43 = vld [vmem:[#allocation7 + $0x48] sm:$0xf]  ;;  %v2823_v44 = vld [vmem:[#allocation7 + $0x54] sm:$0xf0] }
  0x32   :  { %789 = vmatpush.bf16.msrb.mxu0 %v3292_v49  ;;  %v3356_v42 = vor.u32 %v2821_v38, %v2666_v39  ;;  %v3359_v45 = vor.u32 %v2823_v44, %v2664_v43  ;;  %v2848_v46 = vld [vmem:[%s4213_s0 + $0x20] sm:$0xff]  ;;  %v2818_v51 = vld [vmem:[#allocation7 + $0x2c] sm:$0xf0]  ;;  %v2642_v56 = vld [vmem:[#allocation7 + $0x30] sm:$0xf0] }
  0x33   :  { %803 = vmatpush.bf16.msrb.mxu1 %v3295_v52  ;;  %v2640_v50 = vld [vmem:[#allocation7 + $0x20] sm:$0xf]  ;;  %v2816_v53 = vld [vmem:[#allocation7 + $0x24] sm:$0xf]  ;;  %v2817_v57 = vld [vmem:[#allocation7 + $0x2c] sm:$0xf] }
  0x34   :  { %817 = vmatpush.bf16.msrb.mxu2 %v3298_v55  ;;  %v3367_v54 = vor.u32 %v2818_v51, %v2640_v50  ;;  %v2650_v58 = vld [vmem:[#allocation7 + $0x38] sm:$0xf0]  ;;  %v3369_v61 = vor.u32 %v2816_v53, %v2642_v56  ;;  %v2648_v0 = vld [vmem:[#allocation7 + $0x28] sm:$0xf]  ;;  %v2819_v1 = vld [vmem:[#allocation7 + $0x34] sm:$0xf0] }
  0x35   :  { %831 = vmatpush.bf16.msrb.mxu3 %v3302_v59  ;;  %v3371_v62 = vor.u32 %v2817_v57, %v2650_v58  ;;  %v3374_v2 = vor.u32 %v2819_v1, %v2648_v0  ;;  %v2624_v6 = vld [vmem:[#allocation7] sm:$0xf]  ;;  %v2814_v7 = vld [vmem:[#allocation7 + $0xc] sm:$0xf0]  ;;  %v2812_v8 = vld [vmem:[#allocation7 + $0x4] sm:$0xf] }
  0x36   :  { %790 = vmatpush.bf16.msrb.mxu0 %v3304_v60  ;;  %v3382_v10 = vor.u32 %v2814_v7, %v2624_v6  ;;  %v2626_v11 = vld [vmem:[#allocation7 + $0x10] sm:$0xf0]  ;;  %v2813_v12 = vld [vmem:[#allocation7 + $0xc] sm:$0xf]  ;;  %v2634_v15 = vld [vmem:[#allocation7 + $0x18] sm:$0xf0] }
  0x37   :  { %804 = vmatpush.bf16.msrb.mxu1 %v3307_v63  ;;  %v3384_v16 = vor.u32 %v2812_v8, %v2626_v11  ;;  %v2850_v19 = vld [vmem:[%s4213_s0 + $0x30] sm:$0xff]  ;;  %v2632_v20 = vld [vmem:[#allocation7 + $0x8] sm:$0xf]  ;;  %v2815_v21 = vld [vmem:[#allocation7 + $0x14] sm:$0xf0] }
  0x38   :  { %818 = vmatpush.bf16.msrb.mxu2 %v3310_v3  ;;  %v3400_v23 = vor.u32 %v2815_v21, %v2632_v20  ;;  %v2851_v24 = vld [vmem:[%s4213_s0 + $0x38] sm:$0xff] }
  0x39   :  { %832 = vmatpush.bf16.msrb.mxu3 %v3314_v4 }
  0x3a   :  { %791 = vmatpush.bf16.msrb.mxu0 %v3322_v9 }
  0x3b   :  { %805 = vmatpush.bf16.msrb.mxu1 %v3324_v13 }
  0x3c   :  { %819 = vmatpush.bf16.msrb.mxu2 %v3329_v17 }
  0x3d   :  { %368 = vmatmul.bf16.gmra.mxu0 %v2845_v5  ;;  %833 = vmatpush.bf16.msrb.mxu3 %v3326_v14 }
  0x3e   :  { %417 = vmatmul.bf16.gmra.mxu1 %v2845_v5  ;;  %792 = vmatpush.bf16.msrb.mxu0 %v3337_v22 }
  0x3f   :  { %466 = vmatmul.bf16.gmra.mxu2 %v2845_v5  ;;  %806 = vmatpush.bf16.msrb.mxu1 %v3339_v26 }
  0x40   :  { %515 = vmatmul.bf16.gmra.mxu3 %v2845_v5  ;;  %820 = vmatpush.bf16.msrb.mxu2 %v3344_v30  ;;  %v2849_v5 = vld [vmem:[%s4213_s0 + $0x28] sm:$0xff] }
  0x41   :  { %834 = vmatpush.bf16.msrb.mxu3 %v3341_v27 }
  0x42   :  { %793 = vmatpush.bf16.msrb.mxu0 %v3352_v35 }
  0x43   :  { %807 = vmatpush.bf16.msrb.mxu1 %v3354_v40 }
  0x44   :  { %821 = vmatpush.bf16.msrb.mxu2 %v3359_v45 }
  0x45   :  { %835 = vmatpush.bf16.msrb.mxu3 %v3356_v42 }
  0x46   :  { %794 = vmatpush.bf16.msrb.mxu0 %v3367_v54 }
  0x47   :  { %808 = vmatpush.bf16.msrb.mxu1 %v3369_v61 }
  0x48   :  { %822 = vmatpush.bf16.msrb.mxu2 %v3374_v2 }
  0x49   :  { %836 = vmatpush.bf16.msrb.mxu3 %v3371_v62 }
  0x4a   :  { %795 = vmatpush.bf16.msrb.mxu0 %v3382_v10 }
  0x4b   :  { %809 = vmatpush.bf16.msrb.mxu1 %v3384_v16 }
  0x4c   :  { %823 = vmatpush.bf16.msrb.mxu2 %v3400_v23 }
  0x4d   :  { %373 = vmatmul.bf16.gmra.mxu0 %v2846_v18 }
  0x4e   :  { %422 = vmatmul.bf16.gmra.mxu1 %v2846_v18  ;;  %997 = vmatpush.bf16.msra.mxu0 %v3283_v37 }
  0x4f   :  { %471 = vmatmul.bf16.gmra.mxu2 %v2846_v18  ;;  %1011 = vmatpush.bf16.msra.mxu1 %v3285_v41 }
  0x50   :  { %520 = vmatmul.bf16.gmra.mxu3 %v2846_v18  ;;  %v3386_v18 = vor.u32 %v2813_v12, %v2634_v15  ;;  %1025 = vmatpush.bf16.msra.mxu2 %v3287_v47 }
  0x52   :  { %837 = vmatpush.bf16.msrb.mxu3 %v3386_v18  ;;  %998 = vmatpush.bf16.msra.mxu0 %v3292_v49 }
  0x53   :  { %1012 = vmatpush.bf16.msra.mxu1 %v3295_v52 }
  0x54   :  { %1026 = vmatpush.bf16.msra.mxu2 %v3298_v55 }
  0x56   :  { %1039 = vmatpush.bf16.msra.mxu3 %v3290_v48  ;;  %999 = vmatpush.bf16.msra.mxu0 %v3304_v60 }
  0x57   :  { %1013 = vmatpush.bf16.msra.mxu1 %v3307_v63 }
  0x58   :  { %1027 = vmatpush.bf16.msra.mxu2 %v3310_v3 }
  0x5a   :  { %1040 = vmatpush.bf16.msra.mxu3 %v3302_v59  ;;  %1000 = vmatpush.bf16.msra.mxu0 %v3322_v9 }
  0x5b   :  { %1014 = vmatpush.bf16.msra.mxu1 %v3324_v13 }
  0x5c   :  { %1028 = vmatpush.bf16.msra.mxu2 %v3329_v17 }
  0x5d   :  { %378 = vmatmul.bf16.gmra.mxu0 %v2847_v31 }
  0x5e   :  { %427 = vmatmul.bf16.gmra.mxu1 %v2847_v31  ;;  %1041 = vmatpush.bf16.msra.mxu3 %v3314_v4 }
  0x5f   :  { %476 = vmatmul.bf16.gmra.mxu2 %v2847_v31  ;;  %1001 = vmatpush.bf16.msra.mxu0 %v3337_v22 }
  0x60   :  { %525 = vmatmul.bf16.gmra.mxu3 %v2847_v31  ;;  %1015 = vmatpush.bf16.msra.mxu1 %v3339_v26 }
  0x61   :  { %1029 = vmatpush.bf16.msra.mxu2 %v3344_v30 }
  0x62   :  { %1042 = vmatpush.bf16.msra.mxu3 %v3326_v14 }
  0x63   :  { %1002 = vmatpush.bf16.msra.mxu0 %v3352_v35 }
  0x64   :  { %1016 = vmatpush.bf16.msra.mxu1 %v3354_v40 }
  0x65   :  { %1030 = vmatpush.bf16.msra.mxu2 %v3359_v45 }
  0x66   :  { %1043 = vmatpush.bf16.msra.mxu3 %v3341_v27 }
  0x67   :  { %1003 = vmatpush.bf16.msra.mxu0 %v3367_v54 }
  0x68   :  { %1017 = vmatpush.bf16.msra.mxu1 %v3369_v61 }
  0x69   :  { %1031 = vmatpush.bf16.msra.mxu2 %v3374_v2 }
  0x6a   :  { %1044 = vmatpush.bf16.msra.mxu3 %v3356_v42 }
  0x6b   :  { %1004 = vmatpush.bf16.msra.mxu0 %v3382_v10 }
  0x6c   :  { %1018 = vmatpush.bf16.msra.mxu1 %v3384_v16 }
  0x6d   :  { %383 = vmatmul.bf16.gmra.mxu0 %v2848_v46  ;;  %1032 = vmatpush.bf16.msra.mxu2 %v3400_v23 }
  0x6e   :  { %432 = vmatmul.bf16.gmra.mxu1 %v2848_v46  ;;  %1045 = vmatpush.bf16.msra.mxu3 %v3371_v62 }
  0x6f   :  { %481 = vmatmul.bf16.gmra.mxu2 %v2848_v46 }
  0x70   :  { %530 = vmatmul.bf16.gmra.mxu3 %v2848_v46 }
  0x72   :  { %1046 = vmatpush.bf16.msra.mxu3 %v3386_v18 }
  0x7d   :  { %388 = vmatmul.bf16.gmra.mxu0 %v2849_v5 }
  0x7e   :  { %437 = vmatmul.bf16.gmra.mxu1 %v2849_v5 }
  0x7f   :  { %486 = vmatmul.bf16.gmra.mxu2 %v2849_v5 }
  0x80   :  { %535 = vmatmul.bf16.gmra.mxu3 %v2849_v5 }
  0x8d   :  { %393 = vmatmul.bf16.gmra.mxu0 %v2850_v19 }
  0x8e   :  { %442 = vmatmul.bf16.gmra.mxu1 %v2850_v19 }
  0x8f   :  { %491 = vmatmul.bf16.gmra.mxu2 %v2850_v19 }
  0x90   :  { %540 = vmatmul.bf16.gmra.mxu3 %v2850_v19 }
  0x9d   :  { %398 = vmatmul.bf16.gmra.mxu0 %v2851_v24 }
  0x9e   :  { %447 = vmatmul.bf16.gmra.mxu1 %v2851_v24 }
  0x9f   :  { %496 = vmatmul.bf16.gmra.mxu2 %v2851_v24 }
  0xa0   :  { %545 = vmatmul.bf16.gmra.mxu3 %v2851_v24 }
  0xaa   :  { %v3432_v25 = vpop.f32.mrf.mxu0 }
  0xab   :  { %v3434_v28 = vpop.f32.mrf.mxu1 }
  0xad   :  { %796 = vmatmul.bf16.vlgmr.msrb.gmra.mxu0 %v3248_v29 }
  0xae   :  { %810 = vmatmul.bf16.vlgmr.msrb.gmra.mxu1 %v3248_v29  ;;  %1207 = vmatpush.bf16.msrb.mxu0 %v3283_v37 }
  0xaf   :  { %824 = vmatmul.bf16.vlgmr.msrb.gmra.mxu2 %v3248_v29  ;;  %1221 = vmatpush.bf16.msrb.mxu1 %v3285_v41 }
  0xb0   :  { %838 = vmatmul.bf16.vlgmr.msrb.gmra.mxu3 %v3248_v29  ;;  %1235 = vmatpush.bf16.msrb.mxu2 %v3287_v47 }
  0xb1   :  { %1249 = vmatpush.bf16.msrb.mxu3 %v3290_v48 }
  0xb2   :  { %v3439_v31 = vpop.f32.mrf.mxu2  ;;  %v3444_v33 = vpop.f32.mrf.mxu0  ;;  %1208 = vmatpush.bf16.msrb.mxu0 %v3292_v49 }
  0xb3   :  { %v3442_v32 = vpop.f32.mrf.mxu3  ;;  %v3446_v34 = vpop.f32.mrf.mxu1  ;;  %1222 = vmatpush.bf16.msrb.mxu1 %v3295_v52 }
  0xb4   :  { %1236 = vmatpush.bf16.msrb.mxu2 %v3298_v55 }
  0xb5   :  { %1250 = vmatpush.bf16.msrb.mxu3 %v3302_v59 }
  0xb6   :  { %1209 = vmatpush.bf16.msrb.mxu0 %v3304_v60 }
  0xb7   :  { %1223 = vmatpush.bf16.msrb.mxu1 %v3307_v63 }
  0xb8   :  { %1237 = vmatpush.bf16.msrb.mxu2 %v3310_v3 }
  0xb9   :  { %1251 = vmatpush.bf16.msrb.mxu3 %v3314_v4 }
  0xba   :  { %v3455_v36 = vpop.f32.mrf.mxu2  ;;  %v3460_v39 = vpop.f32.mrf.mxu0  ;;  %1210 = vmatpush.bf16.msrb.mxu0 %v3322_v9 }
  0xbb   :  { %v3458_v38 = vpop.f32.mrf.mxu3  ;;  %v3462_v43 = vpop.f32.mrf.mxu1  ;;  %1224 = vmatpush.bf16.msrb.mxu1 %v3324_v13 }
  0xbc   :  { %4235 = vst [vmem:[#allocation11_spill] sm:$0xff] %v3462_v43  ;;  %1238 = vmatpush.bf16.msrb.mxu2 %v3329_v17 }
  0xbd   :  { %1252 = vmatpush.bf16.msrb.mxu3 %v3326_v14 }
  0xbe   :  { %1211 = vmatpush.bf16.msrb.mxu0 %v3337_v22 }
  0xbf   :  { %1225 = vmatpush.bf16.msrb.mxu1 %v3339_v26 }
  0xc0   :  { %1239 = vmatpush.bf16.msrb.mxu2 %v3344_v30 }
  0xc1   :  { %1253 = vmatpush.bf16.msrb.mxu3 %v3341_v27 }
  0xc2   :  { %v3471_v44 = vpop.f32.mrf.mxu2  ;;  %v3476_v50 = vpop.f32.mrf.mxu0  ;;  %1212 = vmatpush.bf16.msrb.mxu0 %v3352_v35 }
  0xc3   :  { %4236 = vst [vmem:[#allocation12_spill] sm:$0xff] %v3471_v44  ;;  %v3474_v46 = vpop.f32.mrf.mxu3  ;;  %v3478_v51 = vpop.f32.mrf.mxu1  ;;  %1226 = vmatpush.bf16.msrb.mxu1 %v3354_v40 }
  0xc4   :  { %4237 = vst [vmem:[#allocation13_spill] sm:$0xff] %v3474_v46  ;;  %1240 = vmatpush.bf16.msrb.mxu2 %v3359_v45 }
  0xc5   :  { %4238 = vst [vmem:[#allocation14_spill] sm:$0xff] %v3476_v50  ;;  %1254 = vmatpush.bf16.msrb.mxu3 %v3356_v42 }
  0xc6   :  { %4239 = vst [vmem:[#allocation15_spill] sm:$0xff] %v3478_v51  ;;  %1213 = vmatpush.bf16.msrb.mxu0 %v3367_v54 }
  0xc7   :  { %1227 = vmatpush.bf16.msrb.mxu1 %v3369_v61 }
  0xc8   :  { %1241 = vmatpush.bf16.msrb.mxu2 %v3374_v2 }
  0xc9   :  { %1255 = vmatpush.bf16.msrb.mxu3 %v3371_v62 }
  0xca   :  { %v3487_v53 = vpop.f32.mrf.mxu2  ;;  %v3492_v57 = vpop.f32.mrf.mxu0  ;;  %1214 = vmatpush.bf16.msrb.mxu0 %v3382_v10 }
  0xcb   :  { %4240 = vst [vmem:[#allocation16_spill] sm:$0xff] %v3487_v53  ;;  %v3490_v56 = vpop.f32.mrf.mxu3  ;;  %v3494_v58 = vpop.f32.mrf.mxu1  ;;  %1228 = vmatpush.bf16.msrb.mxu1 %v3384_v16 }
  0xcc   :  { %4241 = vst [vmem:[#allocation17_spill] sm:$0xff] %v3490_v56  ;;  %1242 = vmatpush.bf16.msrb.mxu2 %v3400_v23 }
  0xcd   :  { %4242 = vst [vmem:[#allocation18_spill] sm:$0xff] %v3492_v57  ;;  %1256 = vmatpush.bf16.msrb.mxu3 %v3386_v18 }
  0xce   :  { %4243 = vst [vmem:[#allocation19_spill] sm:$0xff] %v3494_v58 }
  0xd2   :  { %v3500_v0 = vpop.f32.mrf.mxu2  ;;  %v3504_v5 = vpop.f32.mrf.mxu0 }
  0xd3   :  { %4244 = vst [vmem:[#allocation20_spill] sm:$0xff] %v3500_v0  ;;  %v3502_v1 = vpop.f32.mrf.mxu3  ;;  %v3506_v6 = vpop.f32.mrf.mxu1 }
  0xd4   :  { %4245 = vst [vmem:[#allocation21_spill] sm:$0xff] %v3502_v1 }
  0xd5   :  { %4246 = vst [vmem:[#allocation22_spill] sm:$0xff] %v3504_v5 }
  0xd6   :  { %4247 = vst [vmem:[#allocation23_spill] sm:$0xff] %v3506_v6 }
  0xda   :  { %v3508_v7 = vpop.f32.mrf.mxu2  ;;  %v3512_v11 = vpop.f32.mrf.mxu0 }
  0xdb   :  { %4248 = vst [vmem:[#allocation24_spill] sm:$0xff] %v3508_v7  ;;  %v3510_v8 = vpop.f32.mrf.mxu3  ;;  %v3514_v12 = vpop.f32.mrf.mxu1 }
  0xdc   :  { %4249 = vst [vmem:[#allocation25_spill] sm:$0xff] %v3510_v8 }
  0xdd   :  { %4250 = vst [vmem:[#allocation26_spill] sm:$0xff] %v3512_v11 }
  0xde   :  { %4251 = vst [vmem:[#allocation27_spill] sm:$0xff] %v3514_v12 }
  0xe2   :  { %v3516_v15 = vpop.f32.mrf.mxu2  ;;  %v3520_v20 = vpop.f32.mrf.mxu0 }
  0xe3   :  { %4252 = vst [vmem:[#allocation28_spill] sm:$0xff] %v3516_v15  ;;  %v3518_v19 = vpop.f32.mrf.mxu3  ;;  %v3522_v21 = vpop.f32.mrf.mxu1 }
  0xe4   :  { %4253 = vst [vmem:[#allocation29_spill] sm:$0xff] %v3518_v19 }
  0xe5   :  { %4254 = vst [vmem:[#allocation30_spill] sm:$0xff] %v3520_v20 }
  0xe6   :  { %4255 = vst [vmem:[#allocation31_spill] sm:$0xff] %v3522_v21 }
  0xea   :  { %v3524_v24 = vpop.f32.mrf.mxu2  ;;  %v3528_v0 = vpop.f32.mrf.mxu0 }
  0xeb   :  { %4256 = vst [vmem:[#allocation32_spill] sm:$0xff] %v3524_v24  ;;  %v3526_v29 = vpop.f32.mrf.mxu3  ;;  %v3530_v7 = vpop.f32.mrf.mxu1 }
  0xec   :  { %4257 = vst [vmem:[#allocation33_spill] sm:$0xff] %v3526_v29 }
  0xed   :  { %4258 = vst [vmem:[#allocation34_spill] sm:$0xff] %v3528_v0 }
  0xee   :  { %4259 = vst [vmem:[#allocation35_spill] sm:$0xff] %v3530_v7 }
  0xf2   :  { %v3532_v8 = vpop.f32.mrf.mxu2  ;;  %v3536_v12 = vpop.f32.mrf.mxu0 }
  0xf3   :  { %4260 = vst [vmem:[#allocation36_spill] sm:$0xff] %v3532_v8  ;;  %v3534_v11 = vpop.f32.mrf.mxu3  ;;  %v3538_v15 = vpop.f32.mrf.mxu1 }
  0xf4   :  { %4261 = vst [vmem:[#allocation37_spill] sm:$0xff] %v3534_v11 }
  0xf5   :  { %4262 = vst [vmem:[#allocation38_spill] sm:$0xff] %v3536_v12 }
  0xf6   :  { %4263 = vst [vmem:[#allocation39_spill] sm:$0xff] %v3538_v15 }
  0xfa   :  { %v3540_v19 = vpop.f32.mrf.mxu2  ;;  %v3544_v21 = vpop.f32.mrf.mxu0 }
  0xfb   :  { %4264 = vst [vmem:[#allocation40_spill] sm:$0xff] %v3540_v19  ;;  %v3542_v20 = vpop.f32.mrf.mxu3  ;;  %v3546_v24 = vpop.f32.mrf.mxu1 }
  0xfc   :  { %4265 = vst [vmem:[#allocation41_spill] sm:$0xff] %v3542_v20 }
  0xfd   :  { %4266 = vst [vmem:[#allocation42_spill] sm:$0xff] %v3544_v21 }
  0xfe   :  { %4267 = vst [vmem:[#allocation43_spill] sm:$0xff] %v3546_v24 }
 0x102   :  { %v3548_v29 = vpop.f32.mrf.mxu2  ;;  %v3552_v7 = vpop.f32.mrf.mxu0 }
 0x103   :  { %4268 = vst [vmem:[#allocation44_spill] sm:$0xff] %v3548_v29  ;;  %v3550_v0 = vpop.f32.mrf.mxu3  ;;  %v3554_v8 = vpop.f32.mrf.mxu1 }
 0x104   :  { %4269 = vst [vmem:[#allocation45_spill] sm:$0xff] %v3550_v0 }
 0x105   :  { %4270 = vst [vmem:[#allocation46_spill] sm:$0xff] %v3552_v7 }
 0x106   :  { %4271 = vst [vmem:[#allocation47_spill] sm:$0xff] %v3554_v8 }
 0x10a   :  { %v3556_v11 = vpop.f32.mrf.mxu2  ;;  %v3560_v15 = vpop.f32.mrf.mxu0 }
 0x10b   :  { %4272 = vst [vmem:[#allocation48_spill] sm:$0xff] %v3556_v11  ;;  %v3558_v12 = vpop.f32.mrf.mxu3  ;;  %v3562_v19 = vpop.f32.mrf.mxu1 }
 0x10c   :  { %4273 = vst [vmem:[#allocation49_spill] sm:$0xff] %v3558_v12 }
 0x10d   :  { %4274 = vst [vmem:[#allocation50_spill] sm:$0xff] %v3560_v15 }
 0x10e   :  { %4275 = vst [vmem:[#allocation51_spill] sm:$0xff] %v3562_v19  ;;  %v137_v19 = vld [vmem:[%s4216_s3] sm:$0xf] }
 0x10f   :  { %v3601_v5 = vperm.slane %v137_v19, 3  ;;  %v3611_v53 = vperm.slane %v137_v19, 2 }
 0x111   :  { %4291 = vst [vmem:[#allocation67_spill] sm:$0xff] %v3601_v5 }
 0x112   :  { %v3564_v20 = vpop.f32.mrf.mxu2  ;;  %v3568_v24 = vpop.f32.mrf.mxu0  ;;  %4293 = vst [vmem:[#allocation69_spill] sm:$0xff] %v3611_v53 }
 0x113   :  { %4276 = vst [vmem:[#allocation52_spill] sm:$0xff] %v3564_v20  ;;  %v3566_v21 = vpop.f32.mrf.mxu3  ;;  %v3570_v29 = vpop.f32.mrf.mxu1 }
 0x114   :  { %4277 = vst [vmem:[#allocation53_spill] sm:$0xff] %v3566_v21 }
 0x115   :  { %4278 = vst [vmem:[#allocation54_spill] sm:$0xff] %v3568_v24  ;;  %v3589_v24 = vperm.slane %v137_v19, 0 }
 0x116   :  { %4279 = vst [vmem:[#allocation55_spill] sm:$0xff] %v3570_v29  ;;  %v3591_v29 = vperm.slane %v137_v19, 1 }
 0x117   :  { %4287 = vst [vmem:[#allocation63_spill] sm:$0xff] %v3589_v24 }
 0x118   :  { %4288 = vst [vmem:[#allocation64_spill] sm:$0xff] %v3591_v29 }
 0x11a   :  { %v3574_v7 = vpop.f32.mrf.mxu0  ;;  %v3578_v11 = vpop.f32.mrf.mxu2 }
 0x11b   :  { %v3572_v0 = vpop.f32.mrf.mxu3  ;;  %4281 = vst [vmem:[#allocation57_spill] sm:$0xff] %v3574_v7  ;;  %v3576_v8 = vpop.f32.mrf.mxu1  ;;  %v414_v7 = vadd.f32 %v3434_v28, %v3591_v29  ;;  %v367_v28 = vadd.f32 %v3444_v33, %v3589_v24  ;;  %v514_v33 = vadd.f32 %v3458_v38, %v3601_v5 }
 0x11c   :  { %4280 = vst [vmem:[#allocation56_spill] sm:$0xff] %v3572_v0 }
 0x11d   :  { %4282 = vst [vmem:[#allocation58_spill] sm:$0xff] %v3576_v8  ;;  %v365_v8 = vadd.f32 %v3432_v25, %v3589_v24  ;;  %v512_v25 = vadd.f32 %v3442_v32, %v3601_v5 }
 0x11e   :  { %4283 = vst [vmem:[#allocation59_spill] sm:$0xff] %v3578_v11 }
 0x122   :  { %v3585_v20 = vpop.f32.mrf.mxu0  ;;  %v3593_v0 = vpop.f32.mrf.mxu2 }
 0x123   :  { %v3583_v15 = vpop.f32.mrf.mxu3  ;;  %4285 = vst [vmem:[#allocation61_spill] sm:$0xff] %v3585_v20  ;;  %v3587_v21 = vpop.f32.mrf.mxu1 }
 0x124   :  { %4284 = vst [vmem:[#allocation60_spill] sm:$0xff] %v3583_v15 }
 0x125   :  { %4286 = vst [vmem:[#allocation62_spill] sm:$0xff] %v3587_v21 }
 0x126   :  { %4289 = vst [vmem:[#allocation65_spill] sm:$0xff] %v3593_v0 }
 0x12a   :  { %v797_v12 = vpop.f32.mrf.mxu0  ;;  %v3603_v58 = vpop.f32.mrf.mxu2 }
 0x12b   :  { %v3599_v11 = vpop.f32.mrf.mxu3  ;;  %v844_v15 = vadd.f32 %v797_v12, %v365_v8  ;;  %v811_v6 = vpop.f32.mrf.mxu1  ;;  %4292 = vst [vmem:[#allocation68_spill] sm:$0xff] %v3603_v58 }
 0x12c   :  { %4290 = vst [vmem:[#allocation66_spill] sm:$0xff] %v3599_v11  ;;  %v845_v20 = vadd.f32 %v811_v6, %v414_v7  ;;  %v416_v11 = vadd.f32 %v3446_v34, %v3591_v29 }
 0x12d   :  { %v2750_v21 = vmul.f32 -1.442695, %v844_v15 }
 0x12e   :  { %v2752_v1 = vmul.f32 -1.442695, %v845_v20 }
 0x12f   :  { %2936 = vpow2.f32 %v2750_v21 }
 0x130   :  { %2938 = vpow2.f32 %v2752_v1 }
 0x132   :  { %v799_v12 = vpop.f32.mrf.mxu0  ;;  %v825_v34 = vpop.f32.mrf.mxu2 }
 0x133   :  { %v839_v8 = vpop.f32.mrf.mxu3  ;;  %v848_v7 = vadd.f32 %v799_v12, %v367_v28  ;;  %v813_v0 = vpop.f32.mrf.mxu1 }
 0x134   :  { %v847_v6 = vadd.f32 %v839_v8, %v512_v25  ;;  %v849_v15 = vadd.f32 %v813_v0, %v416_v11  ;;  %v463_v0 = vadd.f32 %v3439_v31, %v3611_v53 }
 0x135   :  { %v2937_v20 = vpop.eup %2936  ;;  %v2751_v1 = vmul.f32 -1.442695, %v848_v7 }
 0x136   :  { %v2754_v21 = vmul.f32 -1.442695, %v847_v6  ;;  %v2939_v57 = vpop.eup %2938  ;;  %v858_v58 = vadd.f32 1.0, %v2937_v20  ;;  %v2753_v44 = vmul.f32 -1.442695, %v849_v15  ;;  %v846_v8 = vadd.f32 %v825_v34, %v463_v0 }
 0x137   :  { %v896_v32 = vadd.f32 1.0, %v2939_v57 }
 0x138   :  { %2940 = vpow2.f32 %v2754_v21  ;;  %vm865_vm2 = vweird.f32 %v858_v58 }
 0x139   :  { %2942 = vrcp.f32 %v858_v58  ;;  %vm903_vm3 = vweird.f32 %v896_v32 }
 0x13a   :  { %2944 = vrcp.f32 %v896_v32 }
 0x13b   :  { %2946 = vpow2.f32 %v2751_v1  ;;  %v841_v25 = vpop.f32.mrf.mxu3 }
 0x13c   :  { %2948 = vpow2.f32 %v2753_v44  ;;  %v851_v11 = vadd.f32 %v841_v25, %v514_v33  ;;  %v869_v44 = vand.u32 2147483647, %v858_v58  ;;  %v871_v33 = vand.u32 2147483648, %v858_v58 }
 0x13d   :  { %v909_v25 = vand.u32 2147483648, %v896_v32 }
 0x13e   :  { %v2941_v28 = vpop.eup %2940  ;;  %v2755_v19 = vmul.f32 -1.442695, %v851_v11  ;;  %vm870_vm5 = vcmp.eq.f32.partialorder %v869_v44, 8.507059e+37 }
 0x13f   :  { %v2943_v12 = vpop.eup %2942  ;;  %v3617_v57 = vadd.f32 1.0, %v2941_v28  ;;  %v907_v28 = vand.u32 2147483647, %v896_v32  ;;  %v910_v51 = vor.u32 1.1754944e-38, %v909_v25 }
 0x140   :  { %v2945_v6 = vpop.eup %2944  ;;  %v861_v7 = vmul.f32 %v2943_v12, %v858_v58  ;;  %2950 = vpow2.f32 %v2755_v19  ;;  %vm866_vm0 = vweird.f32 %v2943_v12 }
 0x141   :  { %v2947_v15 = vpop.eup %2946  ;;  %v899_v38 = vmul.f32 %v2945_v6, %v896_v32  ;;  %2952 = vrcp.f32 %v3617_v57  ;;  %vm904_vm1 = vweird.f32 %v2945_v6  ;;  %vm867_vm4 = vmor %vm865_vm2, %vm866_vm0  ;;  %vm908_vm7 = vcmp.eq.f32.partialorder %v907_v28, 8.507059e+37 }
 0x142   :  { %v2949_v20 = vpop.eup %2948  ;;  %v862_v21 = vsub.f32 1.0, %v861_v7  ;;  %2954 = vtanh.f32 %v846_v8  ;;  %v3620_v1 = vadd.f32 1.0, %v2947_v15  ;;  %v872_v15 = vor.u32 1.1754944e-38, %v871_v33  ;;  %vm905_vm6 = vmor %vm903_vm3, %vm904_vm1 }
 0x143   :  { %v900_v31 = vsub.f32 1.0, %v899_v38  ;;  %v3622_v34 = vadd.f32 1.0, %v2949_v20  ;;  %v827_v20 = vpop.f32.mrf.mxu2  ;;  %vm943_vm1 = vweird.f32 %v3617_v57 }
 0x144   :  { %v863_v0 = vmul.f32 %v2943_v12, %v862_v21  ;;  %2956 = vrcp.f32 %v3620_v1  ;;  %vm880_vm10 = vweird.f32 %v3620_v1 }
 0x145   :  { %v901_v11 = vmul.f32 %v2945_v6, %v900_v31  ;;  %2958 = vrcp.f32 %v3622_v34  ;;  %v465_v31 = vadd.f32 %v3455_v36, %v3611_v53  ;;  %v924_v28 = vand.u32 2147483648, %v3622_v34 }
 0x146   :  { %v2951_v19 = vpop.eup %2950  ;;  %v864_v7 = vadd.f32 %v2943_v12, %v863_v0  ;;  %vm918_vm11 = vweird.f32 %v3622_v34 }
 0x147   :  { %v3626_v8 = vpop.eup %2952  ;;  %v902_v38 = vadd.f32 %v2945_v6, %v901_v11  ;;  %v3628_v56 = vadd.f32 1.0, %v2951_v19  ;;  %v850_v19 = vadd.f32 %v827_v20, %v465_v31 }
 0x148   :  { %v2955_v21 = vpop.eup %2954  ;;  %v868_v50 = vsel %vm867_vm4, %v2943_v12, %v864_v7  ;;  %v939_v32 = vmul.f32 %v3626_v8, %v3617_v57  ;;  %v886_v7 = vand.u32 2147483648, %v3620_v1  ;;  %vm944_vm13 = vweird.f32 %v3626_v8 }
 0x149   :  { %v873_v0 = vsel %vm870_vm5, %v872_v15, %v868_v50  ;;  %v906_v58 = vsel %vm905_vm6, %v2945_v6, %v902_v38  ;;  %2960 = vrcp.f32 %v3628_v56  ;;  %v884_v15 = vand.u32 2147483647, %v3620_v1  ;;  %vm945_vm2 = vmor %vm943_vm1, %vm944_vm13 }
 0x14a   :  { %v2957_v33 = vpop.eup %2956  ;;  %v911_v11 = vsel %vm908_vm7, %v910_v51, %v906_v58  ;;  %v970_v46 = vmul.f32 %v2955_v21, %v873_v0  ;;  %v940_v50 = vsub.f32 1.0, %v939_v32  ;;  %2962 = vtanh.f32 %v850_v19 }
 0x14b   :  { %v2959_v5 = vpop.eup %2958  ;;  %v968_v43 = vmul.f32 0.0, %v911_v11  ;;  %v876_v36 = vmul.f32 %v2957_v33, %v3620_v1  ;;  %vm881_vm8 = vweird.f32 %v2957_v33  ;;  %v922_v21 = vand.u32 2147483647, %v3622_v34 }
 0x14c   :  { %v914_v12 = vmul.f32 %v2959_v5, %v3622_v34  ;;  %vm919_vm9 = vweird.f32 %v2959_v5  ;;  %v925_v0 = vor.u32 1.1754944e-38, %v924_v28  ;;  %vm882_vm12 = vmor %vm880_vm10, %vm881_vm8  ;;  %v887_v58 = vor.u32 1.1754944e-38, %v886_v7 }
 0x14d   :  { %v3638_v44 = vadd.f32 %v970_v46, %v968_v43  ;;  %v877_v6 = vsub.f32 1.0, %v876_v36  ;;  %v941_v43 = vmul.f32 %v3626_v8, %v940_v50  ;;  %vm885_vm14 = vcmp.eq.f32.partialorder %v884_v15, 8.507059e+37  ;;  %vm920_vm15 = vmor %vm918_vm11, %vm919_vm9 }
 0x14e   :  { %v915_v25 = vsub.f32 1.0, %v914_v12  ;;  %vm923_vm0 = vcmp.eq.f32.partialorder %v922_v21, 8.507059e+37  ;;  %v949_v28 = vand.u32 2147483648, %v3617_v57  ;;  %vm958_vm4 = vweird.f32 %v3628_v56 }
 0x14f   :  { %v878_v51 = vmul.f32 %v2957_v33, %v877_v6  ;;  %v2961_v38 = vpop.eup %2960  ;;  %2964 = vtanh.f32 %v3638_v44  ;;  %v942_v34 = vadd.f32 %v3626_v8, %v941_v43  ;;  %v964_v43 = vand.u32 2147483648, %v3628_v56 }
 0x150   :  { %v916_v20 = vmul.f32 %v2959_v5, %v915_v25  ;;  %v954_v31 = vmul.f32 %v2961_v38, %v3628_v56  ;;  %v2963_v36 = vpop.eup %2962  ;;  %vm959_vm3 = vweird.f32 %v2961_v38  ;;  %v950_v21 = vor.u32 1.1754944e-38, %v949_v28 }
 0x151   :  { %v879_v46 = vadd.f32 %v2957_v33, %v878_v51  ;;  %vm960_vm6 = vmor %vm958_vm4, %vm959_vm3 }
 0x152   :  { %v917_v32 = vadd.f32 %v2959_v5, %v916_v20  ;;  %v955_v19 = vsub.f32 1.0, %v954_v31 }
 0x153   :  { %v883_v11 = vsel %vm882_vm12, %v2957_v33, %v879_v46  ;;  %v947_v33 = vand.u32 2147483647, %v3617_v57  ;;  %v962_v57 = vand.u32 2147483647, %v3628_v56  ;;  %v370_v56 = vadd.f32 %v3460_v39, %v3589_v24 }
 0x154   :  { %v888_v12 = vsel %vm885_vm14, %v887_v58, %v883_v11  ;;  %v921_v50 = vsel %vm920_vm15, %v2959_v5, %v917_v32  ;;  %v956_v25 = vmul.f32 %v2961_v38, %v955_v19  ;;  %v946_v5 = vsel %vm945_vm2, %v3626_v8, %v942_v34 }
 0x155   :  { %v926_v1 = vsel %vm923_vm0, %v925_v0, %v921_v50  ;;  %v971_v6 = vmul.f32 %v2963_v36, %v888_v12  ;;  %v2965_v20 = vpop.eup %2964  ;;  %vm948_vm5 = vcmp.eq.f32.partialorder %v947_v33, 8.507059e+37  ;;  %v965_v58 = vor.u32 1.1754944e-38, %v964_v43 }
 0x156   :  { %v969_v7 = vmul.f32 0.0, %v926_v1  ;;  %v957_v15 = vadd.f32 %v2961_v38, %v956_v25  ;;  %v951_v46 = vsel %vm948_vm5, %v950_v21, %v946_v5  ;;  %vm963_vm7 = vcmp.eq.f32.partialorder %v962_v57, 8.507059e+37  ;;  %v4296_v21 = vld [vmem:[#allocation13_spill] sm:$0xff]  ;;  %v4297_v57 = vld [vmem:[#allocation14_spill] sm:$0xff] }
 0x157   :  { %v976_v0 = vmul.f32 %v2965_v20, %v951_v46  ;;  %v4295_v20 = vld [vmem:[#allocation67_spill] sm:$0xff]  ;;  %v372_v46 = vadd.f32 %v4297_v57, %v3589_v24 }
 0x158   :  { %v3656_v51 = vadd.f32 %v971_v6, %v969_v7  ;;  %v961_v31 = vsel %vm960_vm6, %v2961_v38, %v957_v15  ;;  %v4294_v38 = vld [vmem:[#allocation11_spill] sm:$0xff]  ;;  %v517_v43 = vadd.f32 %v4296_v21, %v4295_v20 }
 0x159   :  { %v966_v8 = vsel %vm963_vm7, %v965_v58, %v961_v31  ;;  %v978_v19 = vpack.c.bf16 %v976_v0, %v976_v0  ;;  %v419_v25 = vadd.f32 %v4294_v38, %v3591_v29  ;;  %v4298_v31 = vld [vmem:[#allocation15_spill] sm:$0xff] }
 0x15a   :  { %2966 = vtanh.f32 %v3656_v51  ;;  %v421_v39 = vadd.f32 %v4298_v31, %v3591_v29 }
 0x15b   :  { %v993_v50 = vunpack.c.l.b16 %v978_v19 }
 0x160   :  { %v2967_v32 = vpop.eup %2966 }
 0x161   :  { %v977_v11 = vmul.f32 %v2967_v32, %v966_v8 }
 0x163   :  { %v979_v36 = vpack.c.bf16 %v977_v11, %v977_v11  ;;  %v2887_v12 = vpack.c.bf16 %v977_v11, %v976_v0 }
 0x165   :  { %2888 = vst [vmem:[%s4217_s4] sm:$0xff] %v2887_v12   ;;  %v994_v1 = vunpack.c.l.b16 %v979_v36 }
 0x167   :  { %v995_v6 = vpack.c.b16 %v994_v1, %v993_v50 }
 0x169   :  { %1005 = vmatmul.bf16.vlgmr.msra.gmra.mxu0 %v995_v6  ;;  %1019 = vmatmul.bf16.vlgmr.msra.gmra.mxu1 %v995_v6 }
 0x16a   :  { %1033 = vmatmul.bf16.vlgmr.msra.gmra.mxu2 %v995_v6  ;;  %1047 = vmatmul.bf16.vlgmr.msra.gmra.mxu3 %v995_v6 }
 0x16b   :  { %1417 = vmatpush.bf16.msra.mxu0 %v3283_v37  ;;  %1431 = vmatpush.bf16.msra.mxu1 %v3285_v41 }
 0x16c   :  { %1445 = vmatpush.bf16.msra.mxu2 %v3287_v47  ;;  %1459 = vmatpush.bf16.msra.mxu3 %v3290_v48 }
 0x16f   :  { %1418 = vmatpush.bf16.msra.mxu0 %v3292_v49  ;;  %1432 = vmatpush.bf16.msra.mxu1 %v3295_v52 }
 0x170   :  { %1446 = vmatpush.bf16.msra.mxu2 %v3298_v55  ;;  %1460 = vmatpush.bf16.msra.mxu3 %v3302_v59 }
 0x173   :  { %1419 = vmatpush.bf16.msra.mxu0 %v3304_v60  ;;  %1433 = vmatpush.bf16.msra.mxu1 %v3307_v63 }
 0x174   :  { %1447 = vmatpush.bf16.msra.mxu2 %v3310_v3  ;;  %1461 = vmatpush.bf16.msra.mxu3 %v3314_v4 }
 0x177   :  { %1420 = vmatpush.bf16.msra.mxu0 %v3322_v9  ;;  %1434 = vmatpush.bf16.msra.mxu1 %v3324_v13 }
 0x178   :  { %1448 = vmatpush.bf16.msra.mxu2 %v3329_v17  ;;  %1462 = vmatpush.bf16.msra.mxu3 %v3326_v14 }
 0x17b   :  { %1421 = vmatpush.bf16.msra.mxu0 %v3337_v22  ;;  %1435 = vmatpush.bf16.msra.mxu1 %v3339_v26 }
 0x17c   :  { %1449 = vmatpush.bf16.msra.mxu2 %v3344_v30  ;;  %1463 = vmatpush.bf16.msra.mxu3 %v3341_v27 }
 0x17f   :  { %1422 = vmatpush.bf16.msra.mxu0 %v3352_v35  ;;  %1436 = vmatpush.bf16.msra.mxu1 %v3354_v40 }
 0x180   :  { %1450 = vmatpush.bf16.msra.mxu2 %v3359_v45  ;;  %1464 = vmatpush.bf16.msra.mxu3 %v3356_v42 }
 0x183   :  { %1423 = vmatpush.bf16.msra.mxu0 %v3367_v54  ;;  %1437 = vmatpush.bf16.msra.mxu1 %v3369_v61 }
 0x184   :  { %1451 = vmatpush.bf16.msra.mxu2 %v3374_v2  ;;  %1465 = vmatpush.bf16.msra.mxu3 %v3371_v62 }
 0x187   :  { %1424 = vmatpush.bf16.msra.mxu0 %v3382_v10  ;;  %1438 = vmatpush.bf16.msra.mxu1 %v3384_v16 }
 0x188   :  { %1452 = vmatpush.bf16.msra.mxu2 %v3400_v23  ;;  %1466 = vmatpush.bf16.msra.mxu3 %v3386_v18 }
 0x1e6   :  { %v1006_v34 = vpop.f32.mrf.mxu0  ;;  %v1020_v28 = vpop.f32.mrf.mxu1 }
 0x1e7   :  { %v1053_v7 = vadd.f32 %v1006_v34, %v370_v56  ;;  %v1054_v33 = vadd.f32 %v1020_v28, %v419_v25  ;;  %v4299_v34 = vld [vmem:[#allocation17_spill] sm:$0xff] }
 0x1e8   :  { %v519_v28 = vadd.f32 %v4299_v34, %v4295_v20 }
 0x1e9   :  { %v2756_v5 = vmul.f32 -1.442695, %v1053_v7  ;;  %v2758_v15 = vmul.f32 -1.442695, %v1054_v33  ;;  %v4300_v33 = vld [vmem:[#allocation12_spill] sm:$0xff] }
 0x1eb   :  { %2968 = vpow2.f32 %v2756_v5  ;;  %v468_v5 = vadd.f32 %v4300_v33, %v3611_v53 }
 0x1ec   :  { %2970 = vpow2.f32 %v2758_v15 }
 0x1ed   :  { %v1048_v0 = vpop.f32.mrf.mxu3  ;;  %v1034_v25 = vpop.f32.mrf.mxu2 }
 0x1ee   :  { %v1056_v58 = vadd.f32 %v1048_v0, %v517_v43  ;;  %v1008_v32 = vpop.f32.mrf.mxu0  ;;  %v1022_v8 = vpop.f32.mrf.mxu1  ;;  %v1055_v57 = vadd.f32 %v1034_v25, %v468_v5 }
 0x1ef   :  { %v1057_v11 = vadd.f32 %v1008_v32, %v372_v46  ;;  %v1058_v19 = vadd.f32 %v1022_v8, %v421_v39 }
 0x1f0   :  { %v2760_v36 = vmul.f32 -1.442695, %v1056_v58 }
 0x1f1   :  { %v2969_v12 = vpop.eup %2968  ;;  %v2757_v50 = vmul.f32 -1.442695, %v1057_v11  ;;  %v2759_v56 = vmul.f32 -1.442695, %v1058_v19  ;;  %v4301_v19 = vld [vmem:[#allocation16_spill] sm:$0xff] }
 0x1f2   :  { %v2971_v1 = vpop.eup %2970  ;;  %v1067_v6 = vadd.f32 1.0, %v2969_v12  ;;  %2972 = vpow2.f32 %v2760_v36  ;;  %v470_v36 = vadd.f32 %v4301_v19, %v3611_v53 }
 0x1f3   :  { %v1105_v38 = vadd.f32 1.0, %v2971_v1  ;;  %2974 = vpow2.f32 %v2757_v50 }
 0x1f4   :  { %2976 = vrcp.f32 %v1067_v6  ;;  %v1078_v25 = vand.u32 2147483647, %v1067_v6  ;;  %v1080_v34 = vand.u32 2147483648, %v1067_v6  ;;  %vm1074_vm10 = vweird.f32 %v1067_v6 }
 0x1f5   :  { %2978 = vrcp.f32 %v1105_v38  ;;  %v1050_v7 = vpop.f32.mrf.mxu3  ;;  %v1036_v1 = vpop.f32.mrf.mxu2  ;;  %v1116_v5 = vand.u32 2147483647, %v1105_v38  ;;  %vm1112_vm11 = vweird.f32 %v1105_v38 }
 0x1f6   :  { %2980 = vpow2.f32 %v2759_v56  ;;  %v1060_v15 = vadd.f32 %v1050_v7, %v519_v28  ;;  %v1118_v28 = vand.u32 2147483648, %v1105_v38  ;;  %vm1079_vm13 = vcmp.eq.f32.partialorder %v1078_v25, 8.507059e+37 }
 0x1f7   :  { %vm1117_vm15 = vcmp.eq.f32.partialorder %v1116_v5, 8.507059e+37 }
 0x1f8   :  { %v2973_v21 = vpop.eup %2972  ;;  %v2761_v0 = vmul.f32 -1.442695, %v1060_v15  ;;  %v1059_v15 = vadd.f32 %v1036_v1, %v470_v36 }
 0x1f9   :  { %v2975_v43 = vpop.eup %2974  ;;  %v3712_v46 = vadd.f32 1.0, %v2973_v21 }
 0x1fa   :  { %v2977_v31 = vpop.eup %2976  ;;  %v3714_v39 = vadd.f32 1.0, %v2975_v43 }
 0x1fb   :  { %v2979_v58 = vpop.eup %2978  ;;  %v1070_v32 = vmul.f32 %v2977_v31, %v1067_v6  ;;  %2982 = vrcp.f32 %v3712_v46  ;;  %vm1075_vm8 = vweird.f32 %v2977_v31 }
 0x1fc   :  { %v2981_v8 = vpop.eup %2980  ;;  %v1108_v11 = vmul.f32 %v2979_v58, %v1105_v38  ;;  %2984 = vrcp.f32 %v3714_v39  ;;  %vm1113_vm9 = vweird.f32 %v2979_v58  ;;  %vm1076_vm12 = vmor %vm1074_vm10, %vm1075_vm8  ;;  %vm1089_vm1 = vweird.f32 %v3714_v39 }
 0x1fd   :  { %v1071_v12 = vsub.f32 1.0, %v1070_v32  ;;  %2986 = vtanh.f32 %v1055_v57  ;;  %v3720_v50 = vadd.f32 1.0, %v2981_v8  ;;  %v1081_v32 = vor.u32 1.1754944e-38, %v1080_v34  ;;  %vm1114_vm14 = vmor %vm1112_vm11, %vm1113_vm9 }
 0x1fe   :  { %v1109_v56 = vsub.f32 1.0, %v1108_v11  ;;  %2988 = vpow2.f32 %v2761_v0  ;;  %v1119_v11 = vor.u32 1.1754944e-38, %v1118_v28  ;;  %vm1152_vm9 = vweird.f32 %v3712_v46 }
 0x1ff   :  { %v1072_v7 = vmul.f32 %v2977_v31, %v1071_v12  ;;  %2990 = vrcp.f32 %v3720_v50  ;;  %vm1127_vm5 = vweird.f32 %v3720_v50 }
 0x200   :  { %v1110_v33 = vmul.f32 %v2979_v58, %v1109_v56  ;;  %2992 = vtanh.f32 %v1059_v15 }
 0x201   :  { %v3723_v21 = vpop.eup %2982  ;;  %v1073_v43 = vadd.f32 %v2977_v31, %v1072_v7 }
 0x202   :  { %v2985_v57 = vpop.eup %2984  ;;  %v1111_v8 = vadd.f32 %v2979_v58, %v1110_v33  ;;  %v1148_v12 = vmul.f32 %v3723_v21, %v3712_v46  ;;  %vm1153_vm8 = vweird.f32 %v3723_v21 }
 0x203   :  { %v2987_v0 = vpop.eup %2986  ;;  %v1077_v19 = vsel %vm1076_vm12, %v2977_v31, %v1073_v43  ;;  %v1085_v56 = vmul.f32 %v2985_v57, %v3714_v39  ;;  %v1093_v31 = vand.u32 2147483647, %v3714_v39  ;;  %v1095_v43 = vand.u32 2147483648, %v3714_v39  ;;  %vm1154_vm10 = vmor %vm1152_vm9, %vm1153_vm8 }
 0x204   :  { %v2989_v36 = vpop.eup %2988  ;;  %v1082_v1 = vsel %vm1079_vm13, %v1081_v32, %v1077_v19  ;;  %v1115_v53 = vsel %vm1114_vm14, %v2979_v58, %v1111_v8  ;;  %v1149_v20 = vsub.f32 1.0, %v1148_v12  ;;  %vm1090_vm0 = vweird.f32 %v2985_v57 }
 0x205   :  { %v2991_v6 = vpop.eup %2990  ;;  %v1120_v38 = vsel %vm1117_vm15, %v1119_v11, %v1115_v53  ;;  %v1179_v7 = vmul.f32 %v2987_v0, %v1082_v1  ;;  %v1086_v25 = vsub.f32 1.0, %v1085_v56  ;;  %v1146_v34 = vadd.f32 1.0, %v2989_v36  ;;  %vm1091_vm3 = vmor %vm1089_vm1, %vm1090_vm0 }
 0x206   :  { %v1177_v33 = vmul.f32 %v1120_v38, %v3638_v44  ;;  %v1123_v28 = vmul.f32 %v2991_v6, %v3720_v50  ;;  %v1133_v53 = vand.u32 2147483648, %v3720_v50  ;;  %v1131_v44 = vand.u32 2147483647, %v3720_v50  ;;  %v2993_v32 = vpop.eup %2992 }
 0x207   :  { %v1087_v29 = vmul.f32 %v2985_v57, %v1086_v25  ;;  %2994 = vrcp.f32 %v1146_v34  ;;  %vm1128_vm2 = vweird.f32 %v2991_v6  ;;  %v1096_v0 = vor.u32 1.1754944e-38, %v1095_v43 }
 0x208   :  { %v3732_v58 = vadd.f32 %v1179_v7, %v1177_v33  ;;  %v1124_v5 = vsub.f32 1.0, %v1123_v28  ;;  %v1150_v11 = vmul.f32 %v3723_v21, %v1149_v20  ;;  %vm1094_vm4 = vcmp.eq.f32.partialorder %v1093_v31, 8.507059e+37  ;;  %vm1129_vm6 = vmor %vm1127_vm5, %vm1128_vm2 }
 0x209   :  { %v1088_v15 = vadd.f32 %v2985_v57, %v1087_v29  ;;  %v1134_v29 = vor.u32 1.1754944e-38, %v1133_v53  ;;  %vm1132_vm7 = vcmp.eq.f32.partialorder %v1131_v44, 8.507059e+37  ;;  %v1156_v33 = vand.u32 2147483647, %v3712_v46 }
 0x20a   :  { %v1125_v8 = vmul.f32 %v2991_v6, %v1124_v5  ;;  %2996 = vtanh.f32 %v3732_v58  ;;  %v1151_v20 = vadd.f32 %v3723_v21, %v1150_v11  ;;  %v1173_v53 = vand.u32 2147483648, %v1146_v34 }
 0x20b   :  { %v1092_v19 = vsel %vm1091_vm3, %v2985_v57, %v1088_v15  ;;  %v1158_v57 = vand.u32 2147483648, %v3712_v46  ;;  %vm1167_vm12 = vweird.f32 %v1146_v34  ;;  %vm1157_vm13 = vcmp.eq.f32.partialorder %v1156_v33, 8.507059e+37 }
 0x20c   :  { %v1097_v12 = vsel %vm1094_vm4, %v1096_v0, %v1092_v19  ;;  %v1126_v56 = vadd.f32 %v2991_v6, %v1125_v8  ;;  %v1155_v31 = vsel %vm1154_vm10, %v3723_v21, %v1151_v20  ;;  %v1174_v8 = vor.u32 1.1754944e-38, %v1173_v53 }
 0x20d   :  { %v2995_v36 = vpop.eup %2994  ;;  %v1180_v1 = vmul.f32 %v2993_v32, %v1097_v12  ;;  %v1159_v5 = vor.u32 1.1754944e-38, %v1158_v57 }
 0x20e   :  { %v1130_v39 = vsel %vm1129_vm6, %v2991_v6, %v1126_v56  ;;  %v1163_v38 = vmul.f32 %v2995_v36, %v1146_v34  ;;  %vm1168_vm11 = vweird.f32 %v2995_v36 }
 0x20f   :  { %v1135_v7 = vsel %vm1132_vm7, %v1134_v29, %v1130_v39  ;;  %vm1169_vm14 = vmor %vm1167_vm12, %vm1168_vm11  ;;  %v1160_v44 = vsel %vm1157_vm13, %v1159_v5, %v1155_v31  ;;  %v4306_v5 = vld [vmem:[#allocation21_spill] sm:$0xff] }
 0x210   :  { %v1178_v50 = vmul.f32 %v1135_v7, %v3656_v51  ;;  %v1164_v25 = vsub.f32 1.0, %v1163_v38  ;;  %v2997_v43 = vpop.eup %2996  ;;  %v1171_v51 = vand.u32 2147483647, %v1146_v34  ;;  %v4302_v34 = vld [vmem:[#allocation18_spill] sm:$0xff]  ;;  %v4303_v38 = vld [vmem:[#allocation64_spill] sm:$0xff]  ;;  %v4304_v7 = vld [vmem:[#allocation19_spill] sm:$0xff] }
 0x211   :  { %v1185_v46 = vmul.f32 %v2997_v43, %v1160_v44  ;;  %v424_v20 = vadd.f32 %v4304_v7, %v4303_v38  ;;  %v4305_v43 = vld [vmem:[#allocation67_spill] sm:$0xff] }
 0x212   :  { %v3746_v28 = vadd.f32 %v1180_v1, %v1178_v50  ;;  %v1165_v6 = vmul.f32 %v2995_v36, %v1164_v25  ;;  %vm1172_vm15 = vcmp.eq.f32.partialorder %v1171_v51, 8.507059e+37  ;;  %v522_v53 = vadd.f32 %v4306_v5, %v4305_v43  ;;  %v4308_v44 = vld [vmem:[#allocation23_spill] sm:$0xff] }
 0x213   :  { %v1187_v12 = vpack.c.bf16 %v1185_v46, %v1185_v46 }
 0x214   :  { %2998 = vtanh.f32 %v3746_v28  ;;  %v1166_v15 = vadd.f32 %v2995_v36, %v1165_v6 }
 0x215   :  { %v1203_v29 = vunpack.c.l.b16 %v1187_v12 }
 0x216   :  { %v1170_v32 = vsel %vm1169_vm14, %v2995_v36, %v1166_v15  ;;  %v375_v36 = vadd.f32 %v4302_v34, %v3589_v24  ;;  %v4307_v15 = vld [vmem:[#allocation22_spill] sm:$0xff] }
 0x217   :  { %v1175_v11 = vsel %vm1172_vm15, %v1174_v8, %v1170_v32  ;;  %v377_v51 = vadd.f32 %v4307_v15, %v3589_v24  ;;  %v426_v32 = vadd.f32 %v4308_v44, %v4303_v38 }
 0x21a   :  { %v2999_v0 = vpop.eup %2998 }
 0x21b   :  { %v1186_v19 = vmul.f32 %v2999_v0, %v1175_v11 }
 0x21d   :  { %v1188_v21 = vpack.c.bf16 %v1186_v19, %v1186_v19  ;;  %v2892_v56 = vpack.c.bf16 %v1186_v19, %v1185_v46 }
 0x21f   :  { %2924 = vst [vmem:[%s4217_s4 + $0x8] sm:$0xff] %v2892_v56   ;;  %v1204_v39 = vunpack.c.l.b16 %v1188_v21 }
 0x221   :  { %v1205_v1 = vpack.c.b16 %v1204_v39, %v1203_v29 }
 0x223   :  { %1215 = vmatmul.bf16.vlgmr.msrb.gmra.mxu0 %v1205_v1  ;;  %1229 = vmatmul.bf16.vlgmr.msrb.gmra.mxu1 %v1205_v1 }
 0x224   :  { %1243 = vmatmul.bf16.vlgmr.msrb.gmra.mxu2 %v1205_v1  ;;  %1257 = vmatmul.bf16.vlgmr.msrb.gmra.mxu3 %v1205_v1 }
 0x225   :  { %1627 = vmatpush.bf16.msrb.mxu0 %v3283_v37  ;;  %1641 = vmatpush.bf16.msrb.mxu1 %v3285_v41 }
 0x226   :  { %1655 = vmatpush.bf16.msrb.mxu2 %v3287_v47  ;;  %1669 = vmatpush.bf16.msrb.mxu3 %v3290_v48 }
 0x229   :  { %1628 = vmatpush.bf16.msrb.mxu0 %v3292_v49  ;;  %1642 = vmatpush.bf16.msrb.mxu1 %v3295_v52 }
 0x22a   :  { %1656 = vmatpush.bf16.msrb.mxu2 %v3298_v55  ;;  %1670 = vmatpush.bf16.msrb.mxu3 %v3302_v59 }
 0x22d   :  { %1629 = vmatpush.bf16.msrb.mxu0 %v3304_v60  ;;  %1643 = vmatpush.bf16.msrb.mxu1 %v3307_v63 }
 0x22e   :  { %1657 = vmatpush.bf16.msrb.mxu2 %v3310_v3  ;;  %1671 = vmatpush.bf16.msrb.mxu3 %v3314_v4 }
 0x231   :  { %1630 = vmatpush.bf16.msrb.mxu0 %v3322_v9  ;;  %1644 = vmatpush.bf16.msrb.mxu1 %v3324_v13 }
 0x232   :  { %1658 = vmatpush.bf16.msrb.mxu2 %v3329_v17  ;;  %1672 = vmatpush.bf16.msrb.mxu3 %v3326_v14 }
 0x235   :  { %1631 = vmatpush.bf16.msrb.mxu0 %v3337_v22  ;;  %1645 = vmatpush.bf16.msrb.mxu1 %v3339_v26 }
 0x236   :  { %1659 = vmatpush.bf16.msrb.mxu2 %v3344_v30  ;;  %1673 = vmatpush.bf16.msrb.mxu3 %v3341_v27 }
 0x239   :  { %1632 = vmatpush.bf16.msrb.mxu0 %v3352_v35  ;;  %1646 = vmatpush.bf16.msrb.mxu1 %v3354_v40 }
 0x23a   :  { %1660 = vmatpush.bf16.msrb.mxu2 %v3359_v45  ;;  %1674 = vmatpush.bf16.msrb.mxu3 %v3356_v42 }
 0x23d   :  { %1633 = vmatpush.bf16.msrb.mxu0 %v3367_v54  ;;  %1647 = vmatpush.bf16.msrb.mxu1 %v3369_v61 }
 0x23e   :  { %1661 = vmatpush.bf16.msrb.mxu2 %v3374_v2  ;;  %1675 = vmatpush.bf16.msrb.mxu3 %v3371_v62 }
 0x241   :  { %1634 = vmatpush.bf16.msrb.mxu0 %v3382_v10  ;;  %1648 = vmatpush.bf16.msrb.mxu1 %v3384_v16 }
 0x242   :  { %1662 = vmatpush.bf16.msrb.mxu2 %v3400_v23  ;;  %1676 = vmatpush.bf16.msrb.mxu3 %v3386_v18 }
 0x2a0   :  { %v1216_v57 = vpop.f32.mrf.mxu0  ;;  %v1230_v50 = vpop.f32.mrf.mxu1 }
 0x2a1   :  { %v1263_v25 = vadd.f32 %v1216_v57, %v375_v36  ;;  %v1264_v33 = vadd.f32 %v1230_v50, %v424_v20  ;;  %v4309_v20 = vld [vmem:[#allocation25_spill] sm:$0xff] }
 0x2a2   :  { %v524_v57 = vadd.f32 %v4309_v20, %v4305_v43 }
 0x2a3   :  { %v2764_v6 = vmul.f32 -1.442695, %v1263_v25  ;;  %v2766_v31 = vmul.f32 -1.442695, %v1264_v33  ;;  %v4310_v25 = vld [vmem:[#allocation69_spill] sm:$0xff]  ;;  %v4311_v33 = vld [vmem:[#allocation20_spill] sm:$0xff] }
 0x2a5   :  { %3000 = vpow2.f32 %v2764_v6  ;;  %v473_v6 = vadd.f32 %v4311_v33, %v4310_v25 }
 0x2a6   :  { %3002 = vpow2.f32 %v2766_v31 }
 0x2a7   :  { %v1258_v46 = vpop.f32.mrf.mxu3  ;;  %v1244_v7 = vpop.f32.mrf.mxu2 }
 0x2a8   :  { %v1266_v8 = vadd.f32 %v1258_v46, %v522_v53  ;;  %v1218_v0 = vpop.f32.mrf.mxu0  ;;  %v1232_v11 = vpop.f32.mrf.mxu1  ;;  %v1265_v15 = vadd.f32 %v1244_v7, %v473_v6 }
 0x2a9   :  { %v1267_v19 = vadd.f32 %v1218_v0, %v377_v51  ;;  %v1268_v12 = vadd.f32 %v1232_v11, %v426_v32 }
 0x2aa   :  { %v2768_v21 = vmul.f32 -1.442695, %v1266_v8 }
 0x2ab   :  { %v3001_v56 = vpop.eup %3000  ;;  %v2765_v29 = vmul.f32 -1.442695, %v1267_v19  ;;  %v2767_v34 = vmul.f32 -1.442695, %v1268_v12  ;;  %v4312_v12 = vld [vmem:[#allocation24_spill] sm:$0xff] }
 0x2ac   :  { %v3003_v39 = vpop.eup %3002  ;;  %v1277_v1 = vadd.f32 1.0, %v3001_v56  ;;  %3004 = vpow2.f32 %v2768_v21  ;;  %v475_v21 = vadd.f32 %v4312_v12, %v4310_v25 }
 0x2ad   :  { %v1315_v36 = vadd.f32 1.0, %v3003_v39  ;;  %3006 = vpow2.f32 %v2765_v29 }
 0x2ae   :  { %3008 = vrcp.f32 %v1277_v1  ;;  %v1288_v7 = vand.u32 2147483647, %v1277_v1  ;;  %v1290_v20 = vand.u32 2147483648, %v1277_v1  ;;  %vm1284_vm2 = vweird.f32 %v1277_v1 }
 0x2af   :  { %3010 = vrcp.f32 %v1315_v36  ;;  %v1260_v50 = vpop.f32.mrf.mxu3  ;;  %v1246_v39 = vpop.f32.mrf.mxu2  ;;  %v1326_v6 = vand.u32 2147483647, %v1315_v36  ;;  %vm1322_vm3 = vweird.f32 %v1315_v36 }
 0x2b0   :  { %3012 = vpow2.f32 %v2767_v34  ;;  %v1270_v31 = vadd.f32 %v1260_v50, %v524_v57  ;;  %v1328_v57 = vand.u32 2147483648, %v1315_v36  ;;  %vm1289_vm5 = vcmp.eq.f32.partialorder %v1288_v7, 8.507059e+37 }
 0x2b1   :  { %vm1327_vm7 = vcmp.eq.f32.partialorder %v1326_v6, 8.507059e+37 }
 0x2b2   :  { %v3005_v5 = vpop.eup %3004  ;;  %v2769_v46 = vmul.f32 -1.442695, %v1270_v31  ;;  %v1269_v31 = vadd.f32 %v1246_v39, %v475_v21 }
 0x2b3   :  { %v3007_v53 = vpop.eup %3006  ;;  %v3799_v51 = vadd.f32 1.0, %v3005_v5 }
 0x2b4   :  { %v3009_v44 = vpop.eup %3008  ;;  %v3801_v32 = vadd.f32 1.0, %v3007_v53 }
 0x2b5   :  { %v3011_v8 = vpop.eup %3010  ;;  %v1280_v0 = vmul.f32 %v3009_v44, %v1277_v1  ;;  %3014 = vrcp.f32 %v3799_v51  ;;  %vm1285_vm0 = vweird.f32 %v3009_v44 }
 0x2b6   :  { %v3013_v11 = vpop.eup %3012  ;;  %v1318_v19 = vmul.f32 %v3011_v8, %v1315_v36  ;;  %3016 = vrcp.f32 %v3801_v32  ;;  %vm1323_vm1 = vweird.f32 %v3011_v8  ;;  %vm1286_vm4 = vmor %vm1284_vm2, %vm1285_vm0  ;;  %vm1299_vm9 = vweird.f32 %v3801_v32 }
 0x2b7   :  { %v1281_v56 = vsub.f32 1.0, %v1280_v0  ;;  %3018 = vtanh.f32 %v1265_v15  ;;  %v3807_v29 = vadd.f32 1.0, %v3013_v11  ;;  %v1291_v0 = vor.u32 1.1754944e-38, %v1290_v20  ;;  %vm1324_vm6 = vmor %vm1322_vm3, %vm1323_vm1 }
 0x2b8   :  { %v1319_v34 = vsub.f32 1.0, %v1318_v19  ;;  %3020 = vpow2.f32 %v2769_v46  ;;  %v1329_v19 = vor.u32 1.1754944e-38, %v1328_v57  ;;  %vm1362_vm1 = vweird.f32 %v3799_v51 }
 0x2b9   :  { %v1282_v50 = vmul.f32 %v3009_v44, %v1281_v56  ;;  %3022 = vrcp.f32 %v3807_v29  ;;  %vm1337_vm13 = vweird.f32 %v3807_v29 }
 0x2ba   :  { %v1320_v33 = vmul.f32 %v3011_v8, %v1319_v34  ;;  %3024 = vtanh.f32 %v1269_v31 }
 0x2bb   :  { %v3810_v5 = vpop.eup %3014  ;;  %v1283_v53 = vadd.f32 %v3009_v44, %v1282_v50 }
 0x2bc   :  { %v3017_v15 = vpop.eup %3016  ;;  %v1321_v11 = vadd.f32 %v3011_v8, %v1320_v33  ;;  %v1358_v56 = vmul.f32 %v3810_v5, %v3799_v51  ;;  %vm1363_vm0 = vweird.f32 %v3810_v5 }
 0x2bd   :  { %v3019_v46 = vpop.eup %3018  ;;  %v1287_v12 = vsel %vm1286_vm4, %v3009_v44, %v1283_v53  ;;  %v1295_v34 = vmul.f32 %v3017_v15, %v3801_v32  ;;  %v1303_v44 = vand.u32 2147483647, %v3801_v32  ;;  %v1305_v53 = vand.u32 2147483648, %v3801_v32  ;;  %vm1364_vm2 = vmor %vm1362_vm1, %vm1363_vm0 }
 0x2be   :  { %v3021_v21 = vpop.eup %3020  ;;  %v1292_v39 = vsel %vm1289_vm5, %v1291_v0, %v1287_v12  ;;  %v1325_v25 = vsel %vm1324_vm6, %v3011_v8, %v1321_v11  ;;  %v1359_v43 = vsub.f32 1.0, %v1358_v56  ;;  %vm1300_vm8 = vweird.f32 %v3017_v15 }
 0x2bf   :  { %v3023_v1 = vpop.eup %3022  ;;  %v1330_v36 = vsel %vm1327_vm7, %v1329_v19, %v1325_v25  ;;  %v1389_v50 = vmul.f32 %v3019_v46, %v1292_v39  ;;  %v1296_v7 = vsub.f32 1.0, %v1295_v34  ;;  %v1356_v20 = vadd.f32 1.0, %v3021_v21  ;;  %vm1301_vm11 = vmor %vm1299_vm9, %vm1300_vm8 }
 0x2c0   :  { %v1387_v33 = vmul.f32 %v1330_v36, %v3732_v58  ;;  %v1333_v57 = vmul.f32 %v3023_v1, %v3807_v29  ;;  %v1343_v25 = vand.u32 2147483648, %v3807_v29  ;;  %v1341_v58 = vand.u32 2147483647, %v3807_v29  ;;  %v3025_v0 = vpop.eup %3024 }
 0x2c1   :  { %v1297_v38 = vmul.f32 %v3017_v15, %v1296_v7  ;;  %3026 = vrcp.f32 %v1356_v20  ;;  %vm1338_vm10 = vweird.f32 %v3023_v1  ;;  %v1306_v46 = vor.u32 1.1754944e-38, %v1305_v53 }
 0x2c2   :  { %v3819_v8 = vadd.f32 %v1389_v50, %v1387_v33  ;;  %v1334_v6 = vsub.f32 1.0, %v1333_v57  ;;  %v1360_v19 = vmul.f32 %v3810_v5, %v1359_v43  ;;  %vm1304_vm12 = vcmp.eq.f32.partialorder %v1303_v44, 8.507059e+37  ;;  %vm1339_vm14 = vmor %vm1337_vm13, %vm1338_vm10 }
 0x2c3   :  { %v1298_v31 = vadd.f32 %v3017_v15, %v1297_v38  ;;  %v1344_v38 = vor.u32 1.1754944e-38, %v1343_v25  ;;  %vm1342_vm15 = vcmp.eq.f32.partialorder %v1341_v58, 8.507059e+37  ;;  %v1366_v33 = vand.u32 2147483647, %v3799_v51 }
 0x2c4   :  { %v1335_v11 = vmul.f32 %v3023_v1, %v1334_v6  ;;  %3028 = vtanh.f32 %v3819_v8  ;;  %v1361_v43 = vadd.f32 %v3810_v5, %v1360_v19  ;;  %v1383_v25 = vand.u32 2147483648, %v1356_v20 }
 0x2c5   :  { %v1302_v12 = vsel %vm1301_vm11, %v3017_v15, %v1298_v31  ;;  %v1368_v15 = vand.u32 2147483648, %v3799_v51  ;;  %vm1377_vm4 = vweird.f32 %v1356_v20  ;;  %vm1367_vm5 = vcmp.eq.f32.partialorder %v1366_v33, 8.507059e+37 }
 0x2c6   :  { %v1307_v56 = vsel %vm1304_vm12, %v1306_v46, %v1302_v12  ;;  %v1336_v34 = vadd.f32 %v3023_v1, %v1335_v11  ;;  %v1365_v44 = vsel %vm1364_vm2, %v3810_v5, %v1361_v43  ;;  %v1384_v11 = vor.u32 1.1754944e-38, %v1383_v25 }
 0x2c7   :  { %v3027_v21 = vpop.eup %3026  ;;  %v1390_v39 = vmul.f32 %v3025_v0, %v1307_v56  ;;  %v1369_v6 = vor.u32 1.1754944e-38, %v1368_v15 }
 0x2c8   :  { %v1340_v32 = vsel %vm1339_vm14, %v3023_v1, %v1336_v34  ;;  %v1373_v36 = vmul.f32 %v3027_v21, %v1356_v20  ;;  %vm1378_vm3 = vweird.f32 %v3027_v21 }
 0x2c9   :  { %v1345_v50 = vsel %vm1342_vm15, %v1344_v38, %v1340_v32  ;;  %vm1379_vm6 = vmor %vm1377_vm4, %vm1378_vm3  ;;  %v1370_v58 = vsel %vm1367_vm5, %v1369_v6, %v1365_v44  ;;  %v4317_v6 = vld [vmem:[#allocation29_spill] sm:$0xff] }
 0x2ca   :  { %v1388_v29 = vmul.f32 %v1345_v50, %v3746_v28  ;;  %v1374_v7 = vsub.f32 1.0, %v1373_v36  ;;  %v3029_v53 = vpop.eup %3028  ;;  %v1381_v28 = vand.u32 2147483647, %v1356_v20  ;;  %v4313_v20 = vld [vmem:[#allocation26_spill] sm:$0xff]  ;;  %v4314_v36 = vld [vmem:[#allocation64_spill] sm:$0xff]  ;;  %v4315_v50 = vld [vmem:[#allocation27_spill] sm:$0xff] }
 0x2cb   :  { %v1395_v51 = vmul.f32 %v3029_v53, %v1370_v58  ;;  %v429_v43 = vadd.f32 %v4315_v50, %v4314_v36  ;;  %v4316_v53 = vld [vmem:[#allocation67_spill] sm:$0xff] }
 0x2cc   :  { %v3833_v57 = vadd.f32 %v1390_v39, %v1388_v29  ;;  %v1375_v1 = vmul.f32 %v3027_v21, %v1374_v7  ;;  %vm1382_vm7 = vcmp.eq.f32.partialorder %v1381_v28, 8.507059e+37  ;;  %v527_v25 = vadd.f32 %v4317_v6, %v4316_v53  ;;  %v4319_v58 = vld [vmem:[#allocation31_spill] sm:$0xff] }
 0x2cd   :  { %v1397_v56 = vpack.c.bf16 %v1395_v51, %v1395_v51 }
 0x2ce   :  { %3030 = vtanh.f32 %v3833_v57  ;;  %v1376_v31 = vadd.f32 %v3027_v21, %v1375_v1 }
 0x2cf   :  { %v1413_v38 = vunpack.c.l.b16 %v1397_v56 }
 0x2d0   :  { %v1380_v0 = vsel %vm1379_vm6, %v3027_v21, %v1376_v31  ;;  %v380_v21 = vadd.f32 %v4313_v20, %v3589_v24  ;;  %v4318_v31 = vld [vmem:[#allocation30_spill] sm:$0xff] }
 0x2d1   :  { %v1385_v19 = vsel %vm1382_vm7, %v1384_v11, %v1380_v0  ;;  %v382_v28 = vadd.f32 %v4318_v31, %v3589_v24  ;;  %v431_v0 = vadd.f32 %v4319_v58, %v4314_v36 }
 0x2d4   :  { %v3031_v46 = vpop.eup %3030 }
 0x2d5   :  { %v1396_v12 = vmul.f32 %v3031_v46, %v1385_v19 }
 0x2d7   :  { %v1398_v5 = vpack.c.bf16 %v1396_v12, %v1396_v12  ;;  %v2897_v34 = vpack.c.bf16 %v1396_v12, %v1395_v51 }
 0x2d9   :  { %2925 = vst [vmem:[%s4217_s4 + $0x10] sm:$0xff] %v2897_v34   ;;  %v1414_v32 = vunpack.c.l.b16 %v1398_v5 }
 0x2db   :  { %v1415_v39 = vpack.c.b16 %v1414_v32, %v1413_v38 }
 0x2dd   :  { %1425 = vmatmul.bf16.vlgmr.msra.gmra.mxu0 %v1415_v39  ;;  %1439 = vmatmul.bf16.vlgmr.msra.gmra.mxu1 %v1415_v39 }
 0x2de   :  { %1453 = vmatmul.bf16.vlgmr.msra.gmra.mxu2 %v1415_v39  ;;  %1467 = vmatmul.bf16.vlgmr.msra.gmra.mxu3 %v1415_v39 }
 0x2df   :  { %1837 = vmatpush.bf16.msra.mxu0 %v3283_v37  ;;  %1851 = vmatpush.bf16.msra.mxu1 %v3285_v41 }
 0x2e0   :  { %1865 = vmatpush.bf16.msra.mxu2 %v3287_v47  ;;  %1879 = vmatpush.bf16.msra.mxu3 %v3290_v48 }
 0x2e3   :  { %1838 = vmatpush.bf16.msra.mxu0 %v3292_v49  ;;  %1852 = vmatpush.bf16.msra.mxu1 %v3295_v52 }
 0x2e4   :  { %1866 = vmatpush.bf16.msra.mxu2 %v3298_v55  ;;  %1880 = vmatpush.bf16.msra.mxu3 %v3302_v59 }
 0x2e7   :  { %1839 = vmatpush.bf16.msra.mxu0 %v3304_v60  ;;  %1853 = vmatpush.bf16.msra.mxu1 %v3307_v63 }
 0x2e8   :  { %1867 = vmatpush.bf16.msra.mxu2 %v3310_v3  ;;  %1881 = vmatpush.bf16.msra.mxu3 %v3314_v4 }
 0x2eb   :  { %1840 = vmatpush.bf16.msra.mxu0 %v3322_v9  ;;  %1854 = vmatpush.bf16.msra.mxu1 %v3324_v13 }
 0x2ec   :  { %1868 = vmatpush.bf16.msra.mxu2 %v3329_v17  ;;  %1882 = vmatpush.bf16.msra.mxu3 %v3326_v14 }
 0x2ef   :  { %1841 = vmatpush.bf16.msra.mxu0 %v3337_v22  ;;  %1855 = vmatpush.bf16.msra.mxu1 %v3339_v26 }
 0x2f0   :  { %1869 = vmatpush.bf16.msra.mxu2 %v3344_v30  ;;  %1883 = vmatpush.bf16.msra.mxu3 %v3341_v27 }
 0x2f3   :  { %1842 = vmatpush.bf16.msra.mxu0 %v3352_v35  ;;  %1856 = vmatpush.bf16.msra.mxu1 %v3354_v40 }
 0x2f4   :  { %1870 = vmatpush.bf16.msra.mxu2 %v3359_v45  ;;  %1884 = vmatpush.bf16.msra.mxu3 %v3356_v42 }
 0x2f7   :  { %1843 = vmatpush.bf16.msra.mxu0 %v3367_v54  ;;  %1857 = vmatpush.bf16.msra.mxu1 %v3369_v61 }
 0x2f8   :  { %1871 = vmatpush.bf16.msra.mxu2 %v3374_v2  ;;  %1885 = vmatpush.bf16.msra.mxu3 %v3371_v62 }
 0x2fb   :  { %1844 = vmatpush.bf16.msra.mxu0 %v3382_v10  ;;  %1858 = vmatpush.bf16.msra.mxu1 %v3384_v16 }
 0x2fc   :  { %1872 = vmatpush.bf16.msra.mxu2 %v3400_v23  ;;  %1886 = vmatpush.bf16.msra.mxu3 %v3386_v18 }
 0x35a   :  { %v1426_v15 = vpop.f32.mrf.mxu0  ;;  %v1440_v29 = vpop.f32.mrf.mxu1 }
 0x35b   :  { %v1473_v7 = vadd.f32 %v1426_v15, %v380_v21  ;;  %v1474_v33 = vadd.f32 %v1440_v29, %v429_v43  ;;  %v4320_v15 = vld [vmem:[#allocation33_spill] sm:$0xff] }
 0x35c   :  { %v529_v29 = vadd.f32 %v4320_v15, %v4316_v53 }
 0x35d   :  { %v2772_v1 = vmul.f32 -1.442695, %v1473_v7  ;;  %v2774_v44 = vmul.f32 -1.442695, %v1474_v33  ;;  %v4321_v33 = vld [vmem:[#allocation69_spill] sm:$0xff] }
 0x35f   :  { %3032 = vpow2.f32 %v2772_v1  ;;  %v4322_v1 = vld [vmem:[#allocation28_spill] sm:$0xff] }
 0x360   :  { %3034 = vpow2.f32 %v2774_v44  ;;  %v478_v44 = vadd.f32 %v4322_v1, %v4321_v33  ;;  %v4323_v1 = vld [vmem:[#allocation32_spill] sm:$0xff] }
 0x361   :  { %v1468_v51 = vpop.f32.mrf.mxu3  ;;  %v1454_v50 = vpop.f32.mrf.mxu2 }
 0x362   :  { %v1476_v11 = vadd.f32 %v1468_v51, %v527_v25  ;;  %v1428_v46 = vpop.f32.mrf.mxu0  ;;  %v1442_v19 = vpop.f32.mrf.mxu1  ;;  %v1475_v58 = vadd.f32 %v1454_v50, %v478_v44  ;;  %v480_v44 = vadd.f32 %v4323_v1, %v4321_v33 }
 0x363   :  { %v1477_v12 = vadd.f32 %v1428_v46, %v382_v28  ;;  %v1478_v56 = vadd.f32 %v1442_v19, %v431_v0 }
 0x364   :  { %v2776_v5 = vmul.f32 -1.442695, %v1476_v11 }
 0x365   :  { %v3033_v34 = vpop.eup %3032  ;;  %v2773_v38 = vmul.f32 -1.442695, %v1477_v12  ;;  %v2775_v20 = vmul.f32 -1.442695, %v1478_v56 }
 0x366   :  { %v3035_v32 = vpop.eup %3034  ;;  %v1487_v39 = vadd.f32 1.0, %v3033_v34  ;;  %3036 = vpow2.f32 %v2776_v5 }
 0x367   :  { %v1525_v21 = vadd.f32 1.0, %v3035_v32  ;;  %3038 = vpow2.f32 %v2773_v38 }
 0x368   :  { %3040 = vrcp.f32 %v1487_v39  ;;  %v1498_v38 = vand.u32 2147483647, %v1487_v39  ;;  %v1500_v32 = vand.u32 2147483648, %v1487_v39  ;;  %vm1494_vm10 = vweird.f32 %v1487_v39 }
 0x369   :  { %3042 = vrcp.f32 %v1525_v21  ;;  %v1470_v43 = vpop.f32.mrf.mxu3  ;;  %v1536_v15 = vand.u32 2147483647, %v1525_v21  ;;  %vm1532_vm11 = vweird.f32 %v1525_v21 }
 0x36a   :  { %3044 = vpow2.f32 %v2775_v20  ;;  %v1480_v31 = vadd.f32 %v1470_v43, %v529_v29  ;;  %v1538_v20 = vand.u32 2147483648, %v1525_v21  ;;  %v1456_v29 = vpop.f32.mrf.mxu2  ;;  %vm1499_vm13 = vcmp.eq.f32.partialorder %v1498_v38, 8.507059e+37 }
 0x36b   :  { %vm1537_vm15 = vcmp.eq.f32.partialorder %v1536_v15, 8.507059e+37 }
 0x36c   :  { %v3037_v7 = vpop.eup %3036  ;;  %v2777_v5 = vmul.f32 -1.442695, %v1480_v31  ;;  %v1501_v31 = vor.u32 1.1754944e-38, %v1500_v32 }
 0x36d   :  { %v3039_v6 = vpop.eup %3038  ;;  %v3886_v25 = vadd.f32 1.0, %v3037_v7 }
 0x36e   :  { %v3041_v28 = vpop.eup %3040  ;;  %v3888_v0 = vadd.f32 1.0, %v3039_v6 }
 0x36f   :  { %v3043_v51 = vpop.eup %3042  ;;  %v1490_v11 = vmul.f32 %v3041_v28, %v1487_v39  ;;  %3046 = vrcp.f32 %v3886_v25  ;;  %vm1495_vm8 = vweird.f32 %v3041_v28 }
 0x370   :  { %v3045_v46 = vpop.eup %3044  ;;  %v1528_v19 = vmul.f32 %v3043_v51, %v1525_v21  ;;  %3048 = vrcp.f32 %v3888_v0  ;;  %vm1533_vm9 = vweird.f32 %v3043_v51  ;;  %vm1496_vm12 = vmor %vm1494_vm10, %vm1495_vm8  ;;  %v1513_v1 = vand.u32 2147483647, %v3888_v0 }
 0x371   :  { %v1491_v12 = vsub.f32 1.0, %v1490_v11  ;;  %v3892_v56 = vadd.f32 1.0, %v3045_v46  ;;  %3050 = vtanh.f32 %v1475_v58  ;;  %vm1534_vm14 = vmor %vm1532_vm11, %vm1533_vm9  ;;  %v1539_v46 = vor.u32 1.1754944e-38, %v1538_v20 }
 0x372   :  { %v1529_v34 = vsub.f32 1.0, %v1528_v19  ;;  %vm1509_vm1 = vweird.f32 %v3888_v0  ;;  %vm1514_vm5 = vcmp.eq.f32.partialorder %v1513_v1, 8.507059e+37  ;;  %vm1572_vm9 = vweird.f32 %v3886_v25 }
 0x373   :  { %v1492_v50 = vmul.f32 %v3041_v28, %v1491_v12  ;;  %3052 = vrcp.f32 %v3892_v56  ;;  %vm1547_vm3 = vweird.f32 %v3892_v56 }
 0x374   :  { %v1530_v43 = vmul.f32 %v3043_v51, %v1529_v34  ;;  %3054 = vpow2.f32 %v2777_v5  ;;  %v1479_v34 = vadd.f32 %v1456_v29, %v480_v44  ;;  %v1515_v29 = vand.u32 2147483648, %v3888_v0 }
 0x375   :  { %v3895_v7 = vpop.eup %3046  ;;  %v1493_v6 = vadd.f32 %v3041_v28, %v1492_v50 }
 0x376   :  { %v1531_v58 = vadd.f32 %v3043_v51, %v1530_v43  ;;  %v3049_v11 = vpop.eup %3048  ;;  %v1568_v12 = vmul.f32 %v3895_v7, %v3886_v25  ;;  %3056 = vtanh.f32 %v1479_v34  ;;  %vm1573_vm8 = vweird.f32 %v3895_v7 }
 0x377   :  { %v1497_v19 = vsel %vm1496_vm12, %v3041_v28, %v1493_v6  ;;  %v3051_v53 = vpop.eup %3050  ;;  %v1505_v39 = vmul.f32 %v3049_v11, %v3888_v0  ;;  %vm1510_vm0 = vweird.f32 %v3049_v11  ;;  %v1551_v6 = vand.u32 2147483647, %v3892_v56  ;;  %vm1574_vm10 = vmor %vm1572_vm9, %vm1573_vm8 }
 0x378   :  { %v1502_v36 = vsel %vm1499_vm13, %v1501_v31, %v1497_v19  ;;  %v1535_v24 = vsel %vm1534_vm14, %v3043_v51, %v1531_v58  ;;  %v1569_v28 = vsub.f32 1.0, %v1568_v12  ;;  %vm1511_vm4 = vmor %vm1509_vm1, %vm1510_vm0  ;;  %v1516_v31 = vor.u32 1.1754944e-38, %v1515_v29 }
 0x379   :  { %v3053_v5 = vpop.eup %3052  ;;  %v1540_v21 = vsel %vm1537_vm15, %v1539_v46, %v1535_v24  ;;  %v1599_v50 = vmul.f32 %v3051_v53, %v1502_v36  ;;  %v1506_v32 = vsub.f32 1.0, %v1505_v39  ;;  %v1553_v24 = vand.u32 2147483648, %v3892_v56 }
 0x37a   :  { %v1597_v38 = vmul.f32 %v1540_v21, %v3819_v8  ;;  %v1543_v43 = vmul.f32 %v3053_v5, %v3892_v56  ;;  %v3055_v20 = vpop.eup %3054  ;;  %vm1548_vm2 = vweird.f32 %v3053_v5  ;;  %v1570_v58 = vmul.f32 %v3895_v7, %v1569_v28 }
 0x37b   :  { %v1507_v15 = vmul.f32 %v3049_v11, %v1506_v32  ;;  %v1566_v8 = vadd.f32 1.0, %v3055_v20  ;;  %vm1549_vm6 = vmor %vm1547_vm3, %vm1548_vm2  ;;  %v1554_v34 = vor.u32 1.1754944e-38, %v1553_v24  ;;  %vm1552_vm7 = vcmp.eq.f32.partialorder %v1551_v6, 8.507059e+37 }
 0x37c   :  { %v3906_v44 = vadd.f32 %v1599_v50, %v1597_v38  ;;  %v1544_v51 = vsub.f32 1.0, %v1543_v43  ;;  %v3057_v12 = vpop.eup %3056  ;;  %v1571_v56 = vadd.f32 %v3895_v7, %v1570_v58  ;;  %v1576_v43 = vand.u32 2147483647, %v3886_v25 }
 0x37d   :  { %v1508_v53 = vadd.f32 %v3049_v11, %v1507_v15  ;;  %3058 = vrcp.f32 %v1566_v8  ;;  %v1593_v15 = vand.u32 2147483648, %v1566_v8  ;;  %v1591_v24 = vand.u32 2147483647, %v1566_v8 }
 0x37e   :  { %v1545_v36 = vmul.f32 %v3053_v5, %v1544_v51  ;;  %3060 = vtanh.f32 %v3906_v44  ;;  %v1575_v28 = vsel %vm1574_vm10, %v3895_v7, %v1571_v56  ;;  %vm1577_vm11 = vcmp.eq.f32.partialorder %v1576_v43, 8.507059e+37 }
 0x37f   :  { %v1512_v46 = vsel %vm1511_vm4, %v3049_v11, %v1508_v53  ;;  %v1578_v11 = vand.u32 2147483648, %v3886_v25  ;;  %vm1587_vm13 = vweird.f32 %v1566_v8  ;;  %v1594_v6 = vor.u32 1.1754944e-38, %v1593_v15  ;;  %v4328_v15 = vld [vmem:[#allocation67_spill] sm:$0xff] }
 0x380   :  { %v1546_v19 = vadd.f32 %v3053_v5, %v1545_v36  ;;  %v1517_v0 = vsel %vm1514_vm5, %v1516_v31, %v1512_v46  ;;  %vm1592_vm15 = vcmp.eq.f32.partialorder %v1591_v24, 8.507059e+37 }
 0x381   :  { %v1600_v21 = vmul.f32 %v3057_v12, %v1517_v0  ;;  %v1579_v51 = vor.u32 1.1754944e-38, %v1578_v11 }
 0x382   :  { %v1550_v39 = vsel %vm1549_vm6, %v3053_v5, %v1546_v19 }
 0x383   :  { %v1555_v50 = vsel %vm1552_vm7, %v1554_v34, %v1550_v39  ;;  %v3059_v32 = vpop.eup %3058  ;;  %v1580_v36 = vsel %vm1577_vm11, %v1579_v51, %v1575_v28 }
 0x384   :  { %v1598_v38 = vmul.f32 %v1555_v50, %v3833_v57  ;;  %v1583_v5 = vmul.f32 %v3059_v32, %v1566_v8  ;;  %v3061_v29 = vpop.eup %3060  ;;  %vm1588_vm12 = vweird.f32 %v3059_v32  ;;  %v4324_v8 = vld [vmem:[#allocation63_spill] sm:$0xff]  ;;  %v4325_v50 = vld [vmem:[#allocation34_spill] sm:$0xff] }
 0x385   :  { %v1605_v25 = vmul.f32 %v3061_v29, %v1580_v36  ;;  %vm1589_vm14 = vmor %vm1587_vm13, %vm1588_vm12  ;;  %v385_v56 = vadd.f32 %v4325_v50, %v4324_v8  ;;  %v4330_v36 = vld [vmem:[#allocation38_spill] sm:$0xff] }
 0x386   :  { %v3920_v20 = vadd.f32 %v1600_v21, %v1598_v38  ;;  %v1584_v1 = vsub.f32 1.0, %v1583_v5  ;;  %v4326_v38 = vld [vmem:[#allocation64_spill] sm:$0xff] }
 0x387   :  { %v1607_v19 = vpack.c.bf16 %v1605_v25, %v1605_v25 }
 0x388   :  { %3062 = vtanh.f32 %v3920_v20  ;;  %v1585_v57 = vmul.f32 %v3059_v32, %v1584_v1 }
 0x389   :  { %v1623_v0 = vunpack.c.l.b16 %v1607_v19 }
 0x38a   :  { %v1586_v53 = vadd.f32 %v3059_v32, %v1585_v57  ;;  %v4329_v57 = vld [vmem:[#allocation37_spill] sm:$0xff] }
 0x38b   :  { %v532_v24 = vadd.f32 %v4329_v57, %v4328_v15 }
 0x38c   :  { %v1590_v58 = vsel %vm1589_vm14, %v3059_v32, %v1586_v53  ;;  %v4327_v32 = vld [vmem:[#allocation35_spill] sm:$0xff]  ;;  %v387_v53 = vadd.f32 %v4330_v36, %v4324_v8 }
 0x38d   :  { %v1595_v7 = vsel %vm1592_vm15, %v1594_v6, %v1590_v58  ;;  %v434_v11 = vadd.f32 %v4327_v32, %v4326_v38 }
 0x38e   :  { %v3063_v31 = vpop.eup %3062 }
 0x38f   :  { %v1606_v46 = vmul.f32 %v3063_v31, %v1595_v7 }
 0x391   :  { %v1608_v12 = vpack.c.bf16 %v1606_v46, %v1606_v46  ;;  %v2902_v34 = vpack.c.bf16 %v1606_v46, %v1605_v25  ;;  %v4331_v25 = vld [vmem:[#allocation39_spill] sm:$0xff] }
 0x392   :  { %v436_v6 = vadd.f32 %v4331_v25, %v4326_v38 }
 0x393   :  { %2926 = vst [vmem:[%s4217_s4 + $0x18] sm:$0xff] %v2902_v34   ;;  %v1624_v39 = vunpack.c.l.b16 %v1608_v12 }
 0x395   :  { %v1625_v21 = vpack.c.b16 %v1624_v39, %v1623_v0 }
 0x397   :  { %1635 = vmatmul.bf16.vlgmr.msrb.gmra.mxu0 %v1625_v21  ;;  %1649 = vmatmul.bf16.vlgmr.msrb.gmra.mxu1 %v1625_v21 }
 0x398   :  { %1663 = vmatmul.bf16.vlgmr.msrb.gmra.mxu2 %v1625_v21  ;;  %1677 = vmatmul.bf16.vlgmr.msrb.gmra.mxu3 %v1625_v21 }
 0x399   :  { %2047 = vmatpush.bf16.msrb.mxu0 %v3283_v37  ;;  %2061 = vmatpush.bf16.msrb.mxu1 %v3285_v41 }
 0x39a   :  { %2075 = vmatpush.bf16.msrb.mxu2 %v3287_v47  ;;  %2089 = vmatpush.bf16.msrb.mxu3 %v3290_v48 }
 0x39d   :  { %2048 = vmatpush.bf16.msrb.mxu0 %v3292_v49  ;;  %2062 = vmatpush.bf16.msrb.mxu1 %v3295_v52 }
 0x39e   :  { %2076 = vmatpush.bf16.msrb.mxu2 %v3298_v55  ;;  %2090 = vmatpush.bf16.msrb.mxu3 %v3302_v59 }
 0x3a1   :  { %2049 = vmatpush.bf16.msrb.mxu0 %v3304_v60  ;;  %2063 = vmatpush.bf16.msrb.mxu1 %v3307_v63 }
 0x3a2   :  { %2077 = vmatpush.bf16.msrb.mxu2 %v3310_v3  ;;  %2091 = vmatpush.bf16.msrb.mxu3 %v3314_v4 }
 0x3a5   :  { %2050 = vmatpush.bf16.msrb.mxu0 %v3322_v9  ;;  %2064 = vmatpush.bf16.msrb.mxu1 %v3324_v13 }
 0x3a6   :  { %2078 = vmatpush.bf16.msrb.mxu2 %v3329_v17  ;;  %2092 = vmatpush.bf16.msrb.mxu3 %v3326_v14 }
 0x3a9   :  { %2051 = vmatpush.bf16.msrb.mxu0 %v3337_v22  ;;  %2065 = vmatpush.bf16.msrb.mxu1 %v3339_v26 }
 0x3aa   :  { %2079 = vmatpush.bf16.msrb.mxu2 %v3344_v30  ;;  %2093 = vmatpush.bf16.msrb.mxu3 %v3341_v27 }
 0x3ad   :  { %2052 = vmatpush.bf16.msrb.mxu0 %v3352_v35  ;;  %2066 = vmatpush.bf16.msrb.mxu1 %v3354_v40 }
 0x3ae   :  { %2080 = vmatpush.bf16.msrb.mxu2 %v3359_v45  ;;  %2094 = vmatpush.bf16.msrb.mxu3 %v3356_v42 }
 0x3b1   :  { %2053 = vmatpush.bf16.msrb.mxu0 %v3367_v54  ;;  %2067 = vmatpush.bf16.msrb.mxu1 %v3369_v61 }
 0x3b2   :  { %2081 = vmatpush.bf16.msrb.mxu2 %v3374_v2  ;;  %2095 = vmatpush.bf16.msrb.mxu3 %v3371_v62 }
 0x3b5   :  { %2054 = vmatpush.bf16.msrb.mxu0 %v3382_v10  ;;  %2068 = vmatpush.bf16.msrb.mxu1 %v3384_v16 }
 0x3b6   :  { %2082 = vmatpush.bf16.msrb.mxu2 %v3400_v23  ;;  %2096 = vmatpush.bf16.msrb.mxu3 %v3386_v18 }
 0x414   :  { %v1636_v43 = vpop.f32.mrf.mxu0  ;;  %v1650_v5 = vpop.f32.mrf.mxu1 }
 0x415   :  { %v1683_v28 = vadd.f32 %v1636_v43, %v385_v56  ;;  %v1684_v1 = vadd.f32 %v1650_v5, %v434_v11  ;;  %v4332_v5 = vld [vmem:[#allocation41_spill] sm:$0xff] }
 0x417   :  { %v2780_v29 = vmul.f32 -1.442695, %v1683_v28  ;;  %v2782_v51 = vmul.f32 -1.442695, %v1684_v1  ;;  %v534_v28 = vadd.f32 %v4332_v5, %v4328_v15 }
 0x419   :  { %3064 = vpow2.f32 %v2780_v29  ;;  %v4333_v29 = vld [vmem:[#allocation36_spill] sm:$0xff] }
 0x41a   :  { %3066 = vpow2.f32 %v2782_v51  ;;  %v483_v51 = vadd.f32 %v4333_v29, %v4321_v33  ;;  %v4334_v29 = vld [vmem:[#allocation40_spill] sm:$0xff] }
 0x41b   :  { %v1678_v31 = vpop.f32.mrf.mxu3  ;;  %v1664_v11 = vpop.f32.mrf.mxu2 }
 0x41c   :  { %v1686_v58 = vadd.f32 %v1678_v31, %v532_v24  ;;  %v1638_v7 = vpop.f32.mrf.mxu0  ;;  %v1652_v46 = vpop.f32.mrf.mxu1  ;;  %v1685_v25 = vadd.f32 %v1664_v11, %v483_v51  ;;  %v485_v51 = vadd.f32 %v4334_v29, %v4321_v33 }
 0x41d   :  { %v1687_v19 = vadd.f32 %v1638_v7, %v387_v53  ;;  %v1688_v12 = vadd.f32 %v1652_v46, %v436_v6 }
 0x41e   :  { %v2784_v34 = vmul.f32 -1.442695, %v1686_v58 }
 0x41f   :  { %v3065_v0 = vpop.eup %3064  ;;  %v2781_v39 = vmul.f32 -1.442695, %v1687_v19  ;;  %v2783_v56 = vmul.f32 -1.442695, %v1688_v12 }
 0x420   :  { %v3067_v21 = vpop.eup %3066  ;;  %v1697_v50 = vadd.f32 1.0, %v3065_v0  ;;  %3068 = vpow2.f32 %v2784_v34 }
 0x421   :  { %v1735_v32 = vadd.f32 1.0, %v3067_v21  ;;  %3070 = vpow2.f32 %v2781_v39 }
 0x422   :  { %3072 = vrcp.f32 %v1697_v50  ;;  %v1708_v39 = vand.u32 2147483647, %v1697_v50  ;;  %v1710_v21 = vand.u32 2147483648, %v1697_v50  ;;  %vm1704_vm2 = vweird.f32 %v1697_v50 }
 0x423   :  { %3074 = vrcp.f32 %v1735_v32  ;;  %v1680_v43 = vpop.f32.mrf.mxu3  ;;  %v1746_v5 = vand.u32 2147483647, %v1735_v32  ;;  %vm1742_vm3 = vweird.f32 %v1735_v32 }
 0x424   :  { %3076 = vpow2.f32 %v2783_v56  ;;  %v1690_v36 = vadd.f32 %v1680_v43, %v534_v28  ;;  %v1748_v56 = vand.u32 2147483648, %v1735_v32  ;;  %v1666_v28 = vpop.f32.mrf.mxu2  ;;  %vm1709_vm5 = vcmp.eq.f32.partialorder %v1708_v39, 8.507059e+37 }
 0x425   :  { %vm1747_vm7 = vcmp.eq.f32.partialorder %v1746_v5, 8.507059e+37 }
 0x426   :  { %v3069_v1 = vpop.eup %3068  ;;  %v2785_v34 = vmul.f32 -1.442695, %v1690_v36  ;;  %v1711_v36 = vor.u32 1.1754944e-38, %v1710_v21 }
 0x427   :  { %v3071_v57 = vpop.eup %3070  ;;  %v3973_v24 = vadd.f32 1.0, %v3069_v1 }
 0x428   :  { %v3073_v53 = vpop.eup %3072  ;;  %v3975_v6 = vadd.f32 1.0, %v3071_v57 }
 0x429   :  { %v3075_v31 = vpop.eup %3074  ;;  %v1700_v58 = vmul.f32 %v3073_v53, %v1697_v50  ;;  %3078 = vrcp.f32 %v3973_v24  ;;  %vm1705_vm0 = vweird.f32 %v3073_v53 }
 0x42a   :  { %v3077_v7 = vpop.eup %3076  ;;  %v1738_v46 = vmul.f32 %v3075_v31, %v1735_v32  ;;  %3080 = vrcp.f32 %v3975_v6  ;;  %vm1743_vm1 = vweird.f32 %v3075_v31  ;;  %vm1706_vm4 = vmor %vm1704_vm2, %vm1705_vm0  ;;  %v1723_v29 = vand.u32 2147483647, %v3975_v6 }
 0x42b   :  { %v1701_v19 = vsub.f32 1.0, %v1700_v58  ;;  %v3979_v12 = vadd.f32 1.0, %v3077_v7  ;;  %3082 = vtanh.f32 %v1685_v25  ;;  %vm1744_vm6 = vmor %vm1742_vm3, %vm1743_vm1  ;;  %v1749_v7 = vor.u32 1.1754944e-38, %v1748_v56 }
 0x42c   :  { %v1739_v0 = vsub.f32 1.0, %v1738_v46  ;;  %vm1719_vm9 = vweird.f32 %v3975_v6  ;;  %vm1724_vm13 = vcmp.eq.f32.partialorder %v1723_v29, 8.507059e+37  ;;  %vm1782_vm1 = vweird.f32 %v3973_v24 }
 0x42d   :  { %v1702_v11 = vmul.f32 %v3073_v53, %v1701_v19  ;;  %3084 = vrcp.f32 %v3979_v12  ;;  %vm1757_vm11 = vweird.f32 %v3979_v12 }
 0x42e   :  { %v1740_v43 = vmul.f32 %v3075_v31, %v1739_v0  ;;  %3086 = vpow2.f32 %v2785_v34  ;;  %v1689_v0 = vadd.f32 %v1666_v28, %v485_v51  ;;  %v1725_v28 = vand.u32 2147483648, %v3975_v6 }
 0x42f   :  { %v3982_v1 = vpop.eup %3078  ;;  %v1703_v57 = vadd.f32 %v3073_v53, %v1702_v11 }
 0x430   :  { %v1741_v25 = vadd.f32 %v3075_v31, %v1740_v43  ;;  %v3081_v58 = vpop.eup %3080  ;;  %v1778_v19 = vmul.f32 %v3982_v1, %v3973_v24  ;;  %3088 = vtanh.f32 %v1689_v0  ;;  %vm1783_vm0 = vweird.f32 %v3982_v1 }
 0x431   :  { %v1707_v46 = vsel %vm1706_vm4, %v3073_v53, %v1703_v57  ;;  %v3083_v15 = vpop.eup %3082  ;;  %v1715_v50 = vmul.f32 %v3081_v58, %v3975_v6  ;;  %vm1720_vm8 = vweird.f32 %v3081_v58  ;;  %v1761_v57 = vand.u32 2147483647, %v3979_v12  ;;  %vm1784_vm2 = vmor %vm1782_vm1, %vm1783_vm0 }
 0x432   :  { %v1712_v38 = vsel %vm1709_vm5, %v1711_v36, %v1707_v46  ;;  %v1745_v8 = vsel %vm1744_vm6, %v3075_v31, %v1741_v25  ;;  %v1779_v53 = vsub.f32 1.0, %v1778_v19  ;;  %vm1721_vm12 = vmor %vm1719_vm9, %vm1720_vm8  ;;  %v1726_v36 = vor.u32 1.1754944e-38, %v1725_v28 }
 0x433   :  { %v3085_v34 = vpop.eup %3084  ;;  %v1750_v32 = vsel %vm1747_vm7, %v1749_v7, %v1745_v8  ;;  %v1809_v11 = vmul.f32 %v3083_v15, %v1712_v38  ;;  %v1716_v21 = vsub.f32 1.0, %v1715_v50  ;;  %v1763_v8 = vand.u32 2147483648, %v3979_v12 }
 0x434   :  { %v1807_v39 = vmul.f32 %v1750_v32, %v3906_v44  ;;  %v1753_v43 = vmul.f32 %v3085_v34, %v3979_v12  ;;  %v3087_v56 = vpop.eup %3086  ;;  %vm1758_vm10 = vweird.f32 %v3085_v34  ;;  %v1780_v25 = vmul.f32 %v3982_v1, %v1779_v53 }
 0x435   :  { %v1717_v5 = vmul.f32 %v3081_v58, %v1716_v21  ;;  %v1776_v44 = vadd.f32 1.0, %v3087_v56  ;;  %vm1759_vm14 = vmor %vm1757_vm11, %vm1758_vm10  ;;  %v1764_v0 = vor.u32 1.1754944e-38, %v1763_v8  ;;  %vm1762_vm15 = vcmp.eq.f32.partialorder %v1761_v57, 8.507059e+37 }
 0x436   :  { %v3993_v51 = vadd.f32 %v1809_v11, %v1807_v39  ;;  %v1754_v31 = vsub.f32 1.0, %v1753_v43  ;;  %v3089_v19 = vpop.eup %3088  ;;  %v1781_v12 = vadd.f32 %v3982_v1, %v1780_v25  ;;  %v1786_v43 = vand.u32 2147483647, %v3973_v24 }
 0x437   :  { %v1718_v15 = vadd.f32 %v3081_v58, %v1717_v5  ;;  %3090 = vrcp.f32 %v1776_v44  ;;  %v1803_v5 = vand.u32 2147483648, %v1776_v44  ;;  %v1801_v8 = vand.u32 2147483647, %v1776_v44 }
 0x438   :  { %v1755_v38 = vmul.f32 %v3085_v34, %v1754_v31  ;;  %3092 = vtanh.f32 %v3993_v51  ;;  %v1785_v53 = vsel %vm1784_vm2, %v3982_v1, %v1781_v12  ;;  %vm1787_vm3 = vcmp.eq.f32.partialorder %v1786_v43, 8.507059e+37  ;;  %v4343_v12 = vld [vmem:[#allocation49_spill] sm:$0xff] }
 0x439   :  { %v1722_v7 = vsel %vm1721_vm12, %v3081_v58, %v1718_v15  ;;  %v1788_v58 = vand.u32 2147483648, %v3973_v24  ;;  %vm1797_vm5 = vweird.f32 %v1776_v44  ;;  %v1804_v57 = vor.u32 1.1754944e-38, %v1803_v5 }
 0x43a   :  { %v1756_v46 = vadd.f32 %v3085_v34, %v1755_v38  ;;  %v1727_v6 = vsel %vm1724_vm13, %v1726_v36, %v1722_v7  ;;  %vm1802_vm7 = vcmp.eq.f32.partialorder %v1801_v8, 8.507059e+37 }
 0x43b   :  { %v1810_v32 = vmul.f32 %v3089_v19, %v1727_v6  ;;  %v1789_v31 = vor.u32 1.1754944e-38, %v1788_v58  ;;  %v4344_v58 = vld [vmem:[#allocation44_spill] sm:$0xff] }
 0x43c   :  { %v1760_v50 = vsel %vm1759_vm14, %v3085_v34, %v1756_v46  ;;  %v488_v43 = vadd.f32 %v4344_v58, %v4321_v33 }
 0x43d   :  { %v1765_v11 = vsel %vm1762_vm15, %v1764_v0, %v1760_v50  ;;  %v3091_v21 = vpop.eup %3090  ;;  %v1790_v38 = vsel %vm1787_vm3, %v1789_v31, %v1785_v53 }
 0x43e   :  { %v1808_v39 = vmul.f32 %v1765_v11, %v3920_v20  ;;  %v1793_v34 = vmul.f32 %v3091_v21, %v1776_v44  ;;  %v3093_v28 = vpop.eup %3092  ;;  %vm1798_vm4 = vweird.f32 %v3091_v21 }
 0x43f   :  { %v1815_v24 = vmul.f32 %v3093_v28, %v1790_v38  ;;  %vm1799_vm6 = vmor %vm1797_vm5, %vm1798_vm4 }
 0x440   :  { %v4007_v56 = vadd.f32 %v1810_v32, %v1808_v39  ;;  %v1794_v29 = vsub.f32 1.0, %v1793_v34 }
 0x441   :  { %v1817_v46 = vpack.c.bf16 %v1815_v24, %v1815_v24 }
 0x442   :  { %3094 = vtanh.f32 %v4007_v56  ;;  %v1795_v20 = vmul.f32 %v3091_v21, %v1794_v29 }
 0x443   :  { %v1833_v6 = vunpack.c.l.b16 %v1817_v46 }
 0x444   :  { %v1796_v15 = vadd.f32 %v3091_v21, %v1795_v20 }
 0x446   :  { %v1800_v25 = vsel %vm1799_vm6, %v3091_v21, %v1796_v15 }
 0x447   :  { %v1805_v1 = vsel %vm1802_vm7, %v1804_v57, %v1800_v25 }
 0x448   :  { %v3095_v36 = vpop.eup %3094 }
 0x449   :  { %v1816_v7 = vmul.f32 %v3095_v36, %v1805_v1 }
 0x44b   :  { %v1818_v19 = vpack.c.bf16 %v1816_v7, %v1816_v7  ;;  %v2907_v0 = vpack.c.bf16 %v1816_v7, %v1815_v24 }
 0x44d   :  { %2927 = vst [vmem:[%s4217_s4 + $0x20] sm:$0xff] %v2907_v0   ;;  %v1834_v50 = vunpack.c.l.b16 %v1818_v19 }
 0x44f   :  { %v1835_v32 = vpack.c.b16 %v1834_v50, %v1833_v6 }
 0x451   :  { %1845 = vmatmul.bf16.vlgmr.msra.gmra.mxu0 %v1835_v32  ;;  %1859 = vmatmul.bf16.vlgmr.msra.gmra.mxu1 %v1835_v32 }
 0x452   :  { %1873 = vmatmul.bf16.vlgmr.msra.gmra.mxu2 %v1835_v32  ;;  %1887 = vmatmul.bf16.vlgmr.msra.gmra.mxu3 %v1835_v32 }
 0x453   :  { %2257 = vmatpush.bf16.msra.mxu0 %v3283_v37  ;;  %2271 = vmatpush.bf16.msra.mxu1 %v3285_v41  ;;  %v4335_v37 = vld [vmem:[#allocation63_spill] sm:$0xff]  ;;  %v4336_v41 = vld [vmem:[#allocation42_spill] sm:$0xff] }
 0x454   :  { %2285 = vmatpush.bf16.msra.mxu2 %v3287_v47  ;;  %2299 = vmatpush.bf16.msra.mxu3 %v3290_v48  ;;  %v390_v47 = vadd.f32 %v4336_v41, %v4335_v37  ;;  %v4337_v48 = vld [vmem:[#allocation64_spill] sm:$0xff] }
 0x455   :  { %v4345_v41 = vld [vmem:[#allocation48_spill] sm:$0xff] }
 0x457   :  { %2258 = vmatpush.bf16.msra.mxu0 %v3292_v49  ;;  %2272 = vmatpush.bf16.msra.mxu1 %v3295_v52  ;;  %v4338_v49 = vld [vmem:[#allocation43_spill] sm:$0xff] }
 0x458   :  { %2286 = vmatpush.bf16.msra.mxu2 %v3298_v55  ;;  %2300 = vmatpush.bf16.msra.mxu3 %v3302_v59  ;;  %v439_v52 = vadd.f32 %v4338_v49, %v4337_v48 }
 0x45b   :  { %2259 = vmatpush.bf16.msra.mxu0 %v3304_v60  ;;  %2273 = vmatpush.bf16.msra.mxu1 %v3307_v63 }
 0x45c   :  { %2287 = vmatpush.bf16.msra.mxu2 %v3310_v3  ;;  %2301 = vmatpush.bf16.msra.mxu3 %v3314_v4 }
 0x45f   :  { %2260 = vmatpush.bf16.msra.mxu0 %v3322_v9  ;;  %2274 = vmatpush.bf16.msra.mxu1 %v3324_v13  ;;  %v4339_v9 = vld [vmem:[#allocation67_spill] sm:$0xff]  ;;  %v4340_v13 = vld [vmem:[#allocation45_spill] sm:$0xff] }
 0x460   :  { %2288 = vmatpush.bf16.msra.mxu2 %v3329_v17  ;;  %2302 = vmatpush.bf16.msra.mxu3 %v3326_v14  ;;  %v537_v14 = vadd.f32 %v4340_v13, %v4339_v9  ;;  %v4341_v17 = vld [vmem:[#allocation46_spill] sm:$0xff]  ;;  %v539_v39 = vadd.f32 %v4343_v12, %v4339_v9 }
 0x463   :  { %2261 = vmatpush.bf16.msra.mxu0 %v3337_v22  ;;  %2275 = vmatpush.bf16.msra.mxu1 %v3339_v26  ;;  %v392_v22 = vadd.f32 %v4341_v17, %v4335_v37  ;;  %v4342_v26 = vld [vmem:[#allocation47_spill] sm:$0xff] }
 0x464   :  { %2289 = vmatpush.bf16.msra.mxu2 %v3344_v30  ;;  %2303 = vmatpush.bf16.msra.mxu3 %v3341_v27  ;;  %v441_v27 = vadd.f32 %v4342_v26, %v4337_v48 }
 0x467   :  { %2262 = vmatpush.bf16.msra.mxu0 %v3352_v35  ;;  %2276 = vmatpush.bf16.msra.mxu1 %v3354_v40 }
 0x468   :  { %2290 = vmatpush.bf16.msra.mxu2 %v3359_v45  ;;  %2304 = vmatpush.bf16.msra.mxu3 %v3356_v42 }
 0x46b   :  { %2263 = vmatpush.bf16.msra.mxu0 %v3367_v54  ;;  %2277 = vmatpush.bf16.msra.mxu1 %v3369_v61 }
 0x46c   :  { %2291 = vmatpush.bf16.msra.mxu2 %v3374_v2  ;;  %2305 = vmatpush.bf16.msra.mxu3 %v3371_v62 }
 0x46f   :  { %2264 = vmatpush.bf16.msra.mxu0 %v3382_v10  ;;  %2278 = vmatpush.bf16.msra.mxu1 %v3384_v16 }
 0x470   :  { %2292 = vmatpush.bf16.msra.mxu2 %v3400_v23  ;;  %2306 = vmatpush.bf16.msra.mxu3 %v3386_v18 }
 0x4ce   :  { %v1846_v55 = vpop.f32.mrf.mxu0  ;;  %v1860_v59 = vpop.f32.mrf.mxu1 }
 0x4cf   :  { %v1893_v60 = vadd.f32 %v1846_v55, %v390_v47  ;;  %v1894_v63 = vadd.f32 %v1860_v59, %v439_v52  ;;  %v490_v47 = vadd.f32 %v4345_v41, %v4321_v33 }
 0x4d1   :  { %v2788_v3 = vmul.f32 -1.442695, %v1893_v60  ;;  %v2790_v4 = vmul.f32 -1.442695, %v1894_v63 }
 0x4d3   :  { %3096 = vpow2.f32 %v2788_v3 }
 0x4d4   :  { %3098 = vpow2.f32 %v2790_v4 }
 0x4d5   :  { %v1888_v30 = vpop.f32.mrf.mxu3  ;;  %v1874_v44 = vpop.f32.mrf.mxu2 }
 0x4d6   :  { %v1896_v35 = vadd.f32 %v1888_v30, %v537_v14  ;;  %v1848_v40 = vpop.f32.mrf.mxu0  ;;  %v1862_v42 = vpop.f32.mrf.mxu1  ;;  %v1895_v31 = vadd.f32 %v1874_v44, %v488_v43 }
 0x4d7   :  { %v1897_v45 = vadd.f32 %v1848_v40, %v392_v22  ;;  %v1898_v54 = vadd.f32 %v1862_v42, %v441_v27 }
 0x4d8   :  { %v2792_v61 = vmul.f32 -1.442695, %v1896_v35 }
 0x4d9   :  { %v3097_v62 = vpop.eup %3096  ;;  %v2789_v2 = vmul.f32 -1.442695, %v1897_v45  ;;  %v2791_v18 = vmul.f32 -1.442695, %v1898_v54 }
 0x4da   :  { %v3099_v10 = vpop.eup %3098  ;;  %v1907_v16 = vadd.f32 1.0, %v3097_v62  ;;  %3100 = vpow2.f32 %v2792_v61 }
 0x4db   :  { %v1945_v23 = vadd.f32 1.0, %v3099_v10  ;;  %3102 = vpow2.f32 %v2789_v2 }
 0x4dc   :  { %3104 = vrcp.f32 %v1907_v16  ;;  %v1918_v1 = vand.u32 2147483647, %v1907_v16  ;;  %v1920_v7 = vand.u32 2147483648, %v1907_v16  ;;  %vm1914_vm10 = vweird.f32 %v1907_v16 }
 0x4dd   :  { %3106 = vrcp.f32 %v1945_v23  ;;  %v1890_v11 = vpop.f32.mrf.mxu3  ;;  %v1958_v46 = vand.u32 2147483648, %v1945_v23  ;;  %v1956_v6 = vand.u32 2147483647, %v1945_v23  ;;  %v1876_v50 = vpop.f32.mrf.mxu2  ;;  %vm1952_vm11 = vweird.f32 %v1945_v23 }
 0x4de   :  { %3108 = vpow2.f32 %v2791_v18  ;;  %v1900_v29 = vadd.f32 %v1890_v11, %v539_v39  ;;  %vm1919_vm13 = vcmp.eq.f32.partialorder %v1918_v1, 8.507059e+37  ;;  %v1921_v52 = vor.u32 1.1754944e-38, %v1920_v7 }
 0x4df   :  { %v1959_v60 = vor.u32 1.1754944e-38, %v1958_v46  ;;  %v1899_v4 = vadd.f32 %v1876_v50, %v490_v47  ;;  %vm1957_vm15 = vcmp.eq.f32.partialorder %v1956_v6, 8.507059e+37 }
 0x4e0   :  { %v3101_v21 = vpop.eup %3100  ;;  %v2793_v36 = vmul.f32 -1.442695, %v1900_v29 }
 0x4e1   :  { %v3103_v34 = vpop.eup %3102  ;;  %v4060_v53 = vadd.f32 1.0, %v3101_v21 }
 0x4e2   :  { %v3105_v28 = vpop.eup %3104  ;;  %v4062_v5 = vadd.f32 1.0, %v3103_v34 }
 0x4e3   :  { %v3107_v20 = vpop.eup %3106  ;;  %v1910_v8 = vmul.f32 %v3105_v28, %v1907_v16  ;;  %3110 = vrcp.f32 %v4060_v53  ;;  %vm1915_vm8 = vweird.f32 %v3105_v28 }
 0x4e4   :  { %v3109_v38 = vpop.eup %3108  ;;  %v1948_v15 = vmul.f32 %v3107_v20, %v1945_v23  ;;  %3112 = vrcp.f32 %v4062_v5  ;;  %vm1953_vm9 = vweird.f32 %v3107_v20  ;;  %vm1916_vm12 = vmor %vm1914_vm10, %vm1915_vm8  ;;  %v1933_v61 = vand.u32 2147483647, %v4062_v5 }
 0x4e5   :  { %v1911_v24 = vsub.f32 1.0, %v1910_v8  ;;  %v4066_v57 = vadd.f32 1.0, %v3109_v38  ;;  %3114 = vtanh.f32 %v1895_v31  ;;  %vm1954_vm14 = vmor %vm1952_vm11, %vm1953_vm9  ;;  %v1935_v62 = vand.u32 2147483648, %v4062_v5 }
 0x4e6   :  { %v1949_v25 = vsub.f32 1.0, %v1948_v15  ;;  %vm1929_vm1 = vweird.f32 %v4062_v5  ;;  %vm1934_vm5 = vcmp.eq.f32.partialorder %v1933_v61, 8.507059e+37  ;;  %v1998_v15 = vand.u32 2147483648, %v4060_v53  ;;  %v4349_v61 = vld [vmem:[#allocation54_spill] sm:$0xff] }
 0x4e7   :  { %v1912_v19 = vmul.f32 %v3105_v28, %v1911_v24  ;;  %3116 = vrcp.f32 %v4066_v57  ;;  %v1973_v18 = vand.u32 2147483648, %v4066_v57  ;;  %v1971_v11 = vand.u32 2147483647, %v4066_v57 }
 0x4e8   :  { %v1950_v0 = vmul.f32 %v3107_v20, %v1949_v25  ;;  %3118 = vpow2.f32 %v2793_v36  ;;  %vm1967_vm3 = vweird.f32 %v4066_v57  ;;  %v1936_v12 = vor.u32 1.1754944e-38, %v1935_v62 }
 0x4e9   :  { %v4069_v32 = vpop.eup %3110  ;;  %v1913_v49 = vadd.f32 %v3105_v28, %v1912_v19  ;;  %3120 = vtanh.f32 %v1899_v4  ;;  %v1974_v34 = vor.u32 1.1754944e-38, %v1973_v18  ;;  %vm1972_vm7 = vcmp.eq.f32.partialorder %v1971_v11, 8.507059e+37 }
 0x4ea   :  { %v1951_v55 = vadd.f32 %v3107_v20, %v1950_v0  ;;  %v3113_v59 = vpop.eup %3112  ;;  %v1988_v3 = vmul.f32 %v4069_v32, %v4060_v53  ;;  %vm1993_vm8 = vweird.f32 %v4069_v32  ;;  %vm1992_vm9 = vweird.f32 %v4060_v53 }
 0x4eb   :  { %v1917_v63 = vsel %vm1916_vm12, %v3105_v28, %v1913_v49  ;;  %v3115_v13 = vpop.eup %3114  ;;  %v1925_v22 = vmul.f32 %v3113_v59, %v4062_v5  ;;  %vm1930_vm0 = vweird.f32 %v3113_v59  ;;  %v1996_v24 = vand.u32 2147483647, %v4060_v53  ;;  %vm1994_vm10 = vmor %vm1992_vm9, %vm1993_vm8 }
 0x4ec   :  { %v1922_v14 = vsel %vm1919_vm13, %v1921_v52, %v1917_v63  ;;  %v1955_v17 = vsel %vm1954_vm14, %v3107_v20, %v1951_v55  ;;  %v1989_v54 = vsub.f32 1.0, %v1988_v3  ;;  %vm1931_vm4 = vmor %vm1929_vm1, %vm1930_vm0  ;;  %v1999_v46 = vor.u32 1.1754944e-38, %v1998_v15  ;;  %v4352_v15 = vld [vmem:[#allocation52_spill] sm:$0xff] }
 0x4ed   :  { %v3117_v26 = vpop.eup %3116  ;;  %v1960_v27 = vsel %vm1957_vm15, %v1959_v60, %v1955_v17  ;;  %v2019_v30 = vmul.f32 %v3115_v13, %v1922_v14  ;;  %v1926_v40 = vsub.f32 1.0, %v1925_v22  ;;  %vm1997_vm11 = vcmp.eq.f32.partialorder %v1996_v24, 8.507059e+37  ;;  %v4346_v13 = vld [vmem:[#allocation50_spill] sm:$0xff]  ;;  %v4347_v17 = vld [vmem:[#allocation51_spill] sm:$0xff] }
 0x4ee   :  { %v2017_v35 = vmul.f32 %v1960_v27, %v3993_v51  ;;  %v1963_v42 = vmul.f32 %v3117_v26, %v4066_v57  ;;  %v3119_v45 = vpop.eup %3118  ;;  %vm1968_vm2 = vweird.f32 %v3117_v26  ;;  %v1990_v39 = vmul.f32 %v4069_v32, %v1989_v54 }
 0x4ef   :  { %v1927_v16 = vmul.f32 %v3113_v59, %v1926_v40  ;;  %v1986_v51 = vadd.f32 1.0, %v3119_v45  ;;  %v3121_v43 = vpop.eup %3120  ;;  %vm1969_vm6 = vmor %vm1967_vm3, %vm1968_vm2  ;;  %v395_v14 = vadd.f32 %v4346_v13, %v4335_v37  ;;  %v444_v22 = vadd.f32 %v4347_v17, %v4337_v48  ;;  %v4348_v45 = vld [vmem:[#allocation53_spill] sm:$0xff]  ;;  %v4353_v13 = vld [vmem:[#allocation59_spill] sm:$0xff] }
 0x4f0   :  { %v4080_v2 = vadd.f32 %v2019_v30, %v2017_v35  ;;  %v1964_v10 = vsub.f32 1.0, %v1963_v42  ;;  %v1991_v20 = vadd.f32 %v4069_v32, %v1990_v39  ;;  %v542_v54 = vadd.f32 %v4348_v45, %v4339_v9 }
 0x4f1   :  { %v1928_v44 = vadd.f32 %v3113_v59, %v1927_v16  ;;  %3122 = vrcp.f32 %v1986_v51  ;;  %v2013_v19 = vand.u32 2147483648, %v1986_v51  ;;  %v2011_v0 = vand.u32 2147483647, %v1986_v51 }
 0x4f2   :  { %v1965_v23 = vmul.f32 %v3117_v26, %v1964_v10  ;;  %3124 = vtanh.f32 %v4080_v2  ;;  %v1995_v25 = vsel %vm1994_vm10, %v4069_v32, %v1991_v20  ;;  %vm2007_vm13 = vweird.f32 %v1986_v51  ;;  %v4350_v10 = vld [vmem:[#allocation55_spill] sm:$0xff]  ;;  %v4351_v20 = vld [vmem:[#allocation56_spill] sm:$0xff] }
 0x4f3   :  { %v1932_v21 = vsel %vm1931_vm4, %v3113_v59, %v1928_v44  ;;  %v2000_v6 = vsel %vm1997_vm11, %v1999_v46, %v1995_v25  ;;  %v2014_v41 = vor.u32 1.1754944e-38, %v2013_v19  ;;  %vm2012_vm15 = vcmp.eq.f32.partialorder %v2011_v0, 8.507059e+37 }
 0x4f4   :  { %v1966_v58 = vadd.f32 %v3117_v26, %v1965_v23  ;;  %v1937_v29 = vsel %vm1934_vm5, %v1936_v12, %v1932_v21  ;;  %v397_v62 = vadd.f32 %v4349_v61, %v4335_v37  ;;  %v446_v16 = vadd.f32 %v4350_v10, %v4337_v48 }
 0x4f5   :  { %v2020_v31 = vmul.f32 %v3121_v43, %v1937_v29  ;;  %v493_v24 = vadd.f32 %v4352_v15, %v4321_v33 }
 0x4f6   :  { %v1970_v28 = vsel %vm1969_vm6, %v3117_v26, %v1966_v58 }
 0x4f7   :  { %v1975_v5 = vsel %vm1972_vm7, %v1974_v34, %v1970_v28  ;;  %v3123_v38 = vpop.eup %3122 }
 0x4f8   :  { %v2018_v8 = vmul.f32 %v1975_v5, %v4007_v56  ;;  %v2003_v36 = vmul.f32 %v3123_v38, %v1986_v51  ;;  %v3125_v7 = vpop.eup %3124  ;;  %vm2008_vm12 = vweird.f32 %v3123_v38 }
 0x4f9   :  { %v2025_v53 = vmul.f32 %v3125_v7, %v2000_v6  ;;  %vm2009_vm14 = vmor %vm2007_vm13, %vm2008_vm12 }
 0x4fa   :  { %v4094_v57 = vadd.f32 %v2020_v31, %v2018_v8  ;;  %v2004_v1 = vsub.f32 1.0, %v2003_v36  ;;  %v544_v8 = vadd.f32 %v4351_v20, %v4339_v9 }
 0x4fb   :  { %v2027_v55 = vpack.c.bf16 %v2025_v53, %v2025_v53 }
 0x4fc   :  { %3126 = vtanh.f32 %v4094_v57  ;;  %v2005_v56 = vmul.f32 %v3123_v38, %v2004_v1 }
 0x4fd   :  { %v2043_v63 = vunpack.c.l.b16 %v2027_v55 }
 0x4fe   :  { %v2006_v50 = vadd.f32 %v3123_v38, %v2005_v56 }
 0x500   :  { %v2010_v49 = vsel %vm2009_vm14, %v3123_v38, %v2006_v50 }
 0x501   :  { %v2015_v32 = vsel %vm2012_vm15, %v2014_v41, %v2010_v49 }
 0x502   :  { %v3127_v47 = vpop.eup %3126 }
 0x503   :  { %v2026_v52 = vmul.f32 %v3127_v47, %v2015_v32 }
 0x505   :  { %v2028_v59 = vpack.c.bf16 %v2026_v52, %v2026_v52  ;;  %v2912_v60 = vpack.c.bf16 %v2026_v52, %v2025_v53 }
 0x507   :  { %2928 = vst [vmem:[%s4217_s4 + $0x28] sm:$0xff] %v2912_v60   ;;  %v2044_v3 = vunpack.c.l.b16 %v2028_v59 }
 0x509   :  { %v2045_v4 = vpack.c.b16 %v2044_v3, %v2043_v63 }
 0x50b   :  { %2055 = vmatmul.bf16.vlgmr.msrb.gmra.mxu0 %v2045_v4  ;;  %2069 = vmatmul.bf16.vlgmr.msrb.gmra.mxu1 %v2045_v4 }
 0x50c   :  { %2083 = vmatmul.bf16.vlgmr.msrb.gmra.mxu2 %v2045_v4  ;;  %2097 = vmatmul.bf16.vlgmr.msrb.gmra.mxu3 %v2045_v4 }
 0x588   :  { %v2056_v26 = vpop.f32.mrf.mxu0  ;;  %v2070_v27 = vpop.f32.mrf.mxu1 }
 0x589   :  { %v2103_v30 = vadd.f32 %v2056_v26, %v395_v14  ;;  %v2104_v35 = vadd.f32 %v2070_v27, %v444_v22  ;;  %v495_v14 = vadd.f32 %v4353_v13, %v4321_v33 }
 0x58b   :  { %v2796_v40 = vmul.f32 -1.442695, %v2103_v30  ;;  %v2798_v42 = vmul.f32 -1.442695, %v2104_v35 }
 0x58d   :  { %3128 = vpow2.f32 %v2796_v40 }
 0x58e   :  { %3130 = vpow2.f32 %v2798_v42 }
 0x58f   :  { %v2098_v18 = vpop.f32.mrf.mxu3  ;;  %v2084_v31 = vpop.f32.mrf.mxu2 }
 0x590   :  { %v2106_v51 = vadd.f32 %v2098_v18, %v542_v54  ;;  %v2058_v23 = vpop.f32.mrf.mxu0  ;;  %v2072_v44 = vpop.f32.mrf.mxu1  ;;  %v2105_v46 = vadd.f32 %v2084_v31, %v493_v24 }
 0x591   :  { %v2107_v11 = vadd.f32 %v2058_v23, %v397_v62  ;;  %v2108_v12 = vadd.f32 %v2072_v44, %v446_v16 }
 0x592   :  { %v2800_v39 = vmul.f32 -1.442695, %v2106_v51 }
 0x593   :  { %v3129_v21 = vpop.eup %3128  ;;  %v2797_v58 = vmul.f32 -1.442695, %v2107_v11  ;;  %v2799_v29 = vmul.f32 -1.442695, %v2108_v12 }
 0x594   :  { %v3131_v43 = vpop.eup %3130  ;;  %v2117_v34 = vadd.f32 1.0, %v3129_v21  ;;  %3132 = vpow2.f32 %v2800_v39 }
 0x595   :  { %v2155_v28 = vadd.f32 1.0, %v3131_v43  ;;  %3134 = vpow2.f32 %v2797_v58 }
 0x596   :  { %3136 = vrcp.f32 %v2117_v34  ;;  %v2128_v32 = vand.u32 2147483647, %v2117_v34  ;;  %v2130_v52 = vand.u32 2147483648, %v2117_v34  ;;  %vm2124_vm2 = vweird.f32 %v2117_v34 }
 0x597   :  { %3138 = vrcp.f32 %v2155_v28  ;;  %v2100_v5 = vpop.f32.mrf.mxu3  ;;  %v2168_v55 = vand.u32 2147483648, %v2155_v28  ;;  %v2166_v63 = vand.u32 2147483647, %v2155_v28  ;;  %v2086_v3 = vpop.f32.mrf.mxu2  ;;  %vm2162_vm3 = vweird.f32 %v2155_v28 }
 0x598   :  { %3140 = vpow2.f32 %v2799_v29  ;;  %v2110_v1 = vadd.f32 %v2100_v5, %v544_v8  ;;  %vm2129_vm5 = vcmp.eq.f32.partialorder %v2128_v32, 8.507059e+37  ;;  %v2131_v22 = vor.u32 1.1754944e-38, %v2130_v52 }
 0x599   :  { %v2169_v30 = vor.u32 1.1754944e-38, %v2168_v55  ;;  %v2109_v42 = vadd.f32 %v2086_v3, %v495_v14  ;;  %vm2167_vm7 = vcmp.eq.f32.partialorder %v2166_v63, 8.507059e+37 }
 0x59a   :  { %v3133_v38 = vpop.eup %3132  ;;  %v2801_v47 = vmul.f32 -1.442695, %v2110_v1 }
 0x59b   :  { %v3135_v36 = vpop.eup %3134  ;;  %v4115_v25 = vadd.f32 1.0, %v3133_v38 }
 0x59c   :  { %v3137_v7 = vpop.eup %3136  ;;  %v4117_v19 = vadd.f32 1.0, %v3135_v36 }
 0x59d   :  { %v3139_v56 = vpop.eup %3138  ;;  %v2120_v0 = vmul.f32 %v3137_v7, %v2117_v34  ;;  %3142 = vrcp.f32 %v4115_v25  ;;  %vm2125_vm0 = vweird.f32 %v3137_v7 }
 0x59e   :  { %v3141_v6 = vpop.eup %3140  ;;  %v2158_v50 = vmul.f32 %v3139_v56, %v2155_v28  ;;  %3144 = vrcp.f32 %v4117_v19  ;;  %vm2163_vm1 = vweird.f32 %v3139_v56  ;;  %vm2126_vm4 = vmor %vm2124_vm2, %vm2125_vm0  ;;  %v2143_v39 = vand.u32 2147483647, %v4117_v19 }
 0x59f   :  { %v2121_v53 = vsub.f32 1.0, %v2120_v0  ;;  %v4121_v41 = vadd.f32 1.0, %v3141_v6  ;;  %3146 = vtanh.f32 %v2105_v46  ;;  %vm2164_vm6 = vmor %vm2162_vm3, %vm2163_vm1  ;;  %v2145_v21 = vand.u32 2147483648, %v4117_v19 }
 0x5a0   :  { %v2159_v49 = vsub.f32 1.0, %v2158_v50  ;;  %vm2139_vm9 = vweird.f32 %v4117_v19  ;;  %vm2144_vm13 = vcmp.eq.f32.partialorder %v2143_v39, 8.507059e+37  ;;  %v2208_v50 = vand.u32 2147483648, %v4115_v25  ;;  %v4357_v39 = vld [vmem:[#allocation61_spill] sm:$0xff] }
 0x5a1   :  { %v2122_v59 = vmul.f32 %v3137_v7, %v2121_v53  ;;  %3148 = vrcp.f32 %v4121_v41  ;;  %v2183_v29 = vand.u32 2147483648, %v4121_v41  ;;  %v2181_v5 = vand.u32 2147483647, %v4121_v41 }
 0x5a2   :  { %v2160_v60 = vmul.f32 %v3139_v56, %v2159_v49  ;;  %3150 = vpow2.f32 %v2801_v47  ;;  %vm2177_vm11 = vweird.f32 %v4121_v41  ;;  %v2146_v20 = vor.u32 1.1754944e-38, %v2145_v21 }
 0x5a3   :  { %v4124_v4 = vpop.eup %3142  ;;  %v2123_v17 = vadd.f32 %v3137_v7, %v2122_v59  ;;  %3152 = vtanh.f32 %v2109_v42  ;;  %v2184_v36 = vor.u32 1.1754944e-38, %v2183_v29  ;;  %vm2182_vm15 = vcmp.eq.f32.partialorder %v2181_v5, 8.507059e+37 }
 0x5a4   :  { %v2161_v26 = vadd.f32 %v3139_v56, %v2160_v60  ;;  %v3145_v27 = vpop.eup %3144  ;;  %v2198_v40 = vmul.f32 %v4124_v4, %v4115_v25  ;;  %vm2203_vm0 = vweird.f32 %v4124_v4  ;;  %vm2202_vm1 = vweird.f32 %v4115_v25 }
 0x5a5   :  { %v2127_v35 = vsel %vm2126_vm4, %v3137_v7, %v2123_v17  ;;  %v3147_v45 = vpop.eup %3146  ;;  %v2135_v62 = vmul.f32 %v3145_v27, %v4117_v19  ;;  %vm2140_vm8 = vweird.f32 %v3145_v27  ;;  %v2206_v53 = vand.u32 2147483647, %v4115_v25  ;;  %vm2204_vm2 = vmor %vm2202_vm1, %vm2203_vm0 }
 0x5a6   :  { %v2132_v54 = vsel %vm2129_vm5, %v2131_v22, %v2127_v35  ;;  %v2165_v61 = vsel %vm2164_vm6, %v3139_v56, %v2161_v26  ;;  %v2199_v12 = vsub.f32 1.0, %v2198_v40  ;;  %vm2141_vm12 = vmor %vm2139_vm9, %vm2140_vm8  ;;  %v2209_v55 = vor.u32 1.1754944e-38, %v2208_v50 }
 0x5a7   :  { %v3149_v10 = vpop.eup %3148  ;;  %v2170_v16 = vsel %vm2167_vm7, %v2169_v30, %v2165_v61  ;;  %v2229_v18 = vmul.f32 %v3147_v45, %v2132_v54  ;;  %v2136_v23 = vsub.f32 1.0, %v2135_v62  ;;  %vm2207_vm3 = vcmp.eq.f32.partialorder %v2206_v53, 8.507059e+37  ;;  %v4354_v45 = vld [vmem:[#allocation57_spill] sm:$0xff]  ;;  %v4355_v61 = vld [vmem:[#allocation58_spill] sm:$0xff] }
 0x5a8   :  { %v2227_v51 = vmul.f32 %v2170_v16, %v4080_v2  ;;  %v2173_v44 = vmul.f32 %v3149_v10, %v4121_v41  ;;  %v3151_v11 = vpop.eup %3150  ;;  %vm2178_vm10 = vweird.f32 %v3149_v10  ;;  %v2200_v8 = vmul.f32 %v4124_v4, %v2199_v12 }
 0x5a9   :  { %v2137_v34 = vmul.f32 %v3145_v27, %v2136_v23  ;;  %v2196_v2 = vadd.f32 1.0, %v3151_v11  ;;  %v3153_v24 = vpop.eup %3152  ;;  %vm2179_vm14 = vmor %vm2177_vm11, %vm2178_vm10  ;;  %v400_v54 = vadd.f32 %v4354_v45, %v4335_v37  ;;  %v449_v62 = vadd.f32 %v4355_v61, %v4337_v48  ;;  %v4356_v11 = vld [vmem:[#allocation60_spill] sm:$0xff] }
 0x5aa   :  { %v4135_v58 = vadd.f32 %v2229_v18, %v2227_v51  ;;  %v2174_v43 = vsub.f32 1.0, %v2173_v44  ;;  %v2201_v56 = vadd.f32 %v4124_v4, %v2200_v8  ;;  %v547_v12 = vadd.f32 %v4356_v11, %v4339_v9 }
 0x5ab   :  { %v2138_v31 = vadd.f32 %v3145_v27, %v2137_v34  ;;  %3154 = vrcp.f32 %v2196_v2  ;;  %v2223_v59 = vand.u32 2147483648, %v2196_v2  ;;  %v2221_v60 = vand.u32 2147483647, %v2196_v2 }
 0x5ac   :  { %v2175_v28 = vmul.f32 %v3149_v10, %v2174_v43  ;;  %3156 = vtanh.f32 %v4135_v58  ;;  %v2205_v49 = vsel %vm2204_vm2, %v4124_v4, %v2201_v56  ;;  %vm2217_vm5 = vweird.f32 %v2196_v2  ;;  %v4358_v43 = vld [vmem:[#allocation62_spill] sm:$0xff] }
 0x5ad   :  { %v2142_v38 = vsel %vm2141_vm12, %v3145_v27, %v2138_v31  ;;  %v2210_v63 = vsel %vm2207_vm3, %v2209_v55, %v2205_v49  ;;  %v2224_v13 = vor.u32 1.1754944e-38, %v2223_v59  ;;  %vm2222_vm7 = vcmp.eq.f32.partialorder %v2221_v60, 8.507059e+37  ;;  %v4360_v56 = vld [vmem:[#allocation66_spill] sm:$0xff]  ;;  %v4361_v60 = vld [vmem:[#allocation68_spill] sm:$0xff] }
 0x5ae   :  { %v2176_v15 = vadd.f32 %v3149_v10, %v2175_v28  ;;  %v2147_v1 = vsel %vm2144_vm13, %v2146_v20, %v2142_v38  ;;  %v402_v21 = vadd.f32 %v4357_v39, %v4335_v37  ;;  %v451_v34 = vadd.f32 %v4358_v43, %v4337_v48  ;;  %v4359_v48 = vld [vmem:[#allocation65_spill] sm:$0xff] }
 0x5af   :  { %v2230_v46 = vmul.f32 %v3153_v24, %v2147_v1 }
 0x5b0   :  { %v2180_v7 = vsel %vm2179_vm14, %v3149_v10, %v2176_v15 }
 0x5b1   :  { %v2185_v19 = vsel %vm2182_vm15, %v2184_v36, %v2180_v7  ;;  %v3155_v6 = vpop.eup %3154 }
 0x5b2   :  { %v2228_v0 = vmul.f32 %v2185_v19, %v4094_v57  ;;  %v2213_v47 = vmul.f32 %v3155_v6, %v2196_v2  ;;  %v3157_v52 = vpop.eup %3156  ;;  %vm2218_vm4 = vweird.f32 %v3155_v6 }
 0x5b3   :  { %v2235_v25 = vmul.f32 %v3157_v52, %v2210_v63  ;;  %vm2219_vm6 = vmor %vm2217_vm5, %vm2218_vm4  ;;  %v500_v63 = vadd.f32 %v4361_v60, %v4321_v33 }
 0x5b4   :  { %v4149_v41 = vadd.f32 %v2230_v46, %v2228_v0  ;;  %v2214_v32 = vsub.f32 1.0, %v2213_v47  ;;  %v498_v46 = vadd.f32 %v4359_v48, %v4321_v33  ;;  %v549_v0 = vadd.f32 %v4360_v56, %v4339_v9 }
 0x5b5   :  { %v2237_v26 = vpack.c.bf16 %v2235_v25, %v2235_v25 }
 0x5b6   :  { %3158 = vtanh.f32 %v4149_v41  ;;  %v2215_v57 = vmul.f32 %v3155_v6, %v2214_v32 }
 0x5b7   :  { %v2253_v35 = vunpack.c.l.b16 %v2237_v26 }
 0x5b8   :  { %v2216_v3 = vadd.f32 %v3155_v6, %v2215_v57 }
 0x5ba   :  { %v2220_v17 = vsel %vm2219_vm6, %v3155_v6, %v2216_v3 }
 0x5bb   :  { %v2225_v4 = vsel %vm2222_vm7, %v2224_v13, %v2220_v17 }
 0x5bc   :  { %v3159_v14 = vpop.eup %3158 }
 0x5bd   :  { %v2236_v22 = vmul.f32 %v3159_v14, %v2225_v4 }
 0x5bf   :  { %v2238_v27 = vpack.c.bf16 %v2236_v22, %v2236_v22  ;;  %v2917_v30 = vpack.c.bf16 %v2236_v22, %v2235_v25 }
 0x5c1   :  { %2929 = vst [vmem:[%s4217_s4 + $0x30] sm:$0xff] %v2917_v30   ;;  %v2254_v40 = vunpack.c.l.b16 %v2238_v27 }
 0x5c3   :  { %v2255_v42 = vpack.c.b16 %v2254_v40, %v2253_v35 }
 0x5c5   :  { %2265 = vmatmul.bf16.vlgmr.msra.gmra.mxu0 %v2255_v42  ;;  %2279 = vmatmul.bf16.vlgmr.msra.gmra.mxu1 %v2255_v42 }
 0x5c6   :  { %2293 = vmatmul.bf16.vlgmr.msra.gmra.mxu2 %v2255_v42  ;;  %2307 = vmatmul.bf16.vlgmr.msra.gmra.mxu3 %v2255_v42 }
 0x642   :  { %v2266_v10 = vpop.f32.mrf.mxu0  ;;  %v2280_v16 = vpop.f32.mrf.mxu1 }
 0x643   :  { %v2313_v18 = vadd.f32 %v2266_v10, %v400_v54  ;;  %v2314_v51 = vadd.f32 %v2280_v16, %v449_v62 }
 0x645   :  { %v2804_v23 = vmul.f32 -1.442695, %v2313_v18  ;;  %v2806_v44 = vmul.f32 -1.442695, %v2314_v51 }
 0x647   :  { %3160 = vpow2.f32 %v2804_v23 }
 0x648   :  { %3162 = vpow2.f32 %v2806_v44 }
 0x649   :  { %v2308_v29 = vpop.f32.mrf.mxu3  ;;  %v2294_v37 = vpop.f32.mrf.mxu2 }
 0x64a   :  { %v2316_v2 = vadd.f32 %v2308_v29, %v547_v12  ;;  %v2268_v28 = vpop.f32.mrf.mxu0  ;;  %v2282_v31 = vpop.f32.mrf.mxu1  ;;  %v2315_v50 = vadd.f32 %v2294_v37, %v498_v46 }
 0x64b   :  { %v2317_v5 = vadd.f32 %v2268_v28, %v402_v21  ;;  %v2318_v20 = vadd.f32 %v2282_v31, %v451_v34 }
 0x64c   :  { %v2808_v8 = vmul.f32 -1.442695, %v2316_v2 }
 0x64d   :  { %v3161_v38 = vpop.eup %3160  ;;  %v2805_v15 = vmul.f32 -1.442695, %v2317_v5  ;;  %v2807_v1 = vmul.f32 -1.442695, %v2318_v20 }
 0x64e   :  { %v3163_v24 = vpop.eup %3162  ;;  %v2327_v36 = vadd.f32 1.0, %v3161_v38  ;;  %3164 = vpow2.f32 %v2808_v8 }
 0x64f   :  { %v2365_v7 = vadd.f32 1.0, %v3163_v24  ;;  %3166 = vpow2.f32 %v2805_v15 }
 0x650   :  { %3168 = vrcp.f32 %v2327_v36  ;;  %v2338_v4 = vand.u32 2147483647, %v2327_v36  ;;  %v2340_v22 = vand.u32 2147483648, %v2327_v36  ;;  %vm2334_vm10 = vweird.f32 %v2327_v36 }
 0x651   :  { %3170 = vrcp.f32 %v2365_v7  ;;  %v2310_v19 = vpop.f32.mrf.mxu3  ;;  %v2378_v17 = vand.u32 2147483648, %v2365_v7  ;;  %v2296_v26 = vpop.f32.mrf.mxu2  ;;  %v2376_v30 = vand.u32 2147483647, %v2365_v7  ;;  %vm2372_vm11 = vweird.f32 %v2365_v7 }
 0x652   :  { %3172 = vpow2.f32 %v2807_v1  ;;  %v2320_v49 = vadd.f32 %v2310_v19, %v549_v0  ;;  %v2319_v42 = vadd.f32 %v2296_v26, %v500_v63  ;;  %v2341_v54 = vor.u32 1.1754944e-38, %v2340_v22 }
 0x653   :  { %v2379_v16 = vor.u32 1.1754944e-38, %v2378_v17  ;;  %vm2339_vm14 = vcmp.eq.f32.partialorder %v2338_v4, 8.507059e+37  ;;  %vm2377_vm15 = vcmp.eq.f32.partialorder %v2376_v30, 8.507059e+37 }
 0x654   :  { %v3165_v6 = vpop.eup %3164  ;;  %v2809_v13 = vmul.f32 -1.442695, %v2320_v49 }
 0x655   :  { %v3167_v53 = vpop.eup %3166  ;;  %v4170_v47 = vadd.f32 1.0, %v3165_v6 }
 0x656   :  { %v3169_v32 = vpop.eup %3168  ;;  %v4172_v52 = vadd.f32 1.0, %v3167_v53 }
 0x657   :  { %v3171_v55 = vpop.eup %3170  ;;  %v2330_v59 = vmul.f32 %v3169_v32, %v2327_v36  ;;  %3174 = vrcp.f32 %v4170_v47  ;;  %vm2335_vm8 = vweird.f32 %v3169_v32  ;;  %v2418_v43 = vand.u32 2147483648, %v4170_v47 }
 0x658   :  { %v3173_v57 = vpop.eup %3172  ;;  %v2368_v3 = vmul.f32 %v3171_v55, %v2365_v7  ;;  %3176 = vtanh.f32 %v2315_v50  ;;  %vm2373_vm9 = vweird.f32 %v3171_v55  ;;  %vm2336_vm12 = vmor %vm2334_vm10, %vm2335_vm8  ;;  %vm2349_vm0 = vweird.f32 %v4172_v52 }
 0x659   :  { %v2331_v9 = vsub.f32 1.0, %v2330_v59  ;;  %3178 = vrcp.f32 %v4172_v52  ;;  %v4178_v25 = vadd.f32 1.0, %v3173_v57  ;;  %vm2374_vm13 = vmor %vm2372_vm11, %vm2373_vm9  ;;  %v2353_v20 = vand.u32 2147483647, %v4172_v52 }
 0x65a   :  { %v2369_v14 = vsub.f32 1.0, %v2368_v3  ;;  %v2355_v8 = vand.u32 2147483648, %v4172_v52  ;;  %vm2412_vm4 = vweird.f32 %v4170_v47  ;;  %v2416_v46 = vand.u32 2147483647, %v4170_v47 }
 0x65b   :  { %v2332_v27 = vmul.f32 %v3169_v32, %v2331_v9  ;;  %3180 = vrcp.f32 %v4178_v25  ;;  %v2393_v5 = vand.u32 2147483648, %v4178_v25  ;;  %v2391_v36 = vand.u32 2147483647, %v4178_v25 }
 0x65c   :  { %v2370_v35 = vmul.f32 %v3171_v55, %v2369_v14  ;;  %3182 = vpow2.f32 %v2809_v13  ;;  %v2356_v19 = vor.u32 1.1754944e-38, %v2355_v8  ;;  %vm2387_vm7 = vweird.f32 %v4178_v25 }
 0x65d   :  { %v4181_v33 = vpop.eup %3174  ;;  %v2333_v40 = vadd.f32 %v3169_v32, %v2332_v27  ;;  %3184 = vtanh.f32 %v2319_v42  ;;  %vm2354_vm8 = vcmp.eq.f32.partialorder %v2353_v20, 8.507059e+37  ;;  %v2394_v53 = vor.u32 1.1754944e-38, %v2393_v5 }
 0x65e   :  { %v3177_v45 = vpop.eup %3176  ;;  %v2371_v61 = vadd.f32 %v3171_v55, %v2370_v35  ;;  %v2408_v62 = vmul.f32 %v4181_v33, %v4170_v47  ;;  %vm2413_vm2 = vweird.f32 %v4181_v33  ;;  %v2419_v49 = vor.u32 1.1754944e-38, %v2418_v43 }
 0x65f   :  { %v3179_v10 = vpop.eup %3178  ;;  %v2337_v18 = vsel %vm2336_vm12, %v3169_v32, %v2333_v40  ;;  %vm4201_vm6 = vmor %vm2412_vm4, %vm2413_vm2  ;;  %vm2392_vm10 = vcmp.eq.f32.partialorder %v2391_v36, 8.507059e+37  ;;  %vm2417_vm11 = vcmp.eq.f32.partialorder %v2416_v46, 8.507059e+37 }
 0x660   :  { %v2342_v51 = vsel %vm2339_vm14, %v2341_v54, %v2337_v18  ;;  %v2375_v23 = vsel %vm2374_vm13, %v3171_v55, %v2371_v61  ;;  %v2409_v44 = vsub.f32 1.0, %v2408_v62  ;;  %v2345_v11 = vmul.f32 %v3179_v10, %v4172_v52 }
 0x661   :  { %v3181_v12 = vpop.eup %3180  ;;  %v2380_v39 = vsel %vm2377_vm15, %v2379_v16, %v2375_v23  ;;  %v2439_v21 = vmul.f32 %v3177_v45, %v2342_v51  ;;  %vm2350_vm1 = vweird.f32 %v3179_v10 }
 0x662   :  { %v2437_v34 = vmul.f32 %v2380_v39, %v4135_v58  ;;  %v2410_v29 = vmul.f32 %v4181_v33, %v2409_v44  ;;  %v2346_v2 = vsub.f32 1.0, %v2345_v11  ;;  %v2383_v28 = vmul.f32 %v3181_v12, %v4178_v25  ;;  %v3183_v31 = vpop.eup %3182  ;;  %vm2351_vm5 = vmor %vm2349_vm0, %vm2350_vm1 }
 0x663   :  { %v2406_v1 = vadd.f32 1.0, %v3183_v31  ;;  %vm2388_vm3 = vweird.f32 %v3181_v12  ;;  %v3185_v48 = vpop.eup %3184 }
 0x664   :  { %v2441_v38 = vadd.f32 %v2439_v21, %v2437_v34  ;;  %v2384_v15 = vsub.f32 1.0, %v2383_v28  ;;  %v2347_v24 = vmul.f32 %v3179_v10, %v2346_v2  ;;  %v2411_v58 = vadd.f32 %v4181_v33, %v2410_v29  ;;  %vm2389_vm9 = vmor %vm2387_vm7, %vm2388_vm3 }
 0x665   :  { %v2433_v14 = vand.u32 2147483648, %v2406_v1  ;;  %v2431_v4 = vand.u32 2147483647, %v2406_v1  ;;  %vm2427_vm13 = vweird.f32 %v2406_v1 }
 0x666   :  { %3186 = vtanh.f32 %v2441_v38  ;;  %v2385_v7 = vmul.f32 %v3181_v12, %v2384_v15  ;;  %v2348_v37 = vadd.f32 %v3179_v10, %v2347_v24  ;;  %v2415_v50 = vsel %vm4201_vm6, %v4181_v33, %v2411_v58 }
 0x667   :  { %3188 = vrcp.f32 %v2406_v1  ;;  %v2420_v57 = vsel %vm2417_vm11, %v2419_v49, %v2415_v50  ;;  %v2434_v26 = vor.u32 1.1754944e-38, %v2433_v14  ;;  %vm2432_vm15 = vcmp.eq.f32.partialorder %v2431_v4, 8.507059e+37 }
 0x668   :  { %v2352_v0 = vsel %vm2351_vm5, %v3179_v10, %v2348_v37  ;;  %v2386_v6 = vadd.f32 %v3181_v12, %v2385_v7 }
 0x669   :  { %v2357_v47 = vsel %vm2354_vm8, %v2356_v19, %v2352_v0 }
 0x66a   :  { %v2390_v32 = vsel %vm2389_vm9, %v3181_v12, %v2386_v6  ;;  %v2440_v52 = vmul.f32 %v3185_v48, %v2357_v47 }
 0x66b   :  { %v2395_v55 = vsel %vm2392_vm10, %v2394_v53, %v2390_v32 }
 0x66c   :  { %v3187_v59 = vpop.eup %3186  ;;  %v2438_v60 = vmul.f32 %v2395_v55, %v4149_v41 }
 0x66d   :  { %v3189_v63 = vpop.eup %3188  ;;  %v2445_v3 = vmul.f32 %v3187_v59, %v2420_v57 }
 0x66e   :  { %v2442_v9 = vadd.f32 %v2440_v52, %v2438_v60  ;;  %v2423_v25 = vmul.f32 %v3189_v63, %v2406_v1  ;;  %vm2428_vm12 = vweird.f32 %v3189_v63 }
 0x66f   :  { %vm2429_vm14 = vmor %vm2427_vm13, %vm2428_vm12 }
 0x670   :  { %3190 = vtanh.f32 %v2442_v9  ;;  %v2424_v13 = vsub.f32 1.0, %v2423_v25 }
 0x672   :  { %v2425_v17 = vmul.f32 %v3189_v63, %v2424_v13 }
 0x674   :  { %v2426_v22 = vadd.f32 %v3189_v63, %v2425_v17 }
 0x676   :  { %v3191_v27 = vpop.eup %3190  ;;  %v2430_v30 = vsel %vm2429_vm14, %v3189_v63, %v2426_v22 }
 0x677   :  { %v2435_v35 = vsel %vm2432_vm15, %v2434_v26, %v2430_v30 }
 0x678   :  { %v2446_v33 = vmul.f32 %v3191_v27, %v2435_v35 }
 0x67a   :  { %v2922_v41 = vpack.c.bf16 %v2446_v33, %v2445_v3 }
 0x67c   :  { %2930 = vst [vmem:[%s4217_s4 + $0x38] sm:$0xff] %v2922_v41  }
 0x67d   :  { %2460 = vsyncpa [#allocation6], 1 }
 0x67e   :  { %2461 = vsyncpa [#allocation8], 1 }

</bundles_post_ra>
